<compile_context>
chip_gen: v5e
topology: v5e:2x2
jax: 0.10.0
libtpu: 0.0.40
codegen_flags: <defaults>
</compile_context>

<pallas_src>
import functools

import jax
import jax.numpy as jnp
from jax.experimental import pallas as pl
from jax.experimental.pallas import tpu as pltpu


def _round_up(x, m):
    return (x + m - 1) // m * m


# ----------------------------------------------------------------------------
# Tiled matmul + bias (+ReLU) kernel (used for the LSTM input projection)
# ----------------------------------------------------------------------------
def _matmul_bias_kernel(x_ref, w_ref, b_ref, o_ref, acc_ref, *, relu):
    @pl.when(pl.program_id(2) == 0)
    def _():
        acc_ref[...] = jnp.zeros_like(acc_ref)

    acc_ref[...] += jnp.dot(x_ref[...], w_ref[...],
                            preferred_element_type=jnp.float32)

    @pl.when(pl.program_id(2) == pl.num_programs(2) - 1)
    def _():
        y = acc_ref[...] + b_ref[...]
        if relu:
            y = jnp.maximum(y, 0.0)
        o_ref[...] = y.astype(o_ref.dtype)


def matmul_bias(x, w, b, *, relu=False, tm=256, tk=512, tn=512):
    """(M,K) @ (K,N) + b, bf16 operands, f32 accumulate. Pads to tile grid."""
    M, K = x.shape
    _, N = w.shape
    tm = min(tm, _round_up(M, 16))
    tk = min(tk, _round_up(K, 128))
    tn = min(tn, _round_up(N, 128))
    Mp, Kp, Np = _round_up(M, tm), _round_up(K, tk), _round_up(N, tn)

    x_p = jnp.pad(x, ((0, Mp - M), (0, Kp - K))).astype(jnp.bfloat16)
    w_p = jnp.pad(w, ((0, Kp - K), (0, Np - N))).astype(jnp.bfloat16)
    b_p = jnp.pad(b.reshape(1, N), ((0, 0), (0, Np - N))).astype(jnp.float32)

    out = pl.pallas_call(
        functools.partial(_matmul_bias_kernel, relu=relu),
        out_shape=jax.ShapeDtypeStruct((Mp, Np), jnp.float32),
        grid_spec=pltpu.PrefetchScalarGridSpec(
            num_scalar_prefetch=0,
            grid=(Mp // tm, Np // tn, Kp // tk),
            in_specs=[
                pl.BlockSpec((tm, tk), lambda i, j, k: (i, k)),
                pl.BlockSpec((tk, tn), lambda i, j, k: (k, j)),
                pl.BlockSpec((1, tn), lambda i, j, k: (0, j)),
            ],
            out_specs=pl.BlockSpec((tm, tn), lambda i, j, k: (i, j)),
            scratch_shapes=[pltpu.VMEM((tm, tn), jnp.float32)],
        ),
        compiler_params=pltpu.CompilerParams(
            dimension_semantics=("parallel", "parallel", "arbitrary")),
    )(x_p, w_p, b_p)
    return out[:M, :N]


# ----------------------------------------------------------------------------
# Fused TDNN (Conv1d k=5, padding=2, stride s) + ReLU, no im2col
# ----------------------------------------------------------------------------
def _tdnn_kernel(x_ref, w_ref, b_ref, o_ref, *, ntaps):
    # x_ref: (1, R, S*Cin_p)   stride-folded, zero-padded input (one batch)
    # w_ref: (ntaps, S*Cin_p, tile_cout) bf16
    # b_ref: (1, tile_cout) f32
    # o_ref: (1, T_out, tile_cout) bf16
    t_out = o_ref.shape[1]
    x = x_ref[0].astype(jnp.bfloat16)
    acc = jnp.dot(x[0:t_out], w_ref[0], preferred_element_type=jnp.float32)
    for k in range(1, ntaps):
        acc = acc + jnp.dot(x[k:k + t_out], w_ref[k],
                            preferred_element_type=jnp.float32)
    y = jnp.maximum(acc + b_ref[...], 0.0)
    o_ref[0] = y.astype(o_ref.dtype)


def tdnn_forward(x, p):
    """x: (B, T, Cin_p) -> (B, T_out, Cout_p) bf16 (real channels first)."""
    B, T, cin = x.shape
    s, ntaps = p["stride"], p["ntaps"]
    t_out = (T - 1) // s + 1
    r = t_out + ntaps - 1                       # stride-folded time length
    pad_total = r * s - T                       # >= 4 for s in {1,2,4}
    x_p = jnp.pad(x, ((0, 0), (2, pad_total - 2), (0, 0)))
    x_r = x_p.reshape(B, r, s * cin)            # free, contiguous reshape

    cout_p = p["out_ch_p"]
    tile_cout = cout_p
    for t in (512, 384, 256, 128):
        if cout_p % t == 0:
            tile_cout = min(cout_p, t)
            break

    # TODO(synk): for very long sequences also tile the time axis on the grid.
    return pl.pallas_call(
        functools.partial(_tdnn_kernel, ntaps=ntaps),
        out_shape=jax.ShapeDtypeStruct((B, t_out, cout_p), jnp.bfloat16),
        grid_spec=pltpu.PrefetchScalarGridSpec(
            num_scalar_prefetch=0,
            grid=(B, cout_p // tile_cout),
            in_specs=[
                pl.BlockSpec((1, r, s * cin), lambda b, j: (b, 0, 0)),
                pl.BlockSpec((ntaps, s * cin, tile_cout), lambda b, j: (0, 0, j)),
                pl.BlockSpec((1, tile_cout), lambda b, j: (0, j)),
            ],
            out_specs=pl.BlockSpec((1, t_out, tile_cout), lambda b, j: (b, 0, j)),
        ),
        compiler_params=pltpu.CompilerParams(
            dimension_semantics=("parallel", "parallel")),
    )(x_r, p["w"], p["b"].reshape(1, cout_p))


# ----------------------------------------------------------------------------
# Fused bidirectional LSTM: one pallas_call, in-kernel time recurrence
# ----------------------------------------------------------------------------
def _bilstm_kernel(xg_ref, whh_ref, o_ref, h_sc, c_sc, *, t_steps, hp):
    # xg_ref: (Bp, T, 4Hp)  precomputed x@W_ih^T + b for this direction
    # whh_ref: (1, Hp, 4Hp) W_hh^T for this direction
    # o_ref:  (Bp, T, Hp)   lane-dense half of the (Bp, T, 2Hp) output
    d = pl.program_id(0)                        # 0 = forward, 1 = backward
    h_sc[...] = jnp.zeros_like(h_sc)
    c_sc[...] = jnp.zeros_like(c_sc)

    def step(t, carry):
        t_idx = jnp.where(d == 0, t, t_steps - 1 - t)
        gates = xg_ref[:, t_idx, :] + jnp.dot(
            h_sc[...], whh_ref[0], preferred_element_type=jnp.float32)
        i = jax.nn.sigmoid(gates[:, 0:hp])
        f = jax.nn.sigmoid(gates[:, hp:2 * hp])
        g = jnp.tanh(gates[:, 2 * hp:3 * hp])
        o = jax.nn.sigmoid(gates[:, 3 * hp:4 * hp])
        c = f * c_sc[...] + i * g
        h = o * jnp.tanh(c)
        c_sc[...] = c
        h_sc[...] = h
        o_ref[:, t_idx, :] = h.astype(o_ref.dtype)
        return carry

    jax.lax.fori_loop(0, t_steps, step, 0)


def bilstm_forward(x, p):
    """x: (B, T, Cin_p) -> (B, T, 2*Hp) f32; real h at [0:H] and [Hp:Hp+H]."""
    B, T, cin = x.shape
    Bp = _round_up(B, 8)
    Hp = p["hp"]
    x_p = jnp.pad(x, ((0, Bp - B), (0, 0), (0, 0)))

    # Input projection for both directions in one tiled matmul: (Bp*T, 8Hp).
    xg = matmul_bias(x_p.reshape(Bp * T, cin), p["w_ih_t"], p["b"], relu=False)
    xg = xg.reshape(Bp, T, 8 * Hp)

    # TODO(synk): chunk the time axis (grid over T blocks) for long sequences
    # so the xg / h_seq VMEM residency stays within v7x's 64 MiB.
    h = pl.pallas_call(
        functools.partial(_bilstm_kernel, t_steps=T, hp=Hp),
        out_shape=jax.ShapeDtypeStruct((Bp, T, 2 * Hp), jnp.float32),
        grid_spec=pltpu.PrefetchScalarGridSpec(
            num_scalar_prefetch=0,
            grid=(2,),                                   # direction axis
            in_specs=[
                pl.BlockSpec((Bp, T, 4 * Hp), lambda d: (0, 0, d)),
                pl.BlockSpec((1, Hp, 4 * Hp), lambda d: (d, 0, 0)),
            ],
            out_specs=pl.BlockSpec((Bp, T, Hp), lambda d: (0, 0, d)),
            scratch_shapes=[
                pltpu.VMEM((Bp, Hp), jnp.float32),
                pltpu.VMEM((Bp, Hp), jnp.float32),
            ],
        ),
        compiler_params=pltpu.CompilerParams(
            dimension_semantics=("parallel",)),          # 2 TCs on v7x
    )(xg, p["w_hh_t"])
    return h[:B]


# ----------------------------------------------------------------------------
# Parameter init (PyTorch layout) + one-time preparation into kernel layout
# ----------------------------------------------------------------------------
def init_encoder_params(key, n_features, hidden_size, down_rate):
    strides = {1: [1, 1, 1, 1], 2: [1, 1, 1, 2], 4: [1, 1, 2, 2],
               8: [1, 2, 2, 2], 16: [2, 2, 2, 2], 32: [2, 2, 4, 2]}[down_rate]
    two_h = 2 * hidden_size
    params = {"strides": strides, "tdnn": [], "rnn": []}

    def u(k, shape, fan_in):
        bound = 1.0 / jnp.sqrt(jnp.float32(fan_in))
        return jax.random.uniform(k, shape, jnp.float32, -bound, bound)

    keys = jax.random.split(key, 64)
    ki = 0
    in_dim = n_features
    for _ in range(4):
        w = u(keys[ki], (two_h, in_dim, 5), in_dim * 5); ki += 1
        b = u(keys[ki], (two_h,), in_dim * 5); ki += 1
        params["tdnn"].append({"w": w, "b": b})
        in_dim = two_h

    for _ in range(2):                       # rnn_[0], rnn_[1]
        p = {}
        for suffix in ("", "_r"):
            p["w_ih" + suffix] = u(keys[ki], (4 * hidden_size, two_h), hidden_size); ki += 1
            p["w_hh" + suffix] = u(keys[ki], (4 * hidden_size, hidden_size), hidden_size); ki += 1
            p["b_ih" + suffix] = u(keys[ki], (4 * hidden_size,), hidden_size); ki += 1
            p["b_hh" + suffix] = u(keys[ki], (4 * hidden_size,), hidden_size); ki += 1
        params["rnn"].append(p)
    return params


def _prepare_tdnn(w, b, stride, in_map, in_ch_p, out_ch_p):
    """Conv1d weight (O, I, 5) -> stride-folded (ntaps, s*in_ch_p, out_ch_p)."""
    O, I, K = w.shape
    s = stride
    ntaps = (K - 1) // s + 1
    wk = jnp.zeros((ntaps, s * in_ch_p, out_ch_p), jnp.float32)
    for k in range(K):
        kp, j = divmod(k, s)
        rows = j * in_ch_p + in_map
        wk = wk.at[kp, rows, :O].set(jnp.transpose(w[:, :, k]))
    bp = jnp.zeros((out_ch_p,), jnp.float32).at[:O].set(b)
    return {"w": wk.astype(jnp.bfloat16), "b": bp, "stride": s,
            "ntaps": ntaps, "out_ch_p": out_ch_p}


def _prepare_lstm(p, hidden, in_map, in_ch_p):
    H = hidden
    Hp = _round_up(H, 128)

    def pad_ih(w_ih):                         # (4H, I) -> (in_ch_p, 4Hp)
        w4 = w_ih.reshape(4, H, -1)
        out = jnp.zeros((4, Hp, in_ch_p), jnp.float32)
        out = out.at[:, :H, in_map].set(w4)
        return jnp.transpose(out.reshape(4 * Hp, in_ch_p))

    def pad_hh(w_hh):                         # (4H, H) -> (Hp, 4Hp)
        w4 = w_hh.reshape(4, H, H)
        out = jnp.zeros((4, Hp, Hp), jnp.float32)
        out = out.at[:, :H, :H].set(w4)
        return jnp.transpose(out.reshape(4 * Hp, Hp))

    def pad_b(b):                             # (4H,) -> (4Hp,)
        return (jnp.zeros((4, Hp), jnp.float32)
                .at[:, :H].set(b.reshape(4, H)).reshape(4 * Hp))

    w_ih = jnp.concatenate([pad_ih(p["w_ih"]), pad_ih(p["w_ih_r"])], axis=1)
    bias = jnp.concatenate([pad_b(p["b_ih"] + p["b_hh"]),
                            pad_b(p["b_ih_r"] + p["b_hh_r"])])
    w_hh = jnp.stack([pad_hh(p["w_hh"]), pad_hh(p["w_hh_r"])])
    return {"w_ih_t": w_ih.astype(jnp.bfloat16), "b": bias,
            "w_hh_t": w_hh, "hp": Hp}


def prepare_encoder_params(raw, n_features, hidden_size):
    strides = raw["strides"]
    C = 2 * hidden_size
    Cp = _round_up(C, 128)
    Fp = _round_up(n_features, 128)
    Hp = _round_up(hidden_size, 128)

    id_feat = jnp.arange(n_features)
    id_c = jnp.arange(C)
    lstm_out_map = jnp.concatenate([jnp.arange(hidden_size),
                                    Hp + jnp.arange(hidden_size)])

    tdnn_in = [(Fp, id_feat), (Cp, id_c), (Cp, id_c), (2 * Hp, lstm_out_map)]
    tdnn = []
    for j in range(4):
        in_p, in_map = tdnn_in[j]
        tdnn.append(_prepare_tdnn(raw["tdnn"][j]["w"], raw["tdnn"][j]["b"],
                                  strides[j], in_map, in_p, Cp))
    rnn = [_prepare_lstm(raw["rnn"][i], hidden_size, id_c, Cp)
           for i in range(2)]
    return {"tdnn": tdnn, "rnn": rnn, "feat_p": Fp,
            "hidden": hidden_size, "hp": Hp, "strides": strides}


# ----------------------------------------------------------------------------
# Encoder forward
# ----------------------------------------------------------------------------
def encoder_forward(features, params):
    """features: (B, n_frames, n_features) -> (B, T_out, 2*hidden)."""
    B, T, F = features.shape
    x = jnp.pad(features, ((0, 0), (0, 0), (0, params["feat_p"] - F)))
    for j in range(3):
        x = tdnn_forward(x, params["tdnn"][j])
    x = bilstm_forward(x, params["rnn"][0])
    x = tdnn_forward(x, params["tdnn"][3])
    x = bilstm_forward(x, params["rnn"][1])
    H, Hp = params["hidden"], params["hp"]
    if Hp == H:
        return x
    return jnp.concatenate([x[..., :H], x[..., Hp:Hp + H]], axis=-1)


# ----------------------------------------------------------------------------
if __name__ == "__main__":
    # Small, self-consistent shapes.  The Encoder's forward only type-checks
    # when the RNN is bidirectional (tdnn_[3] expects 2*hidden input channels),
    # so bidirectional=True and num_layers=2 are implied.
    batch, n_frames, n_features = 2, 32, 20
    hidden_size = 16
    down_rate = 8                            # strides [1, 2, 2, 2]

    key = jax.random.PRNGKey(0)
    k_params, k_x = jax.random.split(key)
    raw_params = init_encoder_params(k_params, n_features, hidden_size, down_rate)
    params = prepare_encoder_params(raw_params, n_features, hidden_size)
    features = jax.random.normal(k_x, (batch, n_frames, n_features), jnp.float32)

    fwd = jax.jit(functools.partial(encoder_forward, params=params))
    out = jax.block_until_ready(fwd(features))

    expected_t = n_frames
    for s in raw_params["strides"]:
        expected_t = (expected_t - 1) // s + 1
    assert out.shape == (batch, expected_t, 2 * hidden_size), out.shape
    assert bool(jnp.all(jnp.isfinite(out)))
    print("KERNEL_OK")
</pallas_src>

<mosaic_0001>
module attributes {stable_mosaic.version = 11 : i64} {
  func.func @_tdnn_kernel(%arg0: i32, %arg1: i32, %arg2: memref<1x36x128xf32, #tpu.memory_space<vmem>>, %arg3: memref<5x128x128xbf16, #tpu.memory_space<vmem>>, %arg4: memref<1x128xf32, #tpu.memory_space<vmem>>, %arg5: memref<1x32x128xbf16, #tpu.memory_space<vmem>>) attributes {dimension_semantics = [#tpu.dimension_semantics<parallel>, #tpu.dimension_semantics<parallel>], iteration_bounds = array<i64: 2, 1>, scalar_prefetch = 0 : i64, scratch_operands = 0 : i64, tpu.core_type = #tpu.core_type<tc>, window_params = [{transform_indices = @transform_0, window_bounds = array<i64: 1, 36, 128>}, {transform_indices = @transform_1, window_bounds = array<i64: 5, 128, 128>}, {transform_indices = @transform_2, window_bounds = array<i64: 1, 128>}, {transform_indices = @transform_3, window_bounds = array<i64: 1, 32, 128>}]} {
    %c0 = arith.constant 0 : index
    %c0_0 = arith.constant 0 : index
    %c0_1 = arith.constant 0 : index
    %0 = vector.load %arg2[%c0, %c0_0, %c0_1] : memref<1x36x128xf32, #tpu.memory_space<vmem>>, vector<1x36x128xf32>
    %1 = vector.shape_cast %0 : vector<1x36x128xf32> to vector<36x128xf32>
    %2 = arith.truncf %1 : vector<36x128xf32> to vector<36x128xbf16>
    %3 = vector.extract_strided_slice %2 {offsets = [0, 0], sizes = [32, 128], strides = [1, 1]} : vector<36x128xbf16> to vector<32x128xbf16>
    %c0_2 = arith.constant 0 : index
    %c0_3 = arith.constant 0 : index
    %c0_4 = arith.constant 0 : index
    %4 = vector.load %arg3[%c0_2, %c0_3, %c0_4] : memref<5x128x128xbf16, #tpu.memory_space<vmem>>, vector<1x128x128xbf16>
    %5 = vector.shape_cast %4 : vector<1x128x128xbf16> to vector<128x128xbf16>
    %cst = arith.constant dense<0.000000e+00> : vector<32x128xf32>
    %6 = tpu.matmul %3, %5, %cst {dimension_numbers = #tpu.dot_dimension_numbers<[1], [0], [0], [1], [0, 0, 1, 1], [], []>} : vector<32x128xbf16>, vector<128x128xbf16>, vector<32x128xf32> -> vector<32x128xf32>
    %7 = vector.extract_strided_slice %2 {offsets = [1, 0], sizes = [32, 128], strides = [1, 1]} : vector<36x128xbf16> to vector<32x128xbf16>
    %c1 = arith.constant 1 : index
    %c0_5 = arith.constant 0 : index
    %c0_6 = arith.constant 0 : index
    %8 = vector.load %arg3[%c1, %c0_5, %c0_6] : memref<5x128x128xbf16, #tpu.memory_space<vmem>>, vector<1x128x128xbf16>
    %9 = vector.shape_cast %8 : vector<1x128x128xbf16> to vector<128x128xbf16>
    %cst_7 = arith.constant dense<0.000000e+00> : vector<32x128xf32>
    %10 = tpu.matmul %7, %9, %cst_7 {dimension_numbers = #tpu.dot_dimension_numbers<[1], [0], [0], [1], [0, 0, 1, 1], [], []>} : vector<32x128xbf16>, vector<128x128xbf16>, vector<32x128xf32> -> vector<32x128xf32>
    %11 = arith.addf %6, %10 : vector<32x128xf32>
    %12 = vector.extract_strided_slice %2 {offsets = [2, 0], sizes = [32, 128], strides = [1, 1]} : vector<36x128xbf16> to vector<32x128xbf16>
    %c2 = arith.constant 2 : index
    %c0_8 = arith.constant 0 : index
    %c0_9 = arith.constant 0 : index
    %13 = vector.load %arg3[%c2, %c0_8, %c0_9] : memref<5x128x128xbf16, #tpu.memory_space<vmem>>, vector<1x128x128xbf16>
    %14 = vector.shape_cast %13 : vector<1x128x128xbf16> to vector<128x128xbf16>
    %cst_10 = arith.constant dense<0.000000e+00> : vector<32x128xf32>
    %15 = tpu.matmul %12, %14, %cst_10 {dimension_numbers = #tpu.dot_dimension_numbers<[1], [0], [0], [1], [0, 0, 1, 1], [], []>} : vector<32x128xbf16>, vector<128x128xbf16>, vector<32x128xf32> -> vector<32x128xf32>
    %16 = arith.addf %11, %15 : vector<32x128xf32>
    %17 = vector.extract_strided_slice %2 {offsets = [3, 0], sizes = [32, 128], strides = [1, 1]} : vector<36x128xbf16> to vector<32x128xbf16>
    %c3 = arith.constant 3 : index
    %c0_11 = arith.constant 0 : index
    %c0_12 = arith.constant 0 : index
    %18 = vector.load %arg3[%c3, %c0_11, %c0_12] : memref<5x128x128xbf16, #tpu.memory_space<vmem>>, vector<1x128x128xbf16>
    %19 = vector.shape_cast %18 : vector<1x128x128xbf16> to vector<128x128xbf16>
    %cst_13 = arith.constant dense<0.000000e+00> : vector<32x128xf32>
    %20 = tpu.matmul %17, %19, %cst_13 {dimension_numbers = #tpu.dot_dimension_numbers<[1], [0], [0], [1], [0, 0, 1, 1], [], []>} : vector<32x128xbf16>, vector<128x128xbf16>, vector<32x128xf32> -> vector<32x128xf32>
    %21 = arith.addf %16, %20 : vector<32x128xf32>
    %22 = vector.extract_strided_slice %2 {offsets = [4, 0], sizes = [32, 128], strides = [1, 1]} : vector<36x128xbf16> to vector<32x128xbf16>
    %c4 = arith.constant 4 : index
    %c0_14 = arith.constant 0 : index
    %c0_15 = arith.constant 0 : index
    %23 = vector.load %arg3[%c4, %c0_14, %c0_15] : memref<5x128x128xbf16, #tpu.memory_space<vmem>>, vector<1x128x128xbf16>
    %24 = vector.shape_cast %23 : vector<1x128x128xbf16> to vector<128x128xbf16>
    %cst_16 = arith.constant dense<0.000000e+00> : vector<32x128xf32>
    %25 = tpu.matmul %22, %24, %cst_16 {dimension_numbers = #tpu.dot_dimension_numbers<[1], [0], [0], [1], [0, 0, 1, 1], [], []>} : vector<32x128xbf16>, vector<128x128xbf16>, vector<32x128xf32> -> vector<32x128xf32>
    %26 = arith.addf %21, %25 : vector<32x128xf32>
    %c0_17 = arith.constant 0 : index
    %c0_18 = arith.constant 0 : index
    %27 = vector.load %arg4[%c0_17, %c0_18] : memref<1x128xf32, #tpu.memory_space<vmem>>, vector<1x128xf32>
    %28 = vector.broadcast %27 : vector<1x128xf32> to vector<32x128xf32>
    %29 = arith.addf %26, %28 : vector<32x128xf32>
    %cst_19 = arith.constant 0.000000e+00 : f32
    %30 = vector.broadcast %cst_19 : f32 to vector<32x128xf32>
    %31 = arith.maximumf %29, %30 : vector<32x128xf32>
    %32 = arith.truncf %31 : vector<32x128xf32> to vector<32x128xbf16>
    %c0_20 = arith.constant 0 : index
    %c0_21 = arith.constant 0 : index
    %c0_22 = arith.constant 0 : index
    %33 = vector.load %arg5[%c0_20, %c0_21, %c0_22] : memref<1x32x128xbf16, #tpu.memory_space<vmem>>, vector<1x32x128xbf16>
    %34 = vector.shape_cast %33 : vector<1x32x128xbf16> to vector<32x128xbf16>
    %35 = vector.shape_cast %32 : vector<32x128xbf16> to vector<1x32x128xbf16>
    tpu.vector_store %arg5[%c0_20, %c0_21, %c0_22], %35 {strides = array<i32>} : memref<1x32x128xbf16, #tpu.memory_space<vmem>>, vector<1x32x128xbf16>,
    return
  }
  func.func @transform_0(%arg0: i32, %arg1: i32) -> (i32, i32, i32) {
    %c0_i32 = arith.constant 0 : i32
    %c0_i32_0 = arith.constant 0 : i32
    %c0_i32_1 = arith.constant 0 : i32
    return %arg0, %c0_i32, %c0_i32_0 : i32, i32, i32
  }
  func.func @transform_1(%arg0: i32, %arg1: i32) -> (i32, i32, i32) {
    %c0_i32 = arith.constant 0 : i32
    %c0_i32_0 = arith.constant 0 : i32
    %c0_i32_1 = arith.constant 0 : i32
    return %c0_i32, %c0_i32_0, %arg1 : i32, i32, i32
  }
  func.func @transform_2(%arg0: i32, %arg1: i32) -> (i32, i32) {
    %c0_i32 = arith.constant 0 : i32
    %c0_i32_0 = arith.constant 0 : i32
    return %c0_i32, %arg1 : i32, i32
  }
  func.func @transform_3(%arg0: i32, %arg1: i32) -> (i32, i32, i32) {
    %c0_i32 = arith.constant 0 : i32
    %c0_i32_0 = arith.constant 0 : i32
    return %arg0, %c0_i32, %arg1 : i32, i32, i32
  }
}

module attributes {stable_mosaic.version = 11 : i64} {
  func.func @_tdnn_kernel(%arg0: i32, %arg1: i32, %arg2: memref<1x10x256xbf16, #tpu.memory_space<vmem>>, %arg3: memref<3x256x128xbf16, #tpu.memory_space<vmem>>, %arg4: memref<1x128xf32, #tpu.memory_space<vmem>>, %arg5: memref<1x8x128xbf16, #tpu.memory_space<vmem>>) attributes {dimension_semantics = [#tpu.dimension_semantics<parallel>, #tpu.dimension_semantics<parallel>], iteration_bounds = array<i64: 2, 1>, scalar_prefetch = 0 : i64, scratch_operands = 0 : i64, tpu.core_type = #tpu.core_type<tc>, window_params = [{transform_indices = @transform_0, window_bounds = array<i64: 1, 10, 256>}, {transform_indices = @transform_1, window_bounds = array<i64: 3, 256, 128>}, {transform_indices = @transform_2, window_bounds = array<i64: 1, 128>}, {transform_indices = @transform_3, window_bounds = array<i64: 1, 8, 128>}]} {
    %c0 = arith.constant 0 : index
    %c0_0 = arith.constant 0 : index
    %c0_1 = arith.constant 0 : index
    %0 = vector.load %arg2[%c0, %c0_0, %c0_1] : memref<1x10x256xbf16, #tpu.memory_space<vmem>>, vector<1x10x256xbf16>
    %1 = vector.shape_cast %0 : vector<1x10x256xbf16> to vector<10x256xbf16>
    %2 = vector.extract_strided_slice %1 {offsets = [0, 0], sizes = [8, 256], strides = [1, 1]} : vector<10x256xbf16> to vector<8x256xbf16>
    %c0_2 = arith.constant 0 : index
    %c0_3 = arith.constant 0 : index
    %c0_4 = arith.constant 0 : index
    %3 = vector.load %arg3[%c0_2, %c0_3, %c0_4] : memref<3x256x128xbf16, #tpu.memory_space<vmem>>, vector<1x256x128xbf16>
    %4 = vector.shape_cast %3 : vector<1x256x128xbf16> to vector<256x128xbf16>
    %cst = arith.constant dense<0.000000e+00> : vector<8x128xf32>
    %5 = tpu.matmul %2, %4, %cst {dimension_numbers = #tpu.dot_dimension_numbers<[1], [0], [0], [1], [0, 0, 1, 1], [], []>} : vector<8x256xbf16>, vector<256x128xbf16>, vector<8x128xf32> -> vector<8x128xf32>
    %6 = vector.extract_strided_slice %1 {offsets = [1, 0], sizes = [8, 256], strides = [1, 1]} : vector<10x256xbf16> to vector<8x256xbf16>
    %c1 = arith.constant 1 : index
    %c0_5 = arith.constant 0 : index
    %c0_6 = arith.constant 0 : index
    %7 = vector.load %arg3[%c1, %c0_5, %c0_6] : memref<3x256x128xbf16, #tpu.memory_space<vmem>>, vector<1x256x128xbf16>
    %8 = vector.shape_cast %7 : vector<1x256x128xbf16> to vector<256x128xbf16>
    %cst_7 = arith.constant dense<0.000000e+00> : vector<8x128xf32>
    %9 = tpu.matmul %6, %8, %cst_7 {dimension_numbers = #tpu.dot_dimension_numbers<[1], [0], [0], [1], [0, 0, 1, 1], [], []>} : vector<8x256xbf16>, vector<256x128xbf16>, vector<8x128xf32> -> vector<8x128xf32>
    %10 = arith.addf %5, %9 : vector<8x128xf32>
    %11 = vector.extract_strided_slice %1 {offsets = [2, 0], sizes = [8, 256], strides = [1, 1]} : vector<10x256xbf16> to vector<8x256xbf16>
    %c2 = arith.constant 2 : index
    %c0_8 = arith.constant 0 : index
    %c0_9 = arith.constant 0 : index
    %12 = vector.load %arg3[%c2, %c0_8, %c0_9] : memref<3x256x128xbf16, #tpu.memory_space<vmem>>, vector<1x256x128xbf16>
    %13 = vector.shape_cast %12 : vector<1x256x128xbf16> to vector<256x128xbf16>
    %cst_10 = arith.constant dense<0.000000e+00> : vector<8x128xf32>
    %14 = tpu.matmul %11, %13, %cst_10 {dimension_numbers = #tpu.dot_dimension_numbers<[1], [0], [0], [1], [0, 0, 1, 1], [], []>} : vector<8x256xbf16>, vector<256x128xbf16>, vector<8x128xf32> -> vector<8x128xf32>
    %15 = arith.addf %10, %14 : vector<8x128xf32>
    %c0_11 = arith.constant 0 : index
    %c0_12 = arith.constant 0 : index
    %16 = vector.load %arg4[%c0_11, %c0_12] : memref<1x128xf32, #tpu.memory_space<vmem>>, vector<1x128xf32>
    %17 = vector.broadcast %16 : vector<1x128xf32> to vector<8x128xf32>
    %18 = arith.addf %15, %17 : vector<8x128xf32>
    %cst_13 = arith.constant 0.000000e+00 : f32
    %19 = vector.broadcast %cst_13 : f32 to vector<8x128xf32>
    %20 = arith.maximumf %18, %19 : vector<8x128xf32>
    %21 = arith.truncf %20 : vector<8x128xf32> to vector<8x128xbf16>
    %c0_14 = arith.constant 0 : index
    %c0_15 = arith.constant 0 : index
    %c0_16 = arith.constant 0 : index
    %22 = vector.load %arg5[%c0_14, %c0_15, %c0_16] : memref<1x8x128xbf16, #tpu.memory_space<vmem>>, vector<1x8x128xbf16>
    %23 = vector.shape_cast %22 : vector<1x8x128xbf16> to vector<8x128xbf16>
    %24 = vector.shape_cast %21 : vector<8x128xbf16> to vector<1x8x128xbf16>
    tpu.vector_store %arg5[%c0_14, %c0_15, %c0_16], %24 {strides = array<i32>} : memref<1x8x128xbf16, #tpu.memory_space<vmem>>, vector<1x8x128xbf16>,
    return
  }
  func.func @transform_0(%arg0: i32, %arg1: i32) -> (i32, i32, i32) {
    %c0_i32 = arith.constant 0 : i32
    %c0_i32_0 = arith.constant 0 : i32
    %c0_i32_1 = arith.constant 0 : i32
    return %arg0, %c0_i32, %c0_i32_0 : i32, i32, i32
  }
  func.func @transform_1(%arg0: i32, %arg1: i32) -> (i32, i32, i32) {
    %c0_i32 = arith.constant 0 : i32
    %c0_i32_0 = arith.constant 0 : i32
    %c0_i32_1 = arith.constant 0 : i32
    return %c0_i32, %c0_i32_0, %arg1 : i32, i32, i32
  }
  func.func @transform_2(%arg0: i32, %arg1: i32) -> (i32, i32) {
    %c0_i32 = arith.constant 0 : i32
    %c0_i32_0 = arith.constant 0 : i32
    return %c0_i32, %arg1 : i32, i32
  }
  func.func @transform_3(%arg0: i32, %arg1: i32) -> (i32, i32, i32) {
    %c0_i32 = arith.constant 0 : i32
    %c0_i32_0 = arith.constant 0 : i32
    return %arg0, %c0_i32, %arg1 : i32, i32, i32
  }
}

module attributes {stable_mosaic.version = 11 : i64} {
  func.func @_tdnn_kernel(%arg0: i32, %arg1: i32, %arg2: memref<1x18x256xbf16, #tpu.memory_space<vmem>>, %arg3: memref<3x256x128xbf16, #tpu.memory_space<vmem>>, %arg4: memref<1x128xf32, #tpu.memory_space<vmem>>, %arg5: memref<1x16x128xbf16, #tpu.memory_space<vmem>>) attributes {dimension_semantics = [#tpu.dimension_semantics<parallel>, #tpu.dimension_semantics<parallel>], iteration_bounds = array<i64: 2, 1>, scalar_prefetch = 0 : i64, scratch_operands = 0 : i64, tpu.core_type = #tpu.core_type<tc>, window_params = [{transform_indices = @transform_0, window_bounds = array<i64: 1, 18, 256>}, {transform_indices = @transform_1, window_bounds = array<i64: 3, 256, 128>}, {transform_indices = @transform_2, window_bounds = array<i64: 1, 128>}, {transform_indices = @transform_3, window_bounds = array<i64: 1, 16, 128>}]} {
    %c0 = arith.constant 0 : index
    %c0_0 = arith.constant 0 : index
    %c0_1 = arith.constant 0 : index
    %0 = vector.load %arg2[%c0, %c0_0, %c0_1] : memref<1x18x256xbf16, #tpu.memory_space<vmem>>, vector<1x18x256xbf16>
    %1 = vector.shape_cast %0 : vector<1x18x256xbf16> to vector<18x256xbf16>
    %2 = vector.extract_strided_slice %1 {offsets = [0, 0], sizes = [16, 256], strides = [1, 1]} : vector<18x256xbf16> to vector<16x256xbf16>
    %c0_2 = arith.constant 0 : index
    %c0_3 = arith.constant 0 : index
    %c0_4 = arith.constant 0 : index
    %3 = vector.load %arg3[%c0_2, %c0_3, %c0_4] : memref<3x256x128xbf16, #tpu.memory_space<vmem>>, vector<1x256x128xbf16>
    %4 = vector.shape_cast %3 : vector<1x256x128xbf16> to vector<256x128xbf16>
    %cst = arith.constant dense<0.000000e+00> : vector<16x128xf32>
    %5 = tpu.matmul %2, %4, %cst {dimension_numbers = #tpu.dot_dimension_numbers<[1], [0], [0], [1], [0, 0, 1, 1], [], []>} : vector<16x256xbf16>, vector<256x128xbf16>, vector<16x128xf32> -> vector<16x128xf32>
    %6 = vector.extract_strided_slice %1 {offsets = [1, 0], sizes = [16, 256], strides = [1, 1]} : vector<18x256xbf16> to vector<16x256xbf16>
    %c1 = arith.constant 1 : index
    %c0_5 = arith.constant 0 : index
    %c0_6 = arith.constant 0 : index
    %7 = vector.load %arg3[%c1, %c0_5, %c0_6] : memref<3x256x128xbf16, #tpu.memory_space<vmem>>, vector<1x256x128xbf16>
    %8 = vector.shape_cast %7 : vector<1x256x128xbf16> to vector<256x128xbf16>
    %cst_7 = arith.constant dense<0.000000e+00> : vector<16x128xf32>
    %9 = tpu.matmul %6, %8, %cst_7 {dimension_numbers = #tpu.dot_dimension_numbers<[1], [0], [0], [1], [0, 0, 1, 1], [], []>} : vector<16x256xbf16>, vector<256x128xbf16>, vector<16x128xf32> -> vector<16x128xf32>
    %10 = arith.addf %5, %9 : vector<16x128xf32>
    %11 = vector.extract_strided_slice %1 {offsets = [2, 0], sizes = [16, 256], strides = [1, 1]} : vector<18x256xbf16> to vector<16x256xbf16>
    %c2 = arith.constant 2 : index
    %c0_8 = arith.constant 0 : index
    %c0_9 = arith.constant 0 : index
    %12 = vector.load %arg3[%c2, %c0_8, %c0_9] : memref<3x256x128xbf16, #tpu.memory_space<vmem>>, vector<1x256x128xbf16>
    %13 = vector.shape_cast %12 : vector<1x256x128xbf16> to vector<256x128xbf16>
    %cst_10 = arith.constant dense<0.000000e+00> : vector<16x128xf32>
    %14 = tpu.matmul %11, %13, %cst_10 {dimension_numbers = #tpu.dot_dimension_numbers<[1], [0], [0], [1], [0, 0, 1, 1], [], []>} : vector<16x256xbf16>, vector<256x128xbf16>, vector<16x128xf32> -> vector<16x128xf32>
    %15 = arith.addf %10, %14 : vector<16x128xf32>
    %c0_11 = arith.constant 0 : index
    %c0_12 = arith.constant 0 : index
    %16 = vector.load %arg4[%c0_11, %c0_12] : memref<1x128xf32, #tpu.memory_space<vmem>>, vector<1x128xf32>
    %17 = vector.broadcast %16 : vector<1x128xf32> to vector<16x128xf32>
    %18 = arith.addf %15, %17 : vector<16x128xf32>
    %cst_13 = arith.constant 0.000000e+00 : f32
    %19 = vector.broadcast %cst_13 : f32 to vector<16x128xf32>
    %20 = arith.maximumf %18, %19 : vector<16x128xf32>
    %21 = arith.truncf %20 : vector<16x128xf32> to vector<16x128xbf16>
    %c0_14 = arith.constant 0 : index
    %c0_15 = arith.constant 0 : index
    %c0_16 = arith.constant 0 : index
    %22 = vector.load %arg5[%c0_14, %c0_15, %c0_16] : memref<1x16x128xbf16, #tpu.memory_space<vmem>>, vector<1x16x128xbf16>
    %23 = vector.shape_cast %22 : vector<1x16x128xbf16> to vector<16x128xbf16>
    %24 = vector.shape_cast %21 : vector<16x128xbf16> to vector<1x16x128xbf16>
    tpu.vector_store %arg5[%c0_14, %c0_15, %c0_16], %24 {strides = array<i32>} : memref<1x16x128xbf16, #tpu.memory_space<vmem>>, vector<1x16x128xbf16>,
    return
  }
  func.func @transform_0(%arg0: i32, %arg1: i32) -> (i32, i32, i32) {
    %c0_i32 = arith.constant 0 : i32
    %c0_i32_0 = arith.constant 0 : i32
    %c0_i32_1 = arith.constant 0 : i32
    return %arg0, %c0_i32, %c0_i32_0 : i32, i32, i32
  }
  func.func @transform_1(%arg0: i32, %arg1: i32) -> (i32, i32, i32) {
    %c0_i32 = arith.constant 0 : i32
    %c0_i32_0 = arith.constant 0 : i32
    %c0_i32_1 = arith.constant 0 : i32
    return %c0_i32, %c0_i32_0, %arg1 : i32, i32, i32
  }
  func.func @transform_2(%arg0: i32, %arg1: i32) -> (i32, i32) {
    %c0_i32 = arith.constant 0 : i32
    %c0_i32_0 = arith.constant 0 : i32
    return %c0_i32, %arg1 : i32, i32
  }
  func.func @transform_3(%arg0: i32, %arg1: i32) -> (i32, i32, i32) {
    %c0_i32 = arith.constant 0 : i32
    %c0_i32_0 = arith.constant 0 : i32
    return %arg0, %c0_i32, %arg1 : i32, i32, i32
  }
}

module attributes {stable_mosaic.version = 11 : i64} {
  func.func @_matmul_bias_kernel(%arg0: i32, %arg1: i32, %arg2: i32, %arg3: memref<64x128xbf16, #tpu.memory_space<vmem>>, %arg4: memref<128x512xbf16, #tpu.memory_space<vmem>>, %arg5: memref<1x512xf32, #tpu.memory_space<vmem>>, %arg6: memref<64x512xf32, #tpu.memory_space<vmem>>, %arg7: memref<64x512xf32, #tpu.memory_space<vmem>>) attributes {dimension_semantics = [#tpu.dimension_semantics<parallel>, #tpu.dimension_semantics<parallel>, #tpu.dimension_semantics<arbitrary>], iteration_bounds = array<i64: 1, 2, 1>, scalar_prefetch = 0 : i64, scratch_operands = 1 : i64, tpu.core_type = #tpu.core_type<tc>, window_params = [{transform_indices = @transform_0, window_bounds = array<i64: 64, 128>}, {transform_indices = @transform_1, window_bounds = array<i64: 128, 512>}, {transform_indices = @transform_2, window_bounds = array<i64: 1, 512>}, {transform_indices = @transform_3, window_bounds = array<i64: 64, 512>}]} {
    %c0_i32 = arith.constant 0 : i32
    %0 = arith.cmpi eq, %arg2, %c0_i32 : i32
    %1 = arith.extui %0 : i1 to i32
    %c0_i32_0 = arith.constant 0 : i32
    %2 = arith.cmpi ne, %1, %c0_i32_0 : i32
    scf.if %2 {
      %cst_10 = arith.constant 0.000000e+00 : f32
      %12 = vector.broadcast %cst_10 : f32 to vector<64x512xf32>
      %c0_11 = arith.constant 0 : index
      %c0_12 = arith.constant 0 : index
      %13 = vector.load %arg7[%c0_11, %c0_12] : memref<64x512xf32, #tpu.memory_space<vmem>>, vector<64x512xf32>
      tpu.vector_store %arg7[%c0_11, %c0_12], %12 {strides = array<i32>} : memref<64x512xf32, #tpu.memory_space<vmem>>, vector<64x512xf32>,
    } else {
    }
    %c0 = arith.constant 0 : index
    %c0_1 = arith.constant 0 : index
    %3 = vector.load %arg7[%c0, %c0_1] : memref<64x512xf32, #tpu.memory_space<vmem>>, vector<64x512xf32>
    %c0_2 = arith.constant 0 : index
    %c0_3 = arith.constant 0 : index
    %4 = vector.load %arg3[%c0_2, %c0_3] : memref<64x128xbf16, #tpu.memory_space<vmem>>, vector<64x128xbf16>
    %c0_4 = arith.constant 0 : index
    %c0_5 = arith.constant 0 : index
    %5 = vector.load %arg4[%c0_4, %c0_5] : memref<128x512xbf16, #tpu.memory_space<vmem>>, vector<128x512xbf16>
    %cst = arith.constant dense<0.000000e+00> : vector<64x512xf32>
    %6 = tpu.matmul %4, %5, %cst {dimension_numbers = #tpu.dot_dimension_numbers<[1], [0], [0], [1], [0, 0, 1, 1], [], []>} : vector<64x128xbf16>, vector<128x512xbf16>, vector<64x512xf32> -> vector<64x512xf32>
    %7 = arith.addf %3, %6 : vector<64x512xf32>
    %c0_6 = arith.constant 0 : index
    %c0_7 = arith.constant 0 : index
    %8 = vector.load %arg7[%c0_6, %c0_7] : memref<64x512xf32, #tpu.memory_space<vmem>>, vector<64x512xf32>
    tpu.vector_store %arg7[%c0_6, %c0_7], %7 {strides = array<i32>} : memref<64x512xf32, #tpu.memory_space<vmem>>, vector<64x512xf32>,
    %c0_i32_8 = arith.constant 0 : i32
    %9 = arith.cmpi eq, %arg2, %c0_i32_8 : i32
    %10 = arith.extui %9 : i1 to i32
    %c0_i32_9 = arith.constant 0 : i32
    %11 = arith.cmpi ne, %10, %c0_i32_9 : i32
    scf.if %11 {
      %c0_10 = arith.constant 0 : index
      %c0_11 = arith.constant 0 : index
      %12 = vector.load %arg7[%c0_10, %c0_11] : memref<64x512xf32, #tpu.memory_space<vmem>>, vector<64x512xf32>
      %c0_12 = arith.constant 0 : index
      %c0_13 = arith.constant 0 : index
      %13 = vector.load %arg5[%c0_12, %c0_13] : memref<1x512xf32, #tpu.memory_space<vmem>>, vector<1x512xf32>
      %14 = vector.broadcast %13 : vector<1x512xf32> to vector<64x512xf32>
      %15 = arith.addf %12, %14 : vector<64x512xf32>
      %c0_14 = arith.constant 0 : index
      %c0_15 = arith.constant 0 : index
      %16 = vector.load %arg6[%c0_14, %c0_15] : memref<64x512xf32, #tpu.memory_space<vmem>>, vector<64x512xf32>
      tpu.vector_store %arg6[%c0_14, %c0_15], %15 {strides = array<i32>} : memref<64x512xf32, #tpu.memory_space<vmem>>, vector<64x512xf32>,
    } else {
    }
    return
  }
  func.func @transform_0(%arg0: i32, %arg1: i32, %arg2: i32) -> (i32, i32) {
    %c0_i32 = arith.constant 0 : i32
    return %arg0, %arg2 : i32, i32
  }
  func.func @transform_1(%arg0: i32, %arg1: i32, %arg2: i32) -> (i32, i32) {
    %c0_i32 = arith.constant 0 : i32
    return %arg2, %arg1 : i32, i32
  }
  func.func @transform_2(%arg0: i32, %arg1: i32, %arg2: i32) -> (i32, i32) {
    %c0_i32 = arith.constant 0 : i32
    %c0_i32_0 = arith.constant 0 : i32
    return %c0_i32, %arg1 : i32, i32
  }
  func.func @transform_3(%arg0: i32, %arg1: i32, %arg2: i32) -> (i32, i32) {
    %c0_i32 = arith.constant 0 : i32
    return %arg0, %arg1 : i32, i32
  }
}

module attributes {stable_mosaic.version = 11 : i64} {
  func.func @_bilstm_kernel(%arg0: i32, %arg1: memref<8x8x512xf32, #tpu.memory_space<vmem>>, %arg2: memref<1x128x512xf32, #tpu.memory_space<vmem>>, %arg3: memref<8x8x128xf32, #tpu.memory_space<vmem>>, %arg4: memref<8x128xf32, #tpu.memory_space<vmem>>, %arg5: memref<8x128xf32, #tpu.memory_space<vmem>>) attributes {dimension_semantics = [#tpu.dimension_semantics<parallel>], iteration_bounds = array<i64: 2>, scalar_prefetch = 0 : i64, scratch_operands = 2 : i64, tpu.core_type = #tpu.core_type<tc>, window_params = [{transform_indices = @transform_0, window_bounds = array<i64: 8, 8, 512>}, {transform_indices = @transform_1, window_bounds = array<i64: 1, 128, 512>}, {transform_indices = @transform_2, window_bounds = array<i64: 8, 8, 128>}]} {
    %cst = arith.constant 0.000000e+00 : f32
    %0 = vector.broadcast %cst : f32 to vector<8x128xf32>
    %c0 = arith.constant 0 : index
    %c0_0 = arith.constant 0 : index
    %1 = vector.load %arg4[%c0, %c0_0] : memref<8x128xf32, #tpu.memory_space<vmem>>, vector<8x128xf32>
    tpu.vector_store %arg4[%c0, %c0_0], %0 {strides = array<i32>} : memref<8x128xf32, #tpu.memory_space<vmem>>, vector<8x128xf32>,
    %cst_1 = arith.constant 0.000000e+00 : f32
    %2 = vector.broadcast %cst_1 : f32 to vector<8x128xf32>
    %c0_2 = arith.constant 0 : index
    %c0_3 = arith.constant 0 : index
    %3 = vector.load %arg5[%c0_2, %c0_3] : memref<8x128xf32, #tpu.memory_space<vmem>>, vector<8x128xf32>
    tpu.vector_store %arg5[%c0_2, %c0_3], %2 {strides = array<i32>} : memref<8x128xf32, #tpu.memory_space<vmem>>, vector<8x128xf32>,
    %c0_i32 = arith.constant 0 : i32
    %c8_i32 = arith.constant 8 : i32
    %4 = arith.addi %c0_i32, %c8_i32 : i32
    %c1_i32 = arith.constant 1 : i32
    scf.for %arg6 = %c0_i32 to %4 step %c1_i32  : i32 {
      %c0_i32_5 = arith.constant 0 : i32
      %5 = arith.cmpi eq, %arg0, %c0_i32_5 : i32
      %c7_i32 = arith.constant 7 : i32
      %6 = arith.subi %c7_i32, %arg6 : i32
      %7 = arith.select %5, %arg6, %6 : i32
      %c0_6 = arith.constant 0 : index
      %8 = arith.index_cast %7 : i32 to index
      %c0_7 = arith.constant 0 : index
      %9 = vector.load %arg1[%c0_6, %8, %c0_7] : memref<8x8x512xf32, #tpu.memory_space<vmem>>, vector<8x1x512xf32>
      %10 = vector.shape_cast %9 : vector<8x1x512xf32> to vector<8x512xf32>
      %c0_8 = arith.constant 0 : index
      %c0_9 = arith.constant 0 : index
      %11 = vector.load %arg4[%c0_8, %c0_9] : memref<8x128xf32, #tpu.memory_space<vmem>>, vector<8x128xf32>
      %c0_10 = arith.constant 0 : index
      %c0_11 = arith.constant 0 : index
      %c0_12 = arith.constant 0 : index
      %12 = vector.load %arg2[%c0_10, %c0_11, %c0_12] : memref<1x128x512xf32, #tpu.memory_space<vmem>>, vector<1x128x512xf32>
      %13 = vector.shape_cast %12 : vector<1x128x512xf32> to vector<128x512xf32>
      %cst_13 = arith.constant dense<0.000000e+00> : vector<8x512xf32>
      %14 = tpu.matmul %11, %13, %cst_13 {dimension_numbers = #tpu.dot_dimension_numbers<[1], [0], [0], [1], [0, 0, 1, 1], [], []>} : vector<8x128xf32>, vector<128x512xf32>, vector<8x512xf32> -> vector<8x512xf32>
      %15 = arith.addf %10, %14 : vector<8x512xf32>
      %16 = vector.extract_strided_slice %15 {offsets = [0, 0], sizes = [8, 128], strides = [1, 1]} : vector<8x512xf32> to vector<8x128xf32>
      %17 = arith.negf %16 : vector<8x128xf32>
      %18 = math.exp %17 : vector<8x128xf32>
      %cst_14 = arith.constant 1.000000e+00 : f32
      %19 = vector.broadcast %cst_14 : f32 to vector<8x128xf32>
      %20 = arith.addf %19, %18 : vector<8x128xf32>
      %21 = arith.divf %19, %20 : vector<8x128xf32>
      %22 = vector.extract_strided_slice %15 {offsets = [0, 128], sizes = [8, 128], strides = [1, 1]} : vector<8x512xf32> to vector<8x128xf32>
      %23 = arith.negf %22 : vector<8x128xf32>
      %24 = math.exp %23 : vector<8x128xf32>
      %cst_15 = arith.constant 1.000000e+00 : f32
      %25 = vector.broadcast %cst_15 : f32 to vector<8x128xf32>
      %26 = arith.addf %25, %24 : vector<8x128xf32>
      %27 = arith.divf %25, %26 : vector<8x128xf32>
      %28 = vector.extract_strided_slice %15 {offsets = [0, 256], sizes = [8, 128], strides = [1, 1]} : vector<8x512xf32> to vector<8x128xf32>
      %29 = math.tanh %28 : vector<8x128xf32>
      %30 = vector.extract_strided_slice %15 {offsets = [0, 384], sizes = [8, 128], strides = [1, 1]} : vector<8x512xf32> to vector<8x128xf32>
      %31 = arith.negf %30 : vector<8x128xf32>
      %32 = math.exp %31 : vector<8x128xf32>
      %cst_16 = arith.constant 1.000000e+00 : f32
      %33 = vector.broadcast %cst_16 : f32 to vector<8x128xf32>
      %34 = arith.addf %33, %32 : vector<8x128xf32>
      %35 = arith.divf %33, %34 : vector<8x128xf32>
      %c0_17 = arith.constant 0 : index
      %c0_18 = arith.constant 0 : index
      %36 = vector.load %arg5[%c0_17, %c0_18] : memref<8x128xf32, #tpu.memory_space<vmem>>, vector<8x128xf32>
      %37 = arith.mulf %27, %36 : vector<8x128xf32>
      %38 = arith.mulf %21, %29 : vector<8x128xf32>
      %39 = arith.addf %37, %38 : vector<8x128xf32>
      %40 = math.tanh %39 : vector<8x128xf32>
      %41 = arith.mulf %35, %40 : vector<8x128xf32>
      %c0_19 = arith.constant 0 : index
      %c0_20 = arith.constant 0 : index
      %42 = vector.load %arg5[%c0_19, %c0_20] : memref<8x128xf32, #tpu.memory_space<vmem>>, vector<8x128xf32>
      tpu.vector_store %arg5[%c0_19, %c0_20], %39 {strides = array<i32>} : memref<8x128xf32, #tpu.memory_space<vmem>>, vector<8x128xf32>,
      %c0_21 = arith.constant 0 : index
      %c0_22 = arith.constant 0 : index
      %43 = vector.load %arg4[%c0_21, %c0_22] : memref<8x128xf32, #tpu.memory_space<vmem>>, vector<8x128xf32>
      tpu.vector_store %arg4[%c0_21, %c0_22], %41 {strides = array<i32>} : memref<8x128xf32, #tpu.memory_space<vmem>>, vector<8x128xf32>,
      %c0_23 = arith.constant 0 : index
      %44 = arith.index_cast %7 : i32 to index
      %c0_24 = arith.constant 0 : index
      %45 = vector.load %arg3[%c0_23, %44, %c0_24] : memref<8x8x128xf32, #tpu.memory_space<vmem>>, vector<8x1x128xf32>
      %46 = vector.shape_cast %45 : vector<8x1x128xf32> to vector<8x128xf32>
      %47 = vector.shape_cast %41 : vector<8x128xf32> to vector<8x1x128xf32>
      tpu.vector_store %arg3[%c0_23, %44, %c0_24], %47 {strides = array<i32>} : memref<8x8x128xf32, #tpu.memory_space<vmem>>, vector<8x1x128xf32>,
    }
    %c8_i32_4 = arith.constant 8 : i32
    return
  }
  func.func @transform_0(%arg0: i32) -> (i32, i32, i32) {
    %c0_i32 = arith.constant 0 : i32
    %c0_i32_0 = arith.constant 0 : i32
    %c0_i32_1 = arith.constant 0 : i32
    return %c0_i32, %c0_i32_0, %arg0 : i32, i32, i32
  }
  func.func @transform_1(%arg0: i32) -> (i32, i32, i32) {
    %c0_i32 = arith.constant 0 : i32
    %c0_i32_0 = arith.constant 0 : i32
    %c0_i32_1 = arith.constant 0 : i32
    return %arg0, %c0_i32, %c0_i32_0 : i32, i32, i32
  }
  func.func @transform_2(%arg0: i32) -> (i32, i32, i32) {
    %c0_i32 = arith.constant 0 : i32
    %c0_i32_0 = arith.constant 0 : i32
    %c0_i32_1 = arith.constant 0 : i32
    return %c0_i32, %c0_i32_0, %arg0 : i32, i32, i32
  }
}

module attributes {stable_mosaic.version = 11 : i64} {
  func.func @_matmul_bias_kernel(%arg0: i32, %arg1: i32, %arg2: i32, %arg3: memref<32x128xbf16, #tpu.memory_space<vmem>>, %arg4: memref<128x512xbf16, #tpu.memory_space<vmem>>, %arg5: memref<1x512xf32, #tpu.memory_space<vmem>>, %arg6: memref<32x512xf32, #tpu.memory_space<vmem>>, %arg7: memref<32x512xf32, #tpu.memory_space<vmem>>) attributes {dimension_semantics = [#tpu.dimension_semantics<parallel>, #tpu.dimension_semantics<parallel>, #tpu.dimension_semantics<arbitrary>], iteration_bounds = array<i64: 1, 2, 1>, scalar_prefetch = 0 : i64, scratch_operands = 1 : i64, tpu.core_type = #tpu.core_type<tc>, window_params = [{transform_indices = @transform_0, window_bounds = array<i64: 32, 128>}, {transform_indices = @transform_1, window_bounds = array<i64: 128, 512>}, {transform_indices = @transform_2, window_bounds = array<i64: 1, 512>}, {transform_indices = @transform_3, window_bounds = array<i64: 32, 512>}]} {
    %c0_i32 = arith.constant 0 : i32
    %0 = arith.cmpi eq, %arg2, %c0_i32 : i32
    %1 = arith.extui %0 : i1 to i32
    %c0_i32_0 = arith.constant 0 : i32
    %2 = arith.cmpi ne, %1, %c0_i32_0 : i32
    scf.if %2 {
      %cst_10 = arith.constant 0.000000e+00 : f32
      %12 = vector.broadcast %cst_10 : f32 to vector<32x512xf32>
      %c0_11 = arith.constant 0 : index
      %c0_12 = arith.constant 0 : index
      %13 = vector.load %arg7[%c0_11, %c0_12] : memref<32x512xf32, #tpu.memory_space<vmem>>, vector<32x512xf32>
      tpu.vector_store %arg7[%c0_11, %c0_12], %12 {strides = array<i32>} : memref<32x512xf32, #tpu.memory_space<vmem>>, vector<32x512xf32>,
    } else {
    }
    %c0 = arith.constant 0 : index
    %c0_1 = arith.constant 0 : index
    %3 = vector.load %arg7[%c0, %c0_1] : memref<32x512xf32, #tpu.memory_space<vmem>>, vector<32x512xf32>
    %c0_2 = arith.constant 0 : index
    %c0_3 = arith.constant 0 : index
    %4 = vector.load %arg3[%c0_2, %c0_3] : memref<32x128xbf16, #tpu.memory_space<vmem>>, vector<32x128xbf16>
    %c0_4 = arith.constant 0 : index
    %c0_5 = arith.constant 0 : index
    %5 = vector.load %arg4[%c0_4, %c0_5] : memref<128x512xbf16, #tpu.memory_space<vmem>>, vector<128x512xbf16>
    %cst = arith.constant dense<0.000000e+00> : vector<32x512xf32>
    %6 = tpu.matmul %4, %5, %cst {dimension_numbers = #tpu.dot_dimension_numbers<[1], [0], [0], [1], [0, 0, 1, 1], [], []>} : vector<32x128xbf16>, vector<128x512xbf16>, vector<32x512xf32> -> vector<32x512xf32>
    %7 = arith.addf %3, %6 : vector<32x512xf32>
    %c0_6 = arith.constant 0 : index
    %c0_7 = arith.constant 0 : index
    %8 = vector.load %arg7[%c0_6, %c0_7] : memref<32x512xf32, #tpu.memory_space<vmem>>, vector<32x512xf32>
    tpu.vector_store %arg7[%c0_6, %c0_7], %7 {strides = array<i32>} : memref<32x512xf32, #tpu.memory_space<vmem>>, vector<32x512xf32>,
    %c0_i32_8 = arith.constant 0 : i32
    %9 = arith.cmpi eq, %arg2, %c0_i32_8 : i32
    %10 = arith.extui %9 : i1 to i32
    %c0_i32_9 = arith.constant 0 : i32
    %11 = arith.cmpi ne, %10, %c0_i32_9 : i32
    scf.if %11 {
      %c0_10 = arith.constant 0 : index
      %c0_11 = arith.constant 0 : index
      %12 = vector.load %arg7[%c0_10, %c0_11] : memref<32x512xf32, #tpu.memory_space<vmem>>, vector<32x512xf32>
      %c0_12 = arith.constant 0 : index
      %c0_13 = arith.constant 0 : index
      %13 = vector.load %arg5[%c0_12, %c0_13] : memref<1x512xf32, #tpu.memory_space<vmem>>, vector<1x512xf32>
      %14 = vector.broadcast %13 : vector<1x512xf32> to vector<32x512xf32>
      %15 = arith.addf %12, %14 : vector<32x512xf32>
      %c0_14 = arith.constant 0 : index
      %c0_15 = arith.constant 0 : index
      %16 = vector.load %arg6[%c0_14, %c0_15] : memref<32x512xf32, #tpu.memory_space<vmem>>, vector<32x512xf32>
      tpu.vector_store %arg6[%c0_14, %c0_15], %15 {strides = array<i32>} : memref<32x512xf32, #tpu.memory_space<vmem>>, vector<32x512xf32>,
    } else {
    }
    return
  }
  func.func @transform_0(%arg0: i32, %arg1: i32, %arg2: i32) -> (i32, i32) {
    %c0_i32 = arith.constant 0 : i32
    return %arg0, %arg2 : i32, i32
  }
  func.func @transform_1(%arg0: i32, %arg1: i32, %arg2: i32) -> (i32, i32) {
    %c0_i32 = arith.constant 0 : i32
    return %arg2, %arg1 : i32, i32
  }
  func.func @transform_2(%arg0: i32, %arg1: i32, %arg2: i32) -> (i32, i32) {
    %c0_i32 = arith.constant 0 : i32
    %c0_i32_0 = arith.constant 0 : i32
    return %c0_i32, %arg1 : i32, i32
  }
  func.func @transform_3(%arg0: i32, %arg1: i32, %arg2: i32) -> (i32, i32) {
    %c0_i32 = arith.constant 0 : i32
    return %arg0, %arg1 : i32, i32
  }
}

module attributes {stable_mosaic.version = 11 : i64} {
  func.func @_tdnn_kernel(%arg0: i32, %arg1: i32, %arg2: memref<1x6x512xf32, #tpu.memory_space<vmem>>, %arg3: memref<3x512x128xbf16, #tpu.memory_space<vmem>>, %arg4: memref<1x128xf32, #tpu.memory_space<vmem>>, %arg5: memref<1x4x128xbf16, #tpu.memory_space<vmem>>) attributes {dimension_semantics = [#tpu.dimension_semantics<parallel>, #tpu.dimension_semantics<parallel>], iteration_bounds = array<i64: 2, 1>, scalar_prefetch = 0 : i64, scratch_operands = 0 : i64, tpu.core_type = #tpu.core_type<tc>, window_params = [{transform_indices = @transform_0, window_bounds = array<i64: 1, 6, 512>}, {transform_indices = @transform_1, window_bounds = array<i64: 3, 512, 128>}, {transform_indices = @transform_2, window_bounds = array<i64: 1, 128>}, {transform_indices = @transform_3, window_bounds = array<i64: 1, 4, 128>}]} {
    %c0 = arith.constant 0 : index
    %c0_0 = arith.constant 0 : index
    %c0_1 = arith.constant 0 : index
    %0 = vector.load %arg2[%c0, %c0_0, %c0_1] : memref<1x6x512xf32, #tpu.memory_space<vmem>>, vector<1x6x512xf32>
    %1 = vector.shape_cast %0 : vector<1x6x512xf32> to vector<6x512xf32>
    %2 = arith.truncf %1 : vector<6x512xf32> to vector<6x512xbf16>
    %3 = vector.extract_strided_slice %2 {offsets = [0, 0], sizes = [4, 512], strides = [1, 1]} : vector<6x512xbf16> to vector<4x512xbf16>
    %c0_2 = arith.constant 0 : index
    %c0_3 = arith.constant 0 : index
    %c0_4 = arith.constant 0 : index
    %4 = vector.load %arg3[%c0_2, %c0_3, %c0_4] : memref<3x512x128xbf16, #tpu.memory_space<vmem>>, vector<1x512x128xbf16>
    %5 = vector.shape_cast %4 : vector<1x512x128xbf16> to vector<512x128xbf16>
    %cst = arith.constant dense<0.000000e+00> : vector<4x128xf32>
    %6 = tpu.matmul %3, %5, %cst {dimension_numbers = #tpu.dot_dimension_numbers<[1], [0], [0], [1], [0, 0, 1, 1], [], []>} : vector<4x512xbf16>, vector<512x128xbf16>, vector<4x128xf32> -> vector<4x128xf32>
    %7 = vector.extract_strided_slice %2 {offsets = [1, 0], sizes = [4, 512], strides = [1, 1]} : vector<6x512xbf16> to vector<4x512xbf16>
    %c1 = arith.constant 1 : index
    %c0_5 = arith.constant 0 : index
    %c0_6 = arith.constant 0 : index
    %8 = vector.load %arg3[%c1, %c0_5, %c0_6] : memref<3x512x128xbf16, #tpu.memory_space<vmem>>, vector<1x512x128xbf16>
    %9 = vector.shape_cast %8 : vector<1x512x128xbf16> to vector<512x128xbf16>
    %cst_7 = arith.constant dense<0.000000e+00> : vector<4x128xf32>
    %10 = tpu.matmul %7, %9, %cst_7 {dimension_numbers = #tpu.dot_dimension_numbers<[1], [0], [0], [1], [0, 0, 1, 1], [], []>} : vector<4x512xbf16>, vector<512x128xbf16>, vector<4x128xf32> -> vector<4x128xf32>
    %11 = arith.addf %6, %10 : vector<4x128xf32>
    %12 = vector.extract_strided_slice %2 {offsets = [2, 0], sizes = [4, 512], strides = [1, 1]} : vector<6x512xbf16> to vector<4x512xbf16>
    %c2 = arith.constant 2 : index
    %c0_8 = arith.constant 0 : index
    %c0_9 = arith.constant 0 : index
    %13 = vector.load %arg3[%c2, %c0_8, %c0_9] : memref<3x512x128xbf16, #tpu.memory_space<vmem>>, vector<1x512x128xbf16>
    %14 = vector.shape_cast %13 : vector<1x512x128xbf16> to vector<512x128xbf16>
    %cst_10 = arith.constant dense<0.000000e+00> : vector<4x128xf32>
    %15 = tpu.matmul %12, %14, %cst_10 {dimension_numbers = #tpu.dot_dimension_numbers<[1], [0], [0], [1], [0, 0, 1, 1], [], []>} : vector<4x512xbf16>, vector<512x128xbf16>, vector<4x128xf32> -> vector<4x128xf32>
    %16 = arith.addf %11, %15 : vector<4x128xf32>
    %c0_11 = arith.constant 0 : index
    %c0_12 = arith.constant 0 : index
    %17 = vector.load %arg4[%c0_11, %c0_12] : memref<1x128xf32, #tpu.memory_space<vmem>>, vector<1x128xf32>
    %18 = vector.broadcast %17 : vector<1x128xf32> to vector<4x128xf32>
    %19 = arith.addf %16, %18 : vector<4x128xf32>
    %cst_13 = arith.constant 0.000000e+00 : f32
    %20 = vector.broadcast %cst_13 : f32 to vector<4x128xf32>
    %21 = arith.maximumf %19, %20 : vector<4x128xf32>
    %22 = arith.truncf %21 : vector<4x128xf32> to vector<4x128xbf16>
    %c0_14 = arith.constant 0 : index
    %c0_15 = arith.constant 0 : index
    %c0_16 = arith.constant 0 : index
    %23 = vector.load %arg5[%c0_14, %c0_15, %c0_16] : memref<1x4x128xbf16, #tpu.memory_space<vmem>>, vector<1x4x128xbf16>
    %24 = vector.shape_cast %23 : vector<1x4x128xbf16> to vector<4x128xbf16>
    %25 = vector.shape_cast %22 : vector<4x128xbf16> to vector<1x4x128xbf16>
    tpu.vector_store %arg5[%c0_14, %c0_15, %c0_16], %25 {strides = array<i32>} : memref<1x4x128xbf16, #tpu.memory_space<vmem>>, vector<1x4x128xbf16>,
    return
  }
  func.func @transform_0(%arg0: i32, %arg1: i32) -> (i32, i32, i32) {
    %c0_i32 = arith.constant 0 : i32
    %c0_i32_0 = arith.constant 0 : i32
    %c0_i32_1 = arith.constant 0 : i32
    return %arg0, %c0_i32, %c0_i32_0 : i32, i32, i32
  }
  func.func @transform_1(%arg0: i32, %arg1: i32) -> (i32, i32, i32) {
    %c0_i32 = arith.constant 0 : i32
    %c0_i32_0 = arith.constant 0 : i32
    %c0_i32_1 = arith.constant 0 : i32
    return %c0_i32, %c0_i32_0, %arg1 : i32, i32, i32
  }
  func.func @transform_2(%arg0: i32, %arg1: i32) -> (i32, i32) {
    %c0_i32 = arith.constant 0 : i32
    %c0_i32_0 = arith.constant 0 : i32
    return %c0_i32, %arg1 : i32, i32
  }
  func.func @transform_3(%arg0: i32, %arg1: i32) -> (i32, i32, i32) {
    %c0_i32 = arith.constant 0 : i32
    %c0_i32_0 = arith.constant 0 : i32
    return %arg0, %c0_i32, %arg1 : i32, i32, i32
  }
}

module attributes {stable_mosaic.version = 11 : i64} {
  func.func @_bilstm_kernel(%arg0: i32, %arg1: memref<8x4x512xf32, #tpu.memory_space<vmem>>, %arg2: memref<1x128x512xf32, #tpu.memory_space<vmem>>, %arg3: memref<8x4x128xf32, #tpu.memory_space<vmem>>, %arg4: memref<8x128xf32, #tpu.memory_space<vmem>>, %arg5: memref<8x128xf32, #tpu.memory_space<vmem>>) attributes {dimension_semantics = [#tpu.dimension_semantics<parallel>], iteration_bounds = array<i64: 2>, scalar_prefetch = 0 : i64, scratch_operands = 2 : i64, tpu.core_type = #tpu.core_type<tc>, window_params = [{transform_indices = @transform_0, window_bounds = array<i64: 8, 4, 512>}, {transform_indices = @transform_1, window_bounds = array<i64: 1, 128, 512>}, {transform_indices = @transform_2, window_bounds = array<i64: 8, 4, 128>}]} {
    %cst = arith.constant 0.000000e+00 : f32
    %0 = vector.broadcast %cst : f32 to vector<8x128xf32>
    %c0 = arith.constant 0 : index
    %c0_0 = arith.constant 0 : index
    %1 = vector.load %arg4[%c0, %c0_0] : memref<8x128xf32, #tpu.memory_space<vmem>>, vector<8x128xf32>
    tpu.vector_store %arg4[%c0, %c0_0], %0 {strides = array<i32>} : memref<8x128xf32, #tpu.memory_space<vmem>>, vector<8x128xf32>,
    %cst_1 = arith.constant 0.000000e+00 : f32
    %2 = vector.broadcast %cst_1 : f32 to vector<8x128xf32>
    %c0_2 = arith.constant 0 : index
    %c0_3 = arith.constant 0 : index
    %3 = vector.load %arg5[%c0_2, %c0_3] : memref<8x128xf32, #tpu.memory_space<vmem>>, vector<8x128xf32>
    tpu.vector_store %arg5[%c0_2, %c0_3], %2 {strides = array<i32>} : memref<8x128xf32, #tpu.memory_space<vmem>>, vector<8x128xf32>,
    %c0_i32 = arith.constant 0 : i32
    %c4_i32 = arith.constant 4 : i32
    %4 = arith.addi %c0_i32, %c4_i32 : i32
    %c1_i32 = arith.constant 1 : i32
    scf.for %arg6 = %c0_i32 to %4 step %c1_i32  : i32 {
      %c0_i32_5 = arith.constant 0 : i32
      %5 = arith.cmpi eq, %arg0, %c0_i32_5 : i32
      %c3_i32 = arith.constant 3 : i32
      %6 = arith.subi %c3_i32, %arg6 : i32
      %7 = arith.select %5, %arg6, %6 : i32
      %c0_6 = arith.constant 0 : index
      %8 = arith.index_cast %7 : i32 to index
      %c0_7 = arith.constant 0 : index
      %9 = vector.load %arg1[%c0_6, %8, %c0_7] : memref<8x4x512xf32, #tpu.memory_space<vmem>>, vector<8x1x512xf32>
      %10 = vector.shape_cast %9 : vector<8x1x512xf32> to vector<8x512xf32>
      %c0_8 = arith.constant 0 : index
      %c0_9 = arith.constant 0 : index
      %11 = vector.load %arg4[%c0_8, %c0_9] : memref<8x128xf32, #tpu.memory_space<vmem>>, vector<8x128xf32>
      %c0_10 = arith.constant 0 : index
      %c0_11 = arith.constant 0 : index
      %c0_12 = arith.constant 0 : index
      %12 = vector.load %arg2[%c0_10, %c0_11, %c0_12] : memref<1x128x512xf32, #tpu.memory_space<vmem>>, vector<1x128x512xf32>
      %13 = vector.shape_cast %12 : vector<1x128x512xf32> to vector<128x512xf32>
      %cst_13 = arith.constant dense<0.000000e+00> : vector<8x512xf32>
      %14 = tpu.matmul %11, %13, %cst_13 {dimension_numbers = #tpu.dot_dimension_numbers<[1], [0], [0], [1], [0, 0, 1, 1], [], []>} : vector<8x128xf32>, vector<128x512xf32>, vector<8x512xf32> -> vector<8x512xf32>
      %15 = arith.addf %10, %14 : vector<8x512xf32>
      %16 = vector.extract_strided_slice %15 {offsets = [0, 0], sizes = [8, 128], strides = [1, 1]} : vector<8x512xf32> to vector<8x128xf32>
      %17 = arith.negf %16 : vector<8x128xf32>
      %18 = math.exp %17 : vector<8x128xf32>
      %cst_14 = arith.constant 1.000000e+00 : f32
      %19 = vector.broadcast %cst_14 : f32 to vector<8x128xf32>
      %20 = arith.addf %19, %18 : vector<8x128xf32>
      %21 = arith.divf %19, %20 : vector<8x128xf32>
      %22 = vector.extract_strided_slice %15 {offsets = [0, 128], sizes = [8, 128], strides = [1, 1]} : vector<8x512xf32> to vector<8x128xf32>
      %23 = arith.negf %22 : vector<8x128xf32>
      %24 = math.exp %23 : vector<8x128xf32>
      %cst_15 = arith.constant 1.000000e+00 : f32
      %25 = vector.broadcast %cst_15 : f32 to vector<8x128xf32>
      %26 = arith.addf %25, %24 : vector<8x128xf32>
      %27 = arith.divf %25, %26 : vector<8x128xf32>
      %28 = vector.extract_strided_slice %15 {offsets = [0, 256], sizes = [8, 128], strides = [1, 1]} : vector<8x512xf32> to vector<8x128xf32>
      %29 = math.tanh %28 : vector<8x128xf32>
      %30 = vector.extract_strided_slice %15 {offsets = [0, 384], sizes = [8, 128], strides = [1, 1]} : vector<8x512xf32> to vector<8x128xf32>
      %31 = arith.negf %30 : vector<8x128xf32>
      %32 = math.exp %31 : vector<8x128xf32>
      %cst_16 = arith.constant 1.000000e+00 : f32
      %33 = vector.broadcast %cst_16 : f32 to vector<8x128xf32>
      %34 = arith.addf %33, %32 : vector<8x128xf32>
      %35 = arith.divf %33, %34 : vector<8x128xf32>
      %c0_17 = arith.constant 0 : index
      %c0_18 = arith.constant 0 : index
      %36 = vector.load %arg5[%c0_17, %c0_18] : memref<8x128xf32, #tpu.memory_space<vmem>>, vector<8x128xf32>
      %37 = arith.mulf %27, %36 : vector<8x128xf32>
      %38 = arith.mulf %21, %29 : vector<8x128xf32>
      %39 = arith.addf %37, %38 : vector<8x128xf32>
      %40 = math.tanh %39 : vector<8x128xf32>
      %41 = arith.mulf %35, %40 : vector<8x128xf32>
      %c0_19 = arith.constant 0 : index
      %c0_20 = arith.constant 0 : index
      %42 = vector.load %arg5[%c0_19, %c0_20] : memref<8x128xf32, #tpu.memory_space<vmem>>, vector<8x128xf32>
      tpu.vector_store %arg5[%c0_19, %c0_20], %39 {strides = array<i32>} : memref<8x128xf32, #tpu.memory_space<vmem>>, vector<8x128xf32>,
      %c0_21 = arith.constant 0 : index
      %c0_22 = arith.constant 0 : index
      %43 = vector.load %arg4[%c0_21, %c0_22] : memref<8x128xf32, #tpu.memory_space<vmem>>, vector<8x128xf32>
      tpu.vector_store %arg4[%c0_21, %c0_22], %41 {strides = array<i32>} : memref<8x128xf32, #tpu.memory_space<vmem>>, vector<8x128xf32>,
      %c0_23 = arith.constant 0 : index
      %44 = arith.index_cast %7 : i32 to index
      %c0_24 = arith.constant 0 : index
      %45 = vector.load %arg3[%c0_23, %44, %c0_24] : memref<8x4x128xf32, #tpu.memory_space<vmem>>, vector<8x1x128xf32>
      %46 = vector.shape_cast %45 : vector<8x1x128xf32> to vector<8x128xf32>
      %47 = vector.shape_cast %41 : vector<8x128xf32> to vector<8x1x128xf32>
      tpu.vector_store %arg3[%c0_23, %44, %c0_24], %47 {strides = array<i32>} : memref<8x4x128xf32, #tpu.memory_space<vmem>>, vector<8x1x128xf32>,
    }
    %c4_i32_4 = arith.constant 4 : i32
    return
  }
  func.func @transform_0(%arg0: i32) -> (i32, i32, i32) {
    %c0_i32 = arith.constant 0 : i32
    %c0_i32_0 = arith.constant 0 : i32
    %c0_i32_1 = arith.constant 0 : i32
    return %c0_i32, %c0_i32_0, %arg0 : i32, i32, i32
  }
  func.func @transform_1(%arg0: i32) -> (i32, i32, i32) {
    %c0_i32 = arith.constant 0 : i32
    %c0_i32_0 = arith.constant 0 : i32
    %c0_i32_1 = arith.constant 0 : i32
    return %arg0, %c0_i32, %c0_i32_0 : i32, i32, i32
  }
  func.func @transform_2(%arg0: i32) -> (i32, i32, i32) {
    %c0_i32 = arith.constant 0 : i32
    %c0_i32_0 = arith.constant 0 : i32
    %c0_i32_1 = arith.constant 0 : i32
    return %c0_i32, %c0_i32_0, %arg0 : i32, i32, i32
  }
}

</mosaic_0001>

<bundles_post_ra>
// kernel: encoder_forward.8
= control target key start
LH: loop header
LB: loop body
LE: loop exit
PB: predicated region body
PF: predicated region fallthrough
CT: control target
= control target key end

     0   :  { %8 = vsyncpa [#allocation3], 0  ;;  %s1217_s12 = smov 0   ;;  %s1219_s13 = smov 0   ;;  %s1288_s0 = inlined_call_operand.vmem [shape: f32[2,36,128], index: 0, kind: input, shape index: {}]   ;;  %s1289_s1 = inlined_call_operand.hbm [shape: bf16[5,128,128], index: 1, kind: input, shape index: {}]   ;;  %s1290_s2 = inlined_call_operand.vmem [shape: f32[1,128], index: 2, kind: input, shape index: {}]   ;;  %s1291_s3 = inlined_call_operand.vmem [shape: bf16[2,32,128], index: 3, kind: output, shape index: {}]  }
   0x1   :  { %s1221_s14 = smov 0  }
   0x2 LB: > { %s864_s15 = sadd.s32 4294967295, %s1192_s14   ;;  %s26_s16 = sadd.s32 1, %s1188_s13  ;;  %s1192_s14 = sphi %s1221_s14, %s14_s14   ;;  %s1188_s13 = sphi %s1219_s13, %s1293_s13   ;;  %s1184_s12 = sphi %s1217_s12, %s1292_s12  }
   0x3   : > { %p28_p0 = scmp.ge.s32.totalorder %s26_s16, 2  ;;  %p866_p1 = scmp.ge.s32.totalorder %s1192_s14, 1 }
   0x4   : > { %p137_p2 = scmp.lt.s32.totalorder %s1192_s14, 3  ;;  %p1106_p4 = scmp.eq.s32.totalorder %s864_s15, 0 }
   0x5   : > { %s1295_s16 = smov (%p28_p0, %s26_s16), 0  ;;  %s150_s19 = sshll.u32 %s1289_s1, 4  ;;  %s151_s19 = int_to_ptr.hbm [resolvable:$true] %s150_s19 }
   0x6   : > { %p138_p3 = pnand %p866_p1, %p137_p2  ;;  %s1194_s20 = smov [#allocation2]  }
   0x7   : > { %s152_s21 = sshll.u32 %s1194_s20, 4  ;;  %s1195_s22 = smov 64   ;;  %s153_s21 = int_to_ptr.vmem [resolvable:$true] %s152_s21 }
   0x8   : > { %p1102_p5 = pneg %p138_p3  ;;  %s1196_s23 = smov 4  }
   0x9   : > { %182 = sbr.rel (%p138_p3) target bundleno = 223 (0xdf), region = 32 }
   0xa   : > { %p1103_p6 = pnand %p1106_p4, %p1102_p5 }
   0xc   : > { %1105 = dma.hbm_to_vmem [thread:$0]  (!%p1103_p6), %s151_s19, 5120, %s153_s21, [#allocation3], %s1195_s22, %s1195_s22, %s1196_s23  }
   0xe   : > { %1179 = dma.done.wait (%p1106_p4), [#allocation3], 5120  }
   0xf   : > { %1181 = vsyncadd (%p1106_p4), [#allocation3], 4294962176  ;;  %p213_p7 = scmp.lt.s32.totalorder %s1184_s12, 1  ;;  %v1053_v0 = vld [vmem:[#allocation2 + $0x78] sm:$0xff]  ;;  %v1052_v4 = vld [vmem:[#allocation2 + $0x70] sm:$0xff]  ;;  %vm461_vm1 = vcmask 1046528  }
  0x10   : > { %v1045_v1 = vld [vmem:[#allocation2 + $0x38] sm:$0xff]  ;;  %356 = vmatpush.bf16.msra.mxu0 %v1053_v0  ;;  %v1044_v5 = vld [vmem:[#allocation2 + $0x30] sm:$0xff]  ;;  %v1051_v8 = vld [vmem:[#allocation2 + $0x68] sm:$0xff]  ;;  %vm285_vm0 = vsmask.f32 7424  ;;  %vm661_vm3 = vcmask 1045504  }
  0x11   : > { %s1297_s12 = smov (!%p213_p7, %s1184_s12), 1  ;;  %v1061_v2 = vld [vmem:[#allocation2 + $0xb8] sm:$0xff]  ;;  %425 = vmatpush.bf16.msra.mxu1 %v1045_v1  ;;  %v1060_v6 = vld [vmem:[#allocation2 + $0xb0] sm:$0xff]  ;;  %v1043_v9 = vld [vmem:[#allocation2 + $0x28] sm:$0xff]  ;;  %vm557_vm2 = vsmask.f32 6400 }
  0x12   : > { %v1069_v3 = vld [vmem:[#allocation2 + $0xf8] sm:$0xff]  ;;  %517 = vmatpush.bf16.msra.mxu2 %v1061_v2  ;;  %v1068_v7 = vld [vmem:[#allocation2 + $0xf0] sm:$0xff]  ;;  %s1097_s24 = smul.u32 40, %s1297_s12  ;;  %v1059_v10 = vld [vmem:[#allocation2 + $0xa8] sm:$0xff]  ;;  %s1037_s30 = sshll.u32 %s1297_s12, 4 }
  0x13   : > { %621 = vmatpush.bf16.msra.mxu3 %v1069_v3  ;;  %v1067_v11 = vld [vmem:[#allocation2 + $0xe8] sm:$0xff]  ;;  %v1050_v12 = vld [vmem:[#allocation2 + $0x60] sm:$0xff]  ;;  %v1049_v25 = vld [vmem:[#allocation2 + $0x58] sm:$0xff]  ;;  %s228_s6 = scalar_lea.vmem %s1291_s3, %s1037_s30 }
  0x14   : > { %357 = vmatpush.bf16.msra.mxu0 %v1052_v4  ;;  %s1245_s27 = scalar_lea.vmem %s1288_s0, %s1097_s24  ;;  %v1042_v13 = vld [vmem:[#allocation2 + $0x20] sm:$0xff]  ;;  %v1041_v26 = vld [vmem:[#allocation2 + $0x18] sm:$0xff]  ;;  %v1048_v34 = vld [vmem:[#allocation2 + $0x50] sm:$0xff] }
  0x15   : > { %426 = vmatpush.bf16.msra.mxu1 %v1044_v5  ;;  %v1058_v14 = vld [vmem:[#allocation2 + $0xa0] sm:$0xff]  ;;  %v230_v17 = vld [vmem:[%s1245_s27 + $0x8] sm:$0xff]  ;;  %v231_v18 = vld [vmem:[%s1245_s27 + $0x10] sm:$0xff] }
  0x16   : > { %518 = vmatpush.bf16.msra.mxu2 %v1060_v6  ;;  %v1066_v15 = vld [vmem:[#allocation2 + $0xe0] sm:$0xff]  ;;  %v232_v19 = vld [vmem:[%s1245_s27 + $0x18] sm:$0xff]  ;;  %v235_v21 = vpack.c.bf16 %v230_v17, %v230_v17  ;;  %v236_v22 = vpack.c.bf16 %v231_v18, %v231_v18  ;;  %v1040_v35 = vld [vmem:[#allocation2 + $0x10] sm:$0xff] }
  0x17   : > { %622 = vmatpush.bf16.msra.mxu3 %v1068_v7  ;;  %v229_v16 = vld [vmem:[%s1245_s27] sm:$0xff]  ;;  %v237_v23 = vpack.c.bf16 %v232_v19, %v232_v19  ;;  %v1057_v30 = vld [vmem:[#allocation2 + $0x98] sm:$0xff]  ;;  %v1056_v36 = vld [vmem:[#allocation2 + $0x90] sm:$0xff] }
  0x18   : > { %358 = vmatpush.bf16.msra.mxu0 %v1051_v8  ;;  %v234_v20 = vpack.c.bf16 %v229_v16, %v229_v16  ;;  %v278_v27 = vunpack.c.l.b16 %v235_v21  ;;  %v279_v28 = vunpack.c.l.b16 %v236_v22  ;;  %v1065_v31 = vld [vmem:[#allocation2 + $0xd8] sm:$0xff]  ;;  %v1064_v38 = vld [vmem:[#allocation2 + $0xd0] sm:$0xff]  ;;  %v233_v42 = vld [vmem:[%s1245_s27 + $0x20] sm:$0xf] }
  0x19   : > { %427 = vmatpush.bf16.msra.mxu1 %v1043_v9  ;;  %v280_v29 = vunpack.c.l.b16 %v237_v23  ;;  %v1047_v43 = vld [vmem:[#allocation2 + $0x48] sm:$0xff]  ;;  %v238_v46 = vpack.c.bf16 %v233_v42, %v233_v42  ;;  %v1046_v53 = vld [vmem:[#allocation2 + $0x40] sm:$0xff]  ;;  %v1077_v0 = vld [vmem:[#allocation2 + $0x138] sm:$0xff] }
  0x1a   : > { %519 = vmatpush.bf16.msra.mxu2 %v1059_v10  ;;  %v277_v24 = vunpack.c.l.b16 %v234_v20  ;;  %v1039_v44 = vld [vmem:[#allocation2 + $0x8] sm:$0xff]  ;;  %v1038_v54 = vld [vmem:[#allocation2] sm:$0xff]  ;;  %v1076_v5 = vld [vmem:[#allocation2 + $0x130] sm:$0xff] }
  0x1b   : > { %623 = vmatpush.bf16.msra.mxu3 %v1067_v11  ;;  %v1253_v33 = vpack.c.b16 %v280_v29, %v279_v28  ;;  %v1055_v47 = vld [vmem:[#allocation2 + $0x88] sm:$0xff]  ;;  %v281_v57 = vunpack.c.l.b16 %v238_v46  ;;  %v1054_v58 = vld [vmem:[#allocation2 + $0x80] sm:$0xff]  ;;  %v1073_v16 = vld [vmem:[#allocation2 + $0x118] sm:$0xff] }
  0x1c   : > { %359 = vmatpush.bf16.msra.mxu0 %v1050_v12  ;;  %v1251_v32 = vpack.c.b16 %v278_v27, %v277_v24  ;;  %v1063_v48 = vld [vmem:[#allocation2 + $0xc8] sm:$0xff]  ;;  %v1062_v59 = vld [vmem:[#allocation2 + $0xc0] sm:$0xff]  ;;  %v1072_v20 = vld [vmem:[#allocation2 + $0x110] sm:$0xff] }
  0x1d   : > { %428 = vmatpush.bf16.msra.mxu1 %v1042_v13  ;;  %v294_v40 = vshll.u32 %v1253_v33, 16  ;;  %v298_v41 = vshrl.u32 %v1253_v33, 16  ;;  %v463_v61 = vrot.slane %v1253_v33, 1  ;;  %v284_v4 = vpack.c.b16 %v281_v57, %v281_v57  ;;  %v1075_v8 = vld [vmem:[#allocation2 + $0x128] sm:$0xff]  ;;  %v1074_v11 = vld [vmem:[#allocation2 + $0x120] sm:$0xff] }
  0x1e   : > { %520 = vmatpush.bf16.msra.mxu2 %v1058_v14  ;;  %v289_v37 = vshll.u32 %v1251_v32, 16  ;;  %v287_v39 = vshrl.u32 %v1251_v32, 16  ;;  %v462_v60 = vrot.slane %v1251_v32, 1  ;;  %v1071_v21 = vld [vmem:[#allocation2 + $0x108] sm:$0xff]  ;;  %v1070_v22 = vld [vmem:[#allocation2 + $0x100] sm:$0xff]  ;;  %v662_v23 = vrot.slane %v1251_v32, 2 }
  0x1f   : > { %624 = vmatpush.bf16.msra.mxu3 %v1066_v15  ;;  %v561_v51 = vrot.slane %v298_v41, 1  ;;  %v562_v52 = vrot.slane %v294_v40, 2  ;;  %v296_v56 = vrot.slane %v294_v40, 1  ;;  %v302_v6 = vshll.u32 %v284_v4, 16 }
  0x20   : > { %360 = vmatpush.bf16.msra.mxu0 %v1049_v25  ;;  %v291_v45 = vrot.slane %v289_v37, 1  ;;  %v558_v49 = vrot.slane %v287_v39, 1  ;;  %v559_v50 = vrot.slane %v289_v37, 2  ;;  %v464_v2 = vsel %vm461_vm1, %v462_v60, %v463_v61 }
  0x21   : > { %429 = vmatpush.bf16.msra.mxu1 %v1041_v26  ;;  %v563_v63 = vor.u32 %v562_v52, %v561_v51  ;;  %v565_v7 = vshrl.u32 %v284_v4, 16  ;;  %v568_v10 = vrot.slane %v302_v6, 2  ;;  %v300_v12 = vor.u32 %v298_v41, %v296_v56 }
  0x22   : > { %521 = vmatpush.bf16.msra.mxu2 %v1057_v30  ;;  %v292_v55 = vor.u32 %v291_v45, %v287_v39  ;;  %v560_v62 = vor.u32 %v559_v50, %v558_v49  ;;  %v304_v13 = vrot.slane %v302_v6, 1  ;;  %v465_v14 = vrot.slane %v284_v4, 1 }
  0x23   : > { %625 = vmatpush.bf16.msra.mxu3 %v1065_v31  ;;  %v567_v9 = vrot.slane %v565_v7, 1  ;;  %v663_v24 = vrot.slane %v1253_v33, 2  ;;  %v665_v25 = vrot.slane %v284_v4, 2 }
  0x24   : > { %361 = vmatpush.bf16.msra.mxu0 %v1048_v34  ;;  %v297_v1 = vsel %vm285_vm0, %v292_v55, %v296_v56  ;;  %v564_v3 = vsel %vm557_vm2, %v560_v62, %v563_v63  ;;  %v305_v17 = vsel %vm285_vm0, %v300_v12, %v304_v13  ;;  %v466_v18 = vsel %vm461_vm1, %v463_v61, %v465_v14  ;;  %v1135_v56 = vld [vmem:[%s1290_s2] ss:$0 sm:$0xff] }
  0x25   : > { %430 = vmatpush.bf16.msra.mxu1 %v1040_v35  ;;  %v569_v15 = vor.u32 %v568_v10, %v567_v9  ;;  %v664_v26 = vsel %vm661_vm3, %v662_v23, %v663_v24  ;;  %v666_v27 = vsel %vm661_vm3, %v663_v24, %v665_v25 }
  0x26   : > { %522 = vmatpush.bf16.msra.mxu2 %v1056_v36 }
  0x27   : > { %626 = vmatpush.bf16.msra.mxu3 %v1064_v38  ;;  %v570_v19 = vsel %vm557_vm2, %v563_v63, %v569_v15 }
  0x28   : > { %362 = vmatpush.bf16.msra.mxu0 %v1047_v43 }
  0x29   : > { %431 = vmatpush.bf16.msra.mxu1 %v1039_v44 }
  0x2a   : > { %523 = vmatpush.bf16.msra.mxu2 %v1055_v47 }
  0x2b   : > { %627 = vmatpush.bf16.msra.mxu3 %v1063_v48 }
  0x2c   : > { %363 = vmatpush.bf16.msra.mxu0 %v1046_v53 }
  0x2d   : > { %432 = vmatpush.bf16.msra.mxu1 %v1038_v54 }
  0x2e   : > { %524 = vmatpush.bf16.msra.mxu2 %v1054_v58 }
  0x2f   : > { %628 = vmatpush.bf16.msra.mxu3 %v1062_v59  ;;  %364 = vmatmul.bf16.vlgmr.msra.gmra.mxu0 %v297_v1 }
  0x30   : > { %717 = vmatpush.bf16.msrb.mxu0 %v1077_v0  ;;  %433 = vmatmul.bf16.vlgmr.msra.gmra.mxu1 %v1251_v32 }
  0x31   : > { %1089 = vmatpush.bf16.msrb.mxu1 %v1077_v0  ;;  %525 = vmatmul.bf16.vlgmr.msra.gmra.mxu2 %v464_v2 }
  0x32   : > { %629 = vmatmul.bf16.vlgmr.msra.gmra.mxu3 %v564_v3 }
  0x34   : > { %718 = vmatpush.bf16.msrb.mxu0 %v1076_v5 }
  0x35   : > { %1090 = vmatpush.bf16.msrb.mxu1 %v1076_v5 }
  0x38   : > { %719 = vmatpush.bf16.msrb.mxu0 %v1075_v8 }
  0x39   : > { %1091 = vmatpush.bf16.msrb.mxu1 %v1075_v8 }
  0x3c   : > { %720 = vmatpush.bf16.msrb.mxu0 %v1074_v11 }
  0x3d   : > { %1092 = vmatpush.bf16.msrb.mxu1 %v1074_v11 }
  0x3f   : > { %369 = vmatmul.bf16.gmra.mxu0 %v305_v17 }
  0x40   : > { %721 = vmatpush.bf16.msrb.mxu0 %v1073_v16  ;;  %438 = vmatmul.bf16.gmra.mxu1 %v1253_v33 }
  0x41   : > { %1093 = vmatpush.bf16.msrb.mxu1 %v1073_v16  ;;  %530 = vmatmul.bf16.gmra.mxu2 %v466_v18 }
  0x42   : > { %634 = vmatmul.bf16.gmra.mxu3 %v570_v19 }
  0x44   : > { %722 = vmatpush.bf16.msrb.mxu0 %v1072_v20 }
  0x45   : > { %1094 = vmatpush.bf16.msrb.mxu1 %v1072_v20 }
  0x48   : > { %723 = vmatpush.bf16.msrb.mxu0 %v1071_v21 }
  0x49   : > { %1095 = vmatpush.bf16.msrb.mxu1 %v1071_v21 }
  0x4c   : > { %724 = vmatpush.bf16.msrb.mxu0 %v1070_v22 }
  0x4d   : > { %1096 = vmatpush.bf16.msrb.mxu1 %v1070_v22 }
  0x4f   : > { %725 = vmatmul.bf16.vlgmr.msrb.gmra.mxu0 %v664_v26 }
  0x50   : > { %730 = vmatmul.bf16.vlgmr.msrb.gmra.mxu1 %v666_v27 }
  0xac   : > { %v365_v28 = vpop.f32.mrf.mxu0 }
  0xad   : > { %v434_v29 = vpop.f32.mrf.mxu1 }
  0xae   : > { %v435_v42 = vadd.f32 %v434_v29, %v365_v28 }
  0xb4   : > { %v526_v30 = vpop.f32.mrf.mxu2  ;;  %v367_v34 = vpop.f32.mrf.mxu0 }
  0xb5   : > { %v630_v31 = vpop.f32.mrf.mxu3  ;;  %v436_v35 = vpop.f32.mrf.mxu1  ;;  %v536_v44 = vadd.f32 %v526_v30, %v435_v42 }
  0xb6   : > { %v437_v49 = vadd.f32 %v436_v35, %v367_v34 }
  0xb7   : > { %v640_v51 = vadd.f32 %v630_v31, %v536_v44 }
  0xbc   : > { %v528_v36 = vpop.f32.mrf.mxu2  ;;  %v370_v37 = vpop.f32.mrf.mxu0 }
  0xbd   : > { %v439_v38 = vpop.f32.mrf.mxu1  ;;  %v632_v32 = vpop.f32.mrf.mxu3  ;;  %v537_v52 = vadd.f32 %v528_v36, %v437_v49 }
  0xbe   : > { %v440_v43 = vadd.f32 %v439_v38, %v370_v37 }
  0xbf   : > { %v641_v59 = vadd.f32 %v632_v32, %v537_v52 }
  0xc4   : > { %v531_v39 = vpop.f32.mrf.mxu2  ;;  %v372_v33 = vpop.f32.mrf.mxu0 }
  0xc5   : > { %v441_v40 = vpop.f32.mrf.mxu1  ;;  %v635_v41 = vpop.f32.mrf.mxu3  ;;  %v538_v45 = vadd.f32 %v531_v39, %v440_v43 }
  0xc6   : > { %v442_v50 = vadd.f32 %v441_v40, %v372_v33 }
  0xc7   : > { %v642_v53 = vadd.f32 %v635_v41, %v538_v45 }
  0xcc   : > { %v533_v46 = vpop.f32.mrf.mxu2  ;;  %v726_v47 = vpop.f32.mrf.mxu0 }
  0xcd   : > { %v731_v48 = vpop.f32.mrf.mxu1  ;;  %v539_v54 = vadd.f32 %v533_v46, %v442_v50  ;;  %v736_v55 = vadd.f32 %v726_v47, %v640_v51  ;;  %v637_v58 = vpop.f32.mrf.mxu3 }
  0xce   : > { %v738_v57 = vadd.f32 %v731_v48, %v642_v53 }
  0xcf   : > { %v643_v60 = vadd.f32 %v637_v58, %v539_v54  ;;  %v744_v63 = vadd.f32 %v1135_v56, %v736_v55 }
  0xd0   : > { %v746_v0 = vadd.f32 %v1135_v56, %v738_v57 }
  0xd1   : > { %v748_v5 = vmax.f32 %v744_v63, 0.0 }
  0xd2   : > { %v750_v6 = vmax.f32 %v746_v0, 0.0 }
  0xd4   : > { %v728_v61 = vpop.f32.mrf.mxu0 }
  0xd5   : > { %v733_v62 = vpop.f32.mrf.mxu1  ;;  %v737_v1 = vadd.f32 %v728_v61, %v641_v59 }
  0xd6   : > { %v739_v2 = vadd.f32 %v733_v62, %v643_v60 }
  0xd7   : > { %v745_v3 = vadd.f32 %v1135_v56, %v737_v1 }
  0xd8   : > { %v747_v4 = vadd.f32 %v1135_v56, %v739_v2 }
  0xd9   : > { %v749_v7 = vmax.f32 %v745_v3, 0.0 }
  0xda   : > { %v751_v8 = vmax.f32 %v747_v4, 0.0 }
  0xdb   : > { %v1081_v9 = vpack.c.bf16 %v749_v7, %v748_v5 }
  0xdc   : > { %v1086_v10 = vpack.c.bf16 %v751_v8, %v750_v6 }
  0xdd   : > { %1082 = vst [vmem:[%s228_s6] sm:$0xff] %v1081_v9  }
  0xde   : > { %1088 = vst [vmem:[%s228_s6 + $0x8] sm:$0xff] %v1086_v10  }
  0xdf PF: > { %s14_s14 = sadd.s32 1, %s1192_s14   ;;  %s1292_s12 = smov %s1188_s13 }
  0xe0   : > { %p11_p8 = scmp.ge.s32.totalorder %s14_s14, 4   ;;  %s1293_s13 = smov %s1295_s16 }
  0xe2   :  { %13 = sbr.rel (!%p11_p8) target bundleno = 2 (0x2), region = 75 }
  0xe7   :  { %787 = vsyncpa [#allocation3], 1 }
  0xe8   :  { %789 = vsyncpa [#allocation3 + $0x1], 1 }

// kernel: encoder_forward.9
= control target key start
LH: loop header
LB: loop body
LE: loop exit
PB: predicated region body
PF: predicated region fallthrough
CT: control target
= control target key end

     0   :  { %8 = vsyncpa [#allocation3], 0  ;;  %s1260_s12 = smov 0   ;;  %s1262_s13 = smov 0   ;;  %s1324_s0 = inlined_call_operand.vmem [shape: bf16[2,18,256], index: 0, kind: input, shape index: {}]   ;;  %s1325_s1 = inlined_call_operand.hbm [shape: bf16[3,256,128], index: 1, kind: input, shape index: {}]   ;;  %s1326_s2 = inlined_call_operand.vmem [shape: f32[1,128], index: 2, kind: input, shape index: {}]   ;;  %s1327_s3 = inlined_call_operand.vmem [shape: bf16[2,16,128], index: 3, kind: output, shape index: {}]  }
   0x1   :  { %s1264_s14 = smov 0  }
   0x2 LB: > { %s871_s15 = sadd.s32 4294967295, %s1235_s14   ;;  %s26_s16 = sadd.s32 1, %s1231_s13  ;;  %s1235_s14 = sphi %s1264_s14, %s14_s14   ;;  %s1231_s13 = sphi %s1262_s13, %s1329_s13   ;;  %s1227_s12 = sphi %s1260_s12, %s1328_s12  }
   0x3   : > { %p28_p0 = scmp.ge.s32.totalorder %s26_s16, 2  ;;  %p873_p1 = scmp.ge.s32.totalorder %s1235_s14, 1 }
   0x4   : > { %p137_p2 = scmp.lt.s32.totalorder %s1235_s14, 3  ;;  %p1149_p4 = scmp.eq.s32.totalorder %s871_s15, 0 }
   0x5   : > { %s1331_s16 = smov (%p28_p0, %s26_s16), 0  ;;  %s150_s19 = sshll.u32 %s1325_s1, 4  ;;  %s151_s19 = int_to_ptr.hbm [resolvable:$true] %s150_s19 }
   0x6   : > { %p138_p3 = pnand %p873_p1, %p137_p2  ;;  %s1237_s20 = smov [#allocation2]  }
   0x7   : > { %s152_s21 = sshll.u32 %s1237_s20, 4  ;;  %s1238_s22 = smov 64   ;;  %s153_s21 = int_to_ptr.vmem [resolvable:$true] %s152_s21 }
   0x8   : > { %p1145_p5 = pneg %p138_p3  ;;  %s1239_s23 = smov 4  }
   0x9   : > { %182 = sbr.rel (%p138_p3) target bundleno = 225 (0xe1), region = 32 }
   0xa   : > { %p1146_p6 = pnand %p1149_p4, %p1145_p5 }
   0xc   : > { %1148 = dma.hbm_to_vmem [thread:$0]  (!%p1146_p6), %s151_s19, 6144, %s153_s21, [#allocation3], %s1238_s22, %s1238_s22, %s1239_s23  }
   0xe   : > { %1222 = dma.done.wait (%p1149_p4), [#allocation3], 6144  }
   0xf   : > { %1224 = vsyncadd (%p1149_p4), [#allocation3], 4294961152  ;;  %p213_p7 = scmp.lt.s32.totalorder %s1227_s12, 1  ;;  %v1110_v0 = vld [vmem:[#allocation2 + $0xb8] sm:$0xff]  ;;  %v1109_v4 = vld [vmem:[#allocation2 + $0xb0] sm:$0xff]  ;;  %vm620_vm1 = vcmask 1046528  }
  0x10   : > { %v1118_v1 = vld [vmem:[#allocation2 + $0xf8] sm:$0xff]  ;;  %433 = vmatpush.bf16.msra.mxu0 %v1110_v0  ;;  %v1117_v5 = vld [vmem:[#allocation2 + $0xf0] sm:$0xff]  ;;  %v1108_v8 = vld [vmem:[#allocation2 + $0xa8] sm:$0xff]  ;;  %vm310_vm0 = vsmask.f32 7424 }
  0x11   : > { %v1094_v2 = vld [vmem:[#allocation2 + $0x38] sm:$0xff]  ;;  %s1333_s12 = smov (!%p213_p7, %s1227_s12), 1  ;;  %447 = vmatpush.bf16.msra.mxu1 %v1118_v1  ;;  %v1093_v6 = vld [vmem:[#allocation2 + $0x30] sm:$0xff]  ;;  %v1116_v9 = vld [vmem:[#allocation2 + $0xe8] sm:$0xff] }
  0x12   : > { %v1102_v3 = vld [vmem:[#allocation2 + $0x78] sm:$0xff]  ;;  %559 = vmatpush.bf16.msra.mxu2 %v1094_v2  ;;  %v1101_v7 = vld [vmem:[#allocation2 + $0x70] sm:$0xff]  ;;  %s1140_s24 = smul.u32 24, %s1333_s12  ;;  %v1092_v10 = vld [vmem:[#allocation2 + $0x28] sm:$0xff]  ;;  %s1084_s30 = sshll.u32 %s1333_s12, 3 }
  0x13   : > { %573 = vmatpush.bf16.msra.mxu3 %v1102_v3  ;;  %v1100_v11 = vld [vmem:[#allocation2 + $0x68] sm:$0xff]  ;;  %v1107_v12 = vld [vmem:[#allocation2 + $0xa0] sm:$0xff]  ;;  %v1106_v22 = vld [vmem:[#allocation2 + $0x98] sm:$0xff]  ;;  %s228_s6 = scalar_lea.vmem %s1327_s3, %s1084_s30 }
  0x14   : > { %434 = vmatpush.bf16.msra.mxu0 %v1109_v4  ;;  %s217_s27 = scalar_lea.vmem %s1324_s0, %s1140_s24  ;;  %v1115_v13 = vld [vmem:[#allocation2 + $0xe0] sm:$0xff]  ;;  %v1114_v23 = vld [vmem:[#allocation2 + $0xd8] sm:$0xff]  ;;  %v1105_v30 = vld [vmem:[#allocation2 + $0x90] sm:$0xff] }
  0x15   : > { %448 = vmatpush.bf16.msra.mxu1 %v1117_v5  ;;  %v1091_v14 = vld [vmem:[#allocation2 + $0x20] sm:$0xff]  ;;  %v1086_v17 = vld [vmem:[%s217_s27 + $0x4] sm:$0xf0]  ;;  %v886_v20 = vld [vmem:[%s217_s27 + $0x8] sm:$0xf0] }
  0x16   : > { %560 = vmatpush.bf16.msra.mxu2 %v1093_v6  ;;  %v1099_v15 = vld [vmem:[#allocation2 + $0x60] sm:$0xff]  ;;  %v231_v21 = vld [vmem:[%s217_s27 + $0x10] sm:$0x11]  ;;  %v1090_v26 = vld [vmem:[#allocation2 + $0x18] sm:$0xff] }
  0x17   : > { %574 = vmatpush.bf16.msra.mxu3 %v1101_v7  ;;  %v884_v16 = vld [vmem:[%s217_s27] sm:$0xf]  ;;  %v1085_v18 = vld [vmem:[%s217_s27 + $0x4] sm:$0xf]  ;;  %v304_v25 = vunpack.c.l.b16 %v231_v21  ;;  %v1098_v27 = vld [vmem:[#allocation2 + $0x58] sm:$0xff]  ;;  %v305_v28 = vunpack.c.h.b16 %v231_v21 }
  0x18   : > { %435 = vmatpush.bf16.msra.mxu0 %v1108_v8  ;;  %v1288_v19 = vor.u32 %v1086_v17, %v884_v16  ;;  %v1290_v24 = vor.u32 %v1085_v18, %v886_v20  ;;  %v1113_v31 = vld [vmem:[#allocation2 + $0xd0] sm:$0xff]  ;;  %v1104_v39 = vld [vmem:[#allocation2 + $0x88] sm:$0xff]  ;;  %v1103_v47 = vld [vmem:[#allocation2 + $0x80] sm:$0xff] }
  0x19   : > { %449 = vmatpush.bf16.msra.mxu1 %v1116_v9  ;;  %v1293_v32 = vpack.c.b16 %v304_v25, %v304_v25  ;;  %v1295_v33 = vpack.c.b16 %v305_v28, %v305_v28  ;;  %v1089_v35 = vld [vmem:[#allocation2 + $0x10] sm:$0xff]  ;;  %v1112_v40 = vld [vmem:[#allocation2 + $0xc8] sm:$0xff]  ;;  %v1111_v48 = vld [vmem:[#allocation2 + $0xc0] sm:$0xff] }
  0x1a   : > { %561 = vmatpush.bf16.msra.mxu2 %v1092_v10  ;;  %v314_v29 = vshll.u32 %v1288_v19, 16  ;;  %v326_v34 = vshll.u32 %v1290_v24, 16  ;;  %v1097_v36 = vld [vmem:[#allocation2 + $0x50] sm:$0xff]  ;;  %v312_v37 = vshrl.u32 %v1288_v19, 16  ;;  %v324_v42 = vshrl.u32 %v1290_v24, 16  ;;  %v1088_v45 = vld [vmem:[#allocation2 + $0x8] sm:$0xff] }
  0x1b   : > { %575 = vmatpush.bf16.msra.mxu3 %v1100_v11  ;;  %v319_v41 = vshll.u32 %v1293_v32, 16  ;;  %v331_v44 = vshll.u32 %v1295_v33, 16  ;;  %v1096_v46 = vld [vmem:[#allocation2 + $0x48] sm:$0xff]  ;;  %v1087_v53 = vld [vmem:[#allocation2] sm:$0xff]  ;;  %v1126_v54 = vld [vmem:[#allocation2 + $0x138] sm:$0xff]  ;;  %v621_v8 = vrot.slane %v1288_v19, 1 }
  0x1c   : > { %436 = vmatpush.bf16.msra.mxu0 %v1107_v12  ;;  %v316_v38 = vrot.slane %v314_v29, 1  ;;  %v328_v43 = vrot.slane %v326_v34, 1  ;;  %v1134_v55 = vld [vmem:[#allocation2 + $0x178] sm:$0xff]  ;;  %v1095_v56 = vld [vmem:[#allocation2 + $0x40] sm:$0xff]  ;;  %v1125_v59 = vld [vmem:[#allocation2 + $0x130] sm:$0xff]  ;;  %v622_v9 = vrot.slane %v1293_v32, 1 }
  0x1d   : > { %450 = vmatpush.bf16.msra.mxu1 %v1115_v13  ;;  %v321_v50 = vrot.slane %v319_v41, 1  ;;  %v333_v52 = vrot.slane %v331_v44, 1  ;;  %v1133_v60 = vld [vmem:[#allocation2 + $0x170] sm:$0xff]  ;;  %v1124_v61 = vld [vmem:[#allocation2 + $0x128] sm:$0xff]  ;;  %v1123_v63 = vld [vmem:[#allocation2 + $0x120] sm:$0xff]  ;;  %v624_v11 = vrot.slane %v1290_v24, 1 }
  0x1e   : > { %562 = vmatpush.bf16.msra.mxu2 %v1091_v14  ;;  %v317_v49 = vor.u32 %v316_v38, %v312_v37  ;;  %v329_v51 = vor.u32 %v328_v43, %v324_v42  ;;  %v1132_v62 = vld [vmem:[#allocation2 + $0x168] sm:$0xff]  ;;  %v1131_v0 = vld [vmem:[#allocation2 + $0x160] sm:$0xff]  ;;  %v1122_v1 = vld [vmem:[#allocation2 + $0x118] sm:$0xff]  ;;  %v625_v12 = vrot.slane %v1295_v33, 1  ;;  %v623_v13 = vsel %vm620_vm1, %v621_v8, %v622_v9 }
  0x1f   : > { %576 = vmatpush.bf16.msra.mxu3 %v1099_v15  ;;  %v1130_v2 = vld [vmem:[#allocation2 + $0x158] sm:$0xff]  ;;  %v1121_v3 = vld [vmem:[#allocation2 + $0x110] sm:$0xff]  ;;  %v1120_v5 = vld [vmem:[#allocation2 + $0x108] sm:$0xff] }
  0x20   : > { %437 = vmatpush.bf16.msra.mxu0 %v1106_v22  ;;  %v322_v57 = vsel %vm310_vm0, %v317_v49, %v321_v50  ;;  %v334_v58 = vsel %vm310_vm0, %v329_v51, %v333_v52  ;;  %v1129_v4 = vld [vmem:[#allocation2 + $0x150] sm:$0xff]  ;;  %v1128_v6 = vld [vmem:[#allocation2 + $0x148] sm:$0xff]  ;;  %v1119_v7 = vld [vmem:[#allocation2 + $0x100] sm:$0xff]  ;;  %v626_v14 = vsel %vm620_vm1, %v624_v11, %v625_v12 }
  0x21   : > { %451 = vmatpush.bf16.msra.mxu1 %v1114_v23  ;;  %v1127_v10 = vld [vmem:[#allocation2 + $0x140] sm:$0xff] }
  0x22   : > { %563 = vmatpush.bf16.msra.mxu2 %v1090_v26  ;;  %v1178_v32 = vld [vmem:[%s1326_s2] ss:$0 sm:$0xff] }
  0x23   : > { %577 = vmatpush.bf16.msra.mxu3 %v1098_v27 }
  0x24   : > { %438 = vmatpush.bf16.msra.mxu0 %v1105_v30 }
  0x25   : > { %452 = vmatpush.bf16.msra.mxu1 %v1113_v31 }
  0x26   : > { %564 = vmatpush.bf16.msra.mxu2 %v1089_v35 }
  0x27   : > { %578 = vmatpush.bf16.msra.mxu3 %v1097_v36 }
  0x28   : > { %439 = vmatpush.bf16.msra.mxu0 %v1104_v39 }
  0x29   : > { %453 = vmatpush.bf16.msra.mxu1 %v1112_v40 }
  0x2a   : > { %565 = vmatpush.bf16.msra.mxu2 %v1088_v45 }
  0x2b   : > { %579 = vmatpush.bf16.msra.mxu3 %v1096_v46 }
  0x2c   : > { %440 = vmatpush.bf16.msra.mxu0 %v1103_v47 }
  0x2d   : > { %454 = vmatpush.bf16.msra.mxu1 %v1111_v48 }
  0x2e   : > { %566 = vmatpush.bf16.msra.mxu2 %v1087_v53 }
  0x2f   : > { %580 = vmatpush.bf16.msra.mxu3 %v1095_v56  ;;  %441 = vmatmul.bf16.vlgmr.msra.gmra.mxu0 %v322_v57 }
  0x30   : > { %725 = vmatpush.bf16.msrb.mxu0 %v1126_v54  ;;  %455 = vmatmul.bf16.vlgmr.msra.gmra.mxu1 %v334_v58 }
  0x31   : > { %739 = vmatpush.bf16.msrb.mxu1 %v1134_v55  ;;  %567 = vmatmul.bf16.vlgmr.msra.gmra.mxu2 %v1288_v19 }
  0x32   : > { %581 = vmatmul.bf16.vlgmr.msra.gmra.mxu3 %v1290_v24 }
  0x34   : > { %726 = vmatpush.bf16.msrb.mxu0 %v1125_v59 }
  0x35   : > { %740 = vmatpush.bf16.msrb.mxu1 %v1133_v60 }
  0x38   : > { %727 = vmatpush.bf16.msrb.mxu0 %v1124_v61 }
  0x39   : > { %741 = vmatpush.bf16.msrb.mxu1 %v1132_v62 }
  0x3c   : > { %728 = vmatpush.bf16.msrb.mxu0 %v1123_v63 }
  0x3d   : > { %742 = vmatpush.bf16.msrb.mxu1 %v1131_v0 }
  0x40   : > { %729 = vmatpush.bf16.msrb.mxu0 %v1122_v1 }
  0x41   : > { %743 = vmatpush.bf16.msrb.mxu1 %v1130_v2 }
  0x44   : > { %730 = vmatpush.bf16.msrb.mxu0 %v1121_v3 }
  0x45   : > { %744 = vmatpush.bf16.msrb.mxu1 %v1129_v4 }
  0x48   : > { %731 = vmatpush.bf16.msrb.mxu0 %v1120_v5 }
  0x49   : > { %745 = vmatpush.bf16.msrb.mxu1 %v1128_v6 }
  0x4c   : > { %732 = vmatpush.bf16.msrb.mxu0 %v1119_v7 }
  0x4d   : > { %746 = vmatpush.bf16.msrb.mxu1 %v1127_v10 }
  0x4f   : > { %733 = vmatmul.bf16.vlgmr.msrb.gmra.mxu0 %v623_v13 }
  0x50   : > { %747 = vmatmul.bf16.vlgmr.msrb.gmra.mxu1 %v626_v14 }
  0xac   : > { %v442_v15 = vpop.f32.mrf.mxu0 }
  0xad   : > { %v456_v16 = vpop.f32.mrf.mxu1 }
  0xae   : > { %v457_v21 = vadd.f32 %v456_v16, %v442_v15 }
  0xb4   : > { %v444_v17 = vpop.f32.mrf.mxu0  ;;  %v568_v18 = vpop.f32.mrf.mxu2 }
  0xb5   : > { %v458_v19 = vpop.f32.mrf.mxu1  ;;  %v582_v20 = vpop.f32.mrf.mxu3  ;;  %v569_v25 = vadd.f32 %v568_v18, %v457_v21 }
  0xb6   : > { %v459_v24 = vadd.f32 %v458_v19, %v444_v17 }
  0xb7   : > { %v583_v28 = vadd.f32 %v582_v20, %v569_v25 }
  0xbc   : > { %v570_v26 = vpop.f32.mrf.mxu2 }
  0xbd   : > { %v571_v29 = vadd.f32 %v570_v26, %v459_v24  ;;  %v584_v30 = vpop.f32.mrf.mxu3 }
  0xbf   : > { %v585_v35 = vadd.f32 %v584_v30, %v571_v29 }
  0xcc   : > { %v734_v22 = vpop.f32.mrf.mxu0 }
  0xcd   : > { %v748_v23 = vpop.f32.mrf.mxu1 }
  0xce   : > { %v749_v27 = vadd.f32 %v748_v23, %v734_v22 }
  0xd0   : > { %v753_v31 = vadd.f32 %v749_v27, %v583_v28 }
  0xd2   : > { %v759_v37 = vadd.f32 %v1178_v32, %v753_v31 }
  0xd4   : > { %v736_v33 = vpop.f32.mrf.mxu0  ;;  %v761_v40 = vmax.f32 %v759_v37, 0.0 }
  0xd5   : > { %v750_v34 = vpop.f32.mrf.mxu1 }
  0xd6   : > { %v751_v36 = vadd.f32 %v750_v34, %v736_v33 }
  0xd8   : > { %v754_v38 = vadd.f32 %v751_v36, %v585_v35 }
  0xda   : > { %v760_v39 = vadd.f32 %v1178_v32, %v754_v38 }
  0xdc   : > { %v762_v41 = vmax.f32 %v760_v39, 0.0 }
  0xde   : > { %v1138_v42 = vpack.c.bf16 %v762_v41, %v761_v40 }
  0xe0   : > { %1139 = vst [vmem:[%s228_s6] sm:$0xff] %v1138_v42  }
  0xe1 PF: > { %s14_s14 = sadd.s32 1, %s1235_s14   ;;  %s1328_s12 = smov %s1231_s13 }
  0xe2   : > { %p11_p8 = scmp.ge.s32.totalorder %s14_s14, 4   ;;  %s1329_s13 = smov %s1331_s16 }
  0xe4   :  { %13 = sbr.rel (!%p11_p8) target bundleno = 2 (0x2), region = 73 }
  0xe9   :  { %794 = vsyncpa [#allocation3], 1 }
  0xea   :  { %796 = vsyncpa [#allocation3 + $0x1], 1 }

// kernel: encoder_forward.11
= control target key start
LH: loop header
LB: loop body
LE: loop exit
PB: predicated region body
PF: predicated region fallthrough
CT: control target
= control target key end

     0   :  { %8 = vsyncpa [#allocation4], 0  ;;  %s1729_s0 = inlined_call_operand.vmem [shape: bf16[64,128], index: 0, kind: input, shape index: {}]   ;;  %s1730_s1 = inlined_call_operand.hbm [shape: bf16[128,1024], index: 1, kind: input, shape index: {}]   ;;  %s1731_s2 = inlined_call_operand.vmem [shape: f32[1,1024], index: 2, kind: input, shape index: {}]   ;;  %s1732_s3 = inlined_call_operand.vmem [shape: f32[64,1024], index: 3, kind: output, shape index: {}]  }
   0x1   :  { %10 = vsyncpa [#allocation4 + $0x1], 0  ;;  %s1410_s12 = smov 0   ;;  %s1412_s13 = smov 0  }
   0x2   :  { %s1414_s14 = smov 0   ;;  %s1416_s15 = smov 0  }
   0x3   :  { %s1418_s16 = smov 0   ;;  %s1420_s17 = smov 0  }
   0x4 LB: > { %s1048_s18 = sadd.s32 4294967295, %s1385_s17   ;;  %s31_s19 = sadd.s32 1, %s1381_s16  ;;  %s1385_s17 = sphi %s1420_s17, %s16_s17   ;;  %s1381_s16 = sphi %s1418_s16, %s1740_s16   ;;  %s1377_s15 = sphi %s1416_s15, %s1739_s15   ;;  %s1373_s14 = sphi %s1414_s14, %s1738_s14   ;;  %s1369_s13 = sphi %s1412_s13, %s1737_s13   ;;  %s1365_s12 = sphi %s1410_s12, %s1736_s12  }
   0x5   : > { %p33_p0 = scmp.ge.s32.totalorder %s31_s19, 2  ;;  %s72_s20 = sadd.s32 1, %s1373_s14 }
   0x6   : > { %p79_p1 = scmp.ne.s32.totalorder %s1373_s14, %s1369_s13  ;;  %p80_p2 = scmp.eq.s32.totalorder %s1385_s17, 0 }
   0x7   : > { %s1742_s19 = smov (%p33_p0, %s31_s19), 0  ;;  %p85_p4 = scmp.ne.s32.totalorder %s1369_s13, %s1365_s12 }
   0x8   : > { %p1446_p3 = por %p80_p2, %p79_p1  ;;  %s68_s22 = ssub.s32 %s1381_s16, %s1742_s19 }
   0x9   : > { %p86_p5 = scmp.eq.s32.totalorder %s1048_s18, 0  ;;  %p70_p6 = scmp.eq.s32.totalorder %s68_s22, 0 }
   0xa   : > { %p137_p7 = scmp.eq.s32.totalorder %s1048_s18, 1  ;;  %p1253_p10 = scmp.lt.s32.totalorder %s1385_s17, 2 }
   0xb   : > { %p1453_p8 = por %p86_p5, %p85_p4  ;;  %s175_s26 = sand.u32 1, %s1373_s14  }
   0xc   : > { %s1458_s24 = scalar_select %p70_p6, %s1373_s14, %s72_s20  }
   0xd   : > { %p1460_p9 = por %p137_p7, %p79_p1  ;;  %s1209_s27 = sshll.u32 %s1381_s16, 4 }
   0xe   : > { %s1053_s28 = sshll.u32 %s175_s26, 8  ;;  %s187_s4 = scalar_lea.hbm %s1730_s1, %s1209_s27 }
   0xf   : > { %s188_s5 = sshll.u32 %s187_s4, 4  ;;  %s179_s6 = scalar_lea.vmem [#allocation3], %s1053_s28  ;;  %s189_s5 = int_to_ptr.hbm [resolvable:$true] %s188_s5 }
  0x10   : > { %s190_s7 = sshll.u32 %s179_s6, 4  ;;  %p1250_p11 = pnand %p1253_p10, %p1446_p3  ;;  %s191_s7 = int_to_ptr.vmem [resolvable:$true] %s190_s7 }
  0x11   : > { %p1056_p12 = scmp.ge.s32.totalorder %s1385_s17, 1  ;;  %s176_s8 = scalar_lea.sflag [#allocation4], %s175_s26 }
  0x12   : > { %s1387_s9 = smov 512   ;;  %s1388_s10 = smov 256  }
  0x13   : > { %s1389_s11 = smov 16   ;;  %p206_p13 = scmp.lt.s32.totalorder %s1385_s17, 3 }
  0x14   : > { %1252 = dma.hbm_to_vmem [thread:$0]  (!%p1250_p11), %s189_s5, 4096, %s191_s7, %s176_s8, %s1387_s9, %s1388_s10, %s1389_s11  }
  0x15   : > { %p207_p0 = pnand %p1056_p12, %p206_p13 }
  0x16   : > { %s212_s12 = sand.u32 (!%p207_p0), 1, %s1369_s13  }
  0x17   : > { %210 = sbr.rel (%p207_p0) target bundleno = 267 (0x10b), region = 32  ;;  %s1475_s18 = sshll.u32 (!%p207_p0), %s212_s12, 8 }
  0x18   : > { %s213_s20 = scalar_lea.sflag (!%p207_p0), [#allocation4], %s212_s12  ;;  %s1478_s22 = scalar_lea.vmem (!%p207_p0), [#allocation3], %s1475_s18 }
  0x1c   : > { %1360 = dma.done.wait (%p1453_p8), %s213_s20, 4096  }
  0x1d   : > { %1362 = vsyncadd (%p1453_p8), %s213_s20, 4294963200  ;;  %v1190_v0 = vld [vmem:[%s1478_s22 + $0xe0] sm:$0xf]  ;;  %v1244_v1 = vld [vmem:[%s1478_s22 + $0xec] sm:$0xf0]  ;;  %s1059_s5 = sshll.u32 %s1377_s15, 2 }
  0x1e   : > { %v1242_v2 = vld [vmem:[%s1478_s22 + $0xe4] sm:$0xf]  ;;  %v1191_v3 = vor.u32 %v1244_v1, %v1190_v0  ;;  %v1192_v4 = vld [vmem:[%s1478_s22 + $0xf0] sm:$0xf0]  ;;  %v1198_v5 = vld [vmem:[%s1478_s22 + $0xe8] sm:$0xf] }
  0x1f   : > { %v1245_v6 = vld [vmem:[%s1478_s22 + $0xf4] sm:$0xf0]  ;;  %v1195_v7 = vor.u32 %v1242_v2, %v1192_v4  ;;  %v1243_v9 = vld [vmem:[%s1478_s22 + $0xec] sm:$0xf]  ;;  %v1200_v10 = vld [vmem:[%s1478_s22 + $0xf8] sm:$0xf0] }
  0x20   : > { %v1199_v8 = vor.u32 %v1245_v6, %v1198_v5  ;;  %v1174_v11 = vld [vmem:[%s1478_s22 + $0xc0] sm:$0xf]  ;;  %561 = vmatpush.bf16.msra.mxu0 %v1191_v3  ;;  %v1203_v12 = vor.u32 %v1243_v9, %v1200_v10  ;;  %v1240_v13 = vld [vmem:[%s1478_s22 + $0xcc] sm:$0xf0]  ;;  %v1238_v14 = vld [vmem:[%s1478_s22 + $0xc4] sm:$0xf] }
  0x21   : > { %v1176_v15 = vld [vmem:[%s1478_s22 + $0xd0] sm:$0xf0]  ;;  %590 = vmatpush.bf16.msra.mxu1 %v1195_v7  ;;  %v1175_v16 = vor.u32 %v1240_v13, %v1174_v11  ;;  %v1182_v18 = vld [vmem:[%s1478_s22 + $0xc8] sm:$0xf]  ;;  %v1241_v19 = vld [vmem:[%s1478_s22 + $0xd4] sm:$0xf0] }
  0x22   : > { %619 = vmatpush.bf16.msra.mxu2 %v1199_v8  ;;  %v1179_v17 = vor.u32 %v1238_v14, %v1176_v15  ;;  %v1239_v20 = vld [vmem:[%s1478_s22 + $0xcc] sm:$0xf]  ;;  %648 = vmatpush.bf16.msra.mxu3 %v1203_v12  ;;  %v1183_v21 = vor.u32 %v1241_v19, %v1182_v18  ;;  %v1184_v22 = vld [vmem:[%s1478_s22 + $0xd8] sm:$0xf0]  ;;  %v1158_v23 = vld [vmem:[%s1478_s22 + $0xa0] sm:$0xf] }
  0x23   : > { %v1236_v24 = vld [vmem:[%s1478_s22 + $0xac] sm:$0xf0]  ;;  %v1187_v25 = vor.u32 %v1239_v20, %v1184_v22  ;;  %v1234_v26 = vld [vmem:[%s1478_s22 + $0xa4] sm:$0xf]  ;;  %v1160_v27 = vld [vmem:[%s1478_s22 + $0xb0] sm:$0xf0] }
  0x24   : > { %v1166_v28 = vld [vmem:[%s1478_s22 + $0xa8] sm:$0xf]  ;;  %562 = vmatpush.bf16.msra.mxu0 %v1175_v16  ;;  %v1159_v29 = vor.u32 %v1236_v24, %v1158_v23  ;;  %v1237_v30 = vld [vmem:[%s1478_s22 + $0xb4] sm:$0xf0]  ;;  %v1235_v31 = vld [vmem:[%s1478_s22 + $0xac] sm:$0xf]  ;;  %v1163_v33 = vor.u32 %v1234_v26, %v1160_v27 }
  0x25   : > { %v1168_v32 = vld [vmem:[%s1478_s22 + $0xb8] sm:$0xf0]  ;;  %591 = vmatpush.bf16.msra.mxu1 %v1179_v17  ;;  %v1167_v34 = vor.u32 %v1237_v30, %v1166_v28  ;;  %v1142_v35 = vld [vmem:[%s1478_s22 + $0x80] sm:$0xf]  ;;  %v1232_v36 = vld [vmem:[%s1478_s22 + $0x8c] sm:$0xf0] }
  0x26   : > { %620 = vmatpush.bf16.msra.mxu2 %v1183_v21  ;;  %v1230_v37 = vld [vmem:[%s1478_s22 + $0x84] sm:$0xf]  ;;  %649 = vmatpush.bf16.msra.mxu3 %v1187_v25  ;;  %v1171_v38 = vor.u32 %v1235_v31, %v1168_v32  ;;  %v1144_v39 = vld [vmem:[%s1478_s22 + $0x90] sm:$0xf0]  ;;  %v1150_v40 = vld [vmem:[%s1478_s22 + $0x88] sm:$0xf]  ;;  %v1143_v44 = vor.u32 %v1232_v36, %v1142_v35 }
  0x27   : > { %v1233_v41 = vld [vmem:[%s1478_s22 + $0x94] sm:$0xf0]  ;;  %v1231_v42 = vld [vmem:[%s1478_s22 + $0x8c] sm:$0xf]  ;;  %v1152_v43 = vld [vmem:[%s1478_s22 + $0x98] sm:$0xf0]  ;;  %v1147_v45 = vor.u32 %v1230_v37, %v1144_v39 }
  0x28   : > { %563 = vmatpush.bf16.msra.mxu0 %v1159_v29  ;;  %v1151_v46 = vor.u32 %v1233_v41, %v1150_v40  ;;  %v1126_v47 = vld [vmem:[%s1478_s22 + $0x60] sm:$0xf]  ;;  %v1228_v48 = vld [vmem:[%s1478_s22 + $0x6c] sm:$0xf0]  ;;  %v1226_v49 = vld [vmem:[%s1478_s22 + $0x64] sm:$0xf]  ;;  %v1155_v50 = vor.u32 %v1231_v42, %v1152_v43 }
  0x29   : > { %592 = vmatpush.bf16.msra.mxu1 %v1163_v33  ;;  %v1128_v51 = vld [vmem:[%s1478_s22 + $0x70] sm:$0xf0]  ;;  %v1134_v52 = vld [vmem:[%s1478_s22 + $0x68] sm:$0xf]  ;;  %v1229_v53 = vld [vmem:[%s1478_s22 + $0x74] sm:$0xf0]  ;;  %v1127_v56 = vor.u32 %v1228_v48, %v1126_v47 }
  0x2a   : > { %621 = vmatpush.bf16.msra.mxu2 %v1167_v34  ;;  %650 = vmatpush.bf16.msra.mxu3 %v1171_v38  ;;  %v1227_v54 = vld [vmem:[%s1478_s22 + $0x6c] sm:$0xf]  ;;  %v1136_v55 = vld [vmem:[%s1478_s22 + $0x78] sm:$0xf0]  ;;  %v1131_v57 = vor.u32 %v1226_v49, %v1128_v51  ;;  %v1135_v58 = vor.u32 %v1229_v53, %v1134_v52  ;;  %v1110_v59 = vld [vmem:[%s1478_s22 + $0x40] sm:$0xf] }
  0x2b   : > { %v1224_v60 = vld [vmem:[%s1478_s22 + $0x4c] sm:$0xf0]  ;;  %v1222_v61 = vld [vmem:[%s1478_s22 + $0x44] sm:$0xf]  ;;  %v1139_v62 = vor.u32 %v1227_v54, %v1136_v55  ;;  %v1112_v63 = vld [vmem:[%s1478_s22 + $0x50] sm:$0xf0] }
  0x2c   : > { %564 = vmatpush.bf16.msra.mxu0 %v1143_v44  ;;  %v1118_v0 = vld [vmem:[%s1478_s22 + $0x48] sm:$0xf]  ;;  %v1225_v1 = vld [vmem:[%s1478_s22 + $0x54] sm:$0xf0]  ;;  %v1223_v2 = vld [vmem:[%s1478_s22 + $0x4c] sm:$0xf]  ;;  %v1111_v4 = vor.u32 %v1224_v60, %v1110_v59  ;;  %v1115_v5 = vor.u32 %v1222_v61, %v1112_v63 }
  0x2d   : > { %593 = vmatpush.bf16.msra.mxu1 %v1147_v45  ;;  %v1120_v3 = vld [vmem:[%s1478_s22 + $0x58] sm:$0xf0]  ;;  %v1119_v6 = vor.u32 %v1225_v1, %v1118_v0  ;;  %v1094_v7 = vld [vmem:[%s1478_s22 + $0x20] sm:$0xf]  ;;  %v1220_v8 = vld [vmem:[%s1478_s22 + $0x2c] sm:$0xf0] }
  0x2e   : > { %622 = vmatpush.bf16.msra.mxu2 %v1151_v46  ;;  %651 = vmatpush.bf16.msra.mxu3 %v1155_v50  ;;  %v1218_v9 = vld [vmem:[%s1478_s22 + $0x24] sm:$0xf]  ;;  %v1123_v10 = vor.u32 %v1223_v2, %v1120_v3  ;;  %v1096_v11 = vld [vmem:[%s1478_s22 + $0x30] sm:$0xf0]  ;;  %v1102_v12 = vld [vmem:[%s1478_s22 + $0x28] sm:$0xf]  ;;  %v1095_v16 = vor.u32 %v1220_v8, %v1094_v7 }
  0x2f   : > { %v1221_v13 = vld [vmem:[%s1478_s22 + $0x34] sm:$0xf0]  ;;  %v1219_v14 = vld [vmem:[%s1478_s22 + $0x2c] sm:$0xf]  ;;  %v1104_v15 = vld [vmem:[%s1478_s22 + $0x38] sm:$0xf0]  ;;  %v1099_v17 = vor.u32 %v1218_v9, %v1096_v11 }
  0x30   : > { %565 = vmatpush.bf16.msra.mxu0 %v1127_v56  ;;  %v1103_v18 = vor.u32 %v1221_v13, %v1102_v12  ;;  %v1078_v19 = vld [vmem:[%s1478_s22] sm:$0xf]  ;;  %v1216_v20 = vld [vmem:[%s1478_s22 + $0xc] sm:$0xf0]  ;;  %v1214_v21 = vld [vmem:[%s1478_s22 + $0x4] sm:$0xf]  ;;  %v1107_v22 = vor.u32 %v1219_v14, %v1104_v15 }
  0x31   : > { %594 = vmatpush.bf16.msra.mxu1 %v1131_v57  ;;  %v1080_v23 = vld [vmem:[%s1478_s22 + $0x10] sm:$0xf0]  ;;  %v1086_v24 = vld [vmem:[%s1478_s22 + $0x8] sm:$0xf]  ;;  %v1217_v25 = vld [vmem:[%s1478_s22 + $0x14] sm:$0xf0]  ;;  %v1079_v28 = vor.u32 %v1216_v20, %v1078_v19 }
  0x32   : > { %623 = vmatpush.bf16.msra.mxu2 %v1135_v58  ;;  %652 = vmatpush.bf16.msra.mxu3 %v1139_v62  ;;  %v1215_v26 = vld [vmem:[%s1478_s22 + $0xc] sm:$0xf]  ;;  %v1088_v27 = vld [vmem:[%s1478_s22 + $0x18] sm:$0xf0]  ;;  %v1083_v29 = vor.u32 %v1214_v21, %v1080_v23  ;;  %v1087_v30 = vor.u32 %v1217_v25, %v1086_v24  ;;  %v1210_v32 = vld [vmem:[%s1729_s0] sm:$0xff]  ;;  %p263_p1 = scmp.lt.s32.totalorder %s1059_s5, 7 }
  0x33   : > { %v1091_v31 = vor.u32 %v1215_v26, %v1088_v27  ;;  %v1211_v33 = vld [vmem:[%s1729_s0 + $0x8] sm:$0xff]  ;;  %v1212_v34 = vld [vmem:[%s1729_s0 + $0x10] sm:$0xff]  ;;  %v1213_v35 = vld [vmem:[%s1729_s0 + $0x18] sm:$0xff]  ;;  %s1571_s9 = scalar_lea.vmem [#allocation5], %s1475_s18  ;;  %s1246_s10 = sshll.u32 (%p1460_p9), %s1377_s15, 5 }
  0x34   : > { %566 = vmatpush.bf16.msra.mxu0 %v1111_v4  ;;  %s1744_s5 = smov (!%p263_p1, %s1059_s5), 7  ;;  %s1647_s18 = scalar_lea.vmem (%p1460_p9), %s1732_s3, %s1246_s10 }
  0x35   : > { %595 = vmatpush.bf16.msra.mxu1 %v1115_v5  ;;  %s265_s8 = scalar_lea.vmem %s1731_s2, %s1744_s5 }
  0x36   : > { %624 = vmatpush.bf16.msra.mxu2 %v1119_v6  ;;  %653 = vmatpush.bf16.msra.mxu3 %v1123_v10  ;;  %v776_v36 = vld [vmem:[%s265_s8] sm:$0xf] }
  0x37   : > { %v1564_v37 = vperm.slane %v776_v36, 0  ;;  %v1566_v38 = vperm.slane %v776_v36, 1  ;;  %v1575_v43 = vperm.slane %v776_v36, 2  ;;  %v1577_v44 = vperm.slane %v776_v36, 3 }
  0x38   : > { %567 = vmatpush.bf16.msra.mxu0 %v1095_v16 }
  0x39   : > { %596 = vmatpush.bf16.msra.mxu1 %v1099_v17 }
  0x3a   : > { %625 = vmatpush.bf16.msra.mxu2 %v1103_v18  ;;  %654 = vmatpush.bf16.msra.mxu3 %v1107_v22 }
  0x3c   : > { %568 = vmatpush.bf16.msra.mxu0 %v1079_v28 }
  0x3d   : > { %597 = vmatpush.bf16.msra.mxu1 %v1083_v29 }
  0x3e   : > { %626 = vmatpush.bf16.msra.mxu2 %v1087_v30  ;;  %655 = vmatpush.bf16.msra.mxu3 %v1091_v31 }
  0x3f   : > { %569 = vmatmul.bf16.vlgmr.msra.gmra.mxu0 %v1210_v32 }
  0x40   : > { %598 = vmatmul.bf16.vlgmr.msra.gmra.mxu1 %v1210_v32 }
  0x41   : > { %627 = vmatmul.bf16.vlgmr.msra.gmra.mxu2 %v1210_v32  ;;  %656 = vmatmul.bf16.vlgmr.msra.gmra.mxu3 %v1210_v32 }
  0x4f   : > { %574 = vmatmul.bf16.gmra.mxu0 %v1211_v33 }
  0x50   : > { %603 = vmatmul.bf16.gmra.mxu1 %v1211_v33 }
  0x51   : > { %632 = vmatmul.bf16.gmra.mxu2 %v1211_v33  ;;  %661 = vmatmul.bf16.gmra.mxu3 %v1211_v33 }
  0x5f   : > { %579 = vmatmul.bf16.gmra.mxu0 %v1212_v34 }
  0x60   : > { %608 = vmatmul.bf16.gmra.mxu1 %v1212_v34 }
  0x61   : > { %637 = vmatmul.bf16.gmra.mxu2 %v1212_v34  ;;  %666 = vmatmul.bf16.gmra.mxu3 %v1212_v34 }
  0x6f   : > { %584 = vmatmul.bf16.gmra.mxu0 %v1213_v35 }
  0x70   : > { %613 = vmatmul.bf16.gmra.mxu1 %v1213_v35 }
  0x71   : > { %642 = vmatmul.bf16.gmra.mxu2 %v1213_v35  ;;  %671 = vmatmul.bf16.gmra.mxu3 %v1213_v35 }
  0xbc   : > { %v570_v39 = vpop.f32.mrf.mxu0 }
  0xbd   : > { %v786_v40 = vadd.f32 %v1564_v37, %v570_v39  ;;  %v599_v41 = vpop.f32.mrf.mxu1 }
  0xbe   : > { %v787_v42 = vadd.f32 %v1566_v38, %v599_v41 }
  0xbf   : > { %818 = vst [vmem:[%s1571_s9] sm:$0xff] %v786_v40 }
  0xc0   : > { %819 = vst [vmem:[%s1571_s9 + $0x8] sm:$0xff] %v787_v42 }
  0xc4   : > { %v628_v45 = vpop.f32.mrf.mxu2  ;;  %v657_v47 = vpop.f32.mrf.mxu3 }
  0xc5   : > { %v788_v46 = vadd.f32 %v1575_v43, %v628_v45  ;;  %v572_v48 = vpop.f32.mrf.mxu0  ;;  %v789_v49 = vadd.f32 %v1577_v44, %v657_v47  ;;  %v601_v51 = vpop.f32.mrf.mxu1 }
  0xc6   : > { %v790_v50 = vadd.f32 %v1564_v37, %v572_v48  ;;  %v791_v52 = vadd.f32 %v1566_v38, %v601_v51 }
  0xc7   : > { %820 = vst [vmem:[%s1571_s9 + $0x10] sm:$0xff] %v788_v46 }
  0xc8   : > { %821 = vst [vmem:[%s1571_s9 + $0x18] sm:$0xff] %v789_v49 }
  0xc9   : > { %822 = vst [vmem:[%s1571_s9 + $0x20] sm:$0xff] %v790_v50 }
  0xca   : > { %823 = vst [vmem:[%s1571_s9 + $0x28] sm:$0xff] %v791_v52 }
  0xcc   : > { %v630_v53 = vpop.f32.mrf.mxu2  ;;  %v659_v55 = vpop.f32.mrf.mxu3 }
  0xcd   : > { %v792_v54 = vadd.f32 %v1575_v43, %v630_v53  ;;  %v575_v56 = vpop.f32.mrf.mxu0  ;;  %v793_v57 = vadd.f32 %v1577_v44, %v659_v55  ;;  %v604_v59 = vpop.f32.mrf.mxu1 }
  0xce   : > { %v794_v58 = vadd.f32 %v1564_v37, %v575_v56  ;;  %v795_v60 = vadd.f32 %v1566_v38, %v604_v59 }
  0xcf   : > { %824 = vst [vmem:[%s1571_s9 + $0x30] sm:$0xff] %v792_v54 }
  0xd0   : > { %825 = vst [vmem:[%s1571_s9 + $0x38] sm:$0xff] %v793_v57  ;;  %v883_v45 = vld [vmem:[%s1571_s9 + $0x20] sm:$0xff] (%p1460_p9) }
  0xd1   : > { %826 = vst [vmem:[%s1571_s9 + $0x40] sm:$0xff] %v794_v58  ;;  %v885_v46 = vld [vmem:[%s1571_s9 + $0x28] sm:$0xff] (%p1460_p9) }
  0xd2   : > { %827 = vst [vmem:[%s1571_s9 + $0x48] sm:$0xff] %v795_v60 }
  0xd3   : > { %884 = vst [vmem:[%s1647_s18 + $0x40] sm:$0xff] (%p1460_p9), %v883_v45 }
  0xd4   : > { %v633_v61 = vpop.f32.mrf.mxu2  ;;  %v662_v63 = vpop.f32.mrf.mxu3  ;;  %886 = vst [vmem:[%s1647_s18 + $0x48] sm:$0xff] (%p1460_p9), %v885_v46 }
  0xd5   : > { %v796_v62 = vadd.f32 %v1575_v43, %v633_v61  ;;  %v577_v0 = vpop.f32.mrf.mxu0  ;;  %v797_v1 = vadd.f32 %v1577_v44, %v662_v63  ;;  %v606_v3 = vpop.f32.mrf.mxu1 }
  0xd6   : > { %v798_v2 = vadd.f32 %v1564_v37, %v577_v0  ;;  %v799_v4 = vadd.f32 %v1566_v38, %v606_v3  ;;  %v887_v47 = vld [vmem:[%s1571_s9 + $0x30] sm:$0xff] (%p1460_p9) }
  0xd7   : > { %828 = vst [vmem:[%s1571_s9 + $0x50] sm:$0xff] %v796_v62  ;;  %v889_v48 = vld [vmem:[%s1571_s9 + $0x38] sm:$0xff] (%p1460_p9) }
  0xd8   : > { %829 = vst [vmem:[%s1571_s9 + $0x58] sm:$0xff] %v797_v1  ;;  %v891_v49 = vld [vmem:[%s1571_s9 + $0x40] sm:$0xff] (%p1460_p9) }
  0xd9   : > { %830 = vst [vmem:[%s1571_s9 + $0x60] sm:$0xff] %v798_v2  ;;  %v893_v50 = vld [vmem:[%s1571_s9 + $0x48] sm:$0xff] (%p1460_p9) }
  0xda   : > { %831 = vst [vmem:[%s1571_s9 + $0x68] sm:$0xff] %v799_v4 }
  0xdb   : > { %888 = vst [vmem:[%s1647_s18 + $0x50] sm:$0xff] (%p1460_p9), %v887_v47 }
  0xdc   : > { %v635_v5 = vpop.f32.mrf.mxu2  ;;  %v664_v7 = vpop.f32.mrf.mxu3  ;;  %890 = vst [vmem:[%s1647_s18 + $0x58] sm:$0xff] (%p1460_p9), %v889_v48 }
  0xdd   : > { %v800_v6 = vadd.f32 %v1575_v43, %v635_v5  ;;  %v580_v8 = vpop.f32.mrf.mxu0  ;;  %v801_v9 = vadd.f32 %v1577_v44, %v664_v7  ;;  %v609_v11 = vpop.f32.mrf.mxu1  ;;  %892 = vst [vmem:[%s1647_s18 + $0x80] sm:$0xff] (%p1460_p9), %v891_v49 }
  0xde   : > { %v802_v10 = vadd.f32 %v1564_v37, %v580_v8  ;;  %v803_v12 = vadd.f32 %v1566_v38, %v609_v11  ;;  %v895_v51 = vld [vmem:[%s1571_s9 + $0x50] sm:$0xff] (%p1460_p9)  ;;  %894 = vst [vmem:[%s1647_s18 + $0x88] sm:$0xff] (%p1460_p9), %v893_v50 }
  0xdf   : > { %832 = vst [vmem:[%s1571_s9 + $0x70] sm:$0xff] %v800_v6  ;;  %v897_v52 = vld [vmem:[%s1571_s9 + $0x58] sm:$0xff] (%p1460_p9) }
  0xe0   : > { %833 = vst [vmem:[%s1571_s9 + $0x78] sm:$0xff] %v801_v9  ;;  %v899_v53 = vld [vmem:[%s1571_s9 + $0x60] sm:$0xff] (%p1460_p9) }
  0xe1   : > { %834 = vst [vmem:[%s1571_s9 + $0x80] sm:$0xff] %v802_v10  ;;  %v901_v54 = vld [vmem:[%s1571_s9 + $0x68] sm:$0xff] (%p1460_p9) }
  0xe2   : > { %835 = vst [vmem:[%s1571_s9 + $0x88] sm:$0xff] %v803_v12 }
  0xe3   : > { %896 = vst [vmem:[%s1647_s18 + $0x90] sm:$0xff] (%p1460_p9), %v895_v51 }
  0xe4   : > { %v638_v13 = vpop.f32.mrf.mxu2  ;;  %v667_v15 = vpop.f32.mrf.mxu3  ;;  %898 = vst [vmem:[%s1647_s18 + $0x98] sm:$0xff] (%p1460_p9), %v897_v52 }
  0xe5   : > { %v804_v14 = vadd.f32 %v1575_v43, %v638_v13  ;;  %v582_v16 = vpop.f32.mrf.mxu0  ;;  %v805_v17 = vadd.f32 %v1577_v44, %v667_v15  ;;  %v611_v19 = vpop.f32.mrf.mxu1  ;;  %900 = vst [vmem:[%s1647_s18 + $0xc0] sm:$0xff] (%p1460_p9), %v899_v53 }
  0xe6   : > { %v806_v18 = vadd.f32 %v1564_v37, %v582_v16  ;;  %v807_v20 = vadd.f32 %v1566_v38, %v611_v19  ;;  %v903_v55 = vld [vmem:[%s1571_s9 + $0x70] sm:$0xff] (%p1460_p9)  ;;  %902 = vst [vmem:[%s1647_s18 + $0xc8] sm:$0xff] (%p1460_p9), %v901_v54 }
  0xe7   : > { %836 = vst [vmem:[%s1571_s9 + $0x90] sm:$0xff] %v804_v14  ;;  %v905_v56 = vld [vmem:[%s1571_s9 + $0x78] sm:$0xff] (%p1460_p9) }
  0xe8   : > { %837 = vst [vmem:[%s1571_s9 + $0x98] sm:$0xff] %v805_v17  ;;  %v907_v57 = vld [vmem:[%s1571_s9 + $0x80] sm:$0xff] (%p1460_p9) }
  0xe9   : > { %838 = vst [vmem:[%s1571_s9 + $0xa0] sm:$0xff] %v806_v18  ;;  %v909_v58 = vld [vmem:[%s1571_s9 + $0x88] sm:$0xff] (%p1460_p9) }
  0xea   : > { %839 = vst [vmem:[%s1571_s9 + $0xa8] sm:$0xff] %v807_v20 }
  0xeb   : > { %904 = vst [vmem:[%s1647_s18 + $0xd0] sm:$0xff] (%p1460_p9), %v903_v55 }
  0xec   : > { %v640_v21 = vpop.f32.mrf.mxu2  ;;  %v669_v23 = vpop.f32.mrf.mxu3  ;;  %906 = vst [vmem:[%s1647_s18 + $0xd8] sm:$0xff] (%p1460_p9), %v905_v56 }
  0xed   : > { %v808_v22 = vadd.f32 %v1575_v43, %v640_v21  ;;  %v585_v24 = vpop.f32.mrf.mxu0  ;;  %v809_v25 = vadd.f32 %v1577_v44, %v669_v23  ;;  %v614_v27 = vpop.f32.mrf.mxu1  ;;  %908 = vst [vmem:[%s1647_s18 + $0x100] sm:$0xff] (%p1460_p9), %v907_v57 }
  0xee   : > { %v810_v26 = vadd.f32 %v1564_v37, %v585_v24  ;;  %v811_v28 = vadd.f32 %v1566_v38, %v614_v27  ;;  %v911_v59 = vld [vmem:[%s1571_s9 + $0x90] sm:$0xff] (%p1460_p9)  ;;  %910 = vst [vmem:[%s1647_s18 + $0x108] sm:$0xff] (%p1460_p9), %v909_v58 }
  0xef   : > { %840 = vst [vmem:[%s1571_s9 + $0xb0] sm:$0xff] %v808_v22  ;;  %v913_v60 = vld [vmem:[%s1571_s9 + $0x98] sm:$0xff] (%p1460_p9) }
  0xf0   : > { %841 = vst [vmem:[%s1571_s9 + $0xb8] sm:$0xff] %v809_v25  ;;  %v915_v61 = vld [vmem:[%s1571_s9 + $0xa0] sm:$0xff] (%p1460_p9) }
  0xf1   : > { %842 = vst [vmem:[%s1571_s9 + $0xc0] sm:$0xff] %v810_v26  ;;  %v917_v62 = vld [vmem:[%s1571_s9 + $0xa8] sm:$0xff] (%p1460_p9) }
  0xf2   : > { %843 = vst [vmem:[%s1571_s9 + $0xc8] sm:$0xff] %v811_v28 }
  0xf3   : > { %912 = vst [vmem:[%s1647_s18 + $0x110] sm:$0xff] (%p1460_p9), %v911_v59 }
  0xf4   : > { %v643_v29 = vpop.f32.mrf.mxu2  ;;  %v672_v31 = vpop.f32.mrf.mxu3  ;;  %914 = vst [vmem:[%s1647_s18 + $0x118] sm:$0xff] (%p1460_p9), %v913_v60 }
  0xf5   : > { %v812_v30 = vadd.f32 %v1575_v43, %v643_v29  ;;  %v587_v32 = vpop.f32.mrf.mxu0  ;;  %v813_v33 = vadd.f32 %v1577_v44, %v672_v31  ;;  %v616_v35 = vpop.f32.mrf.mxu1  ;;  %916 = vst [vmem:[%s1647_s18 + $0x140] sm:$0xff] (%p1460_p9), %v915_v61 }
  0xf6   : > { %v814_v34 = vadd.f32 %v1564_v37, %v587_v32  ;;  %v815_v36 = vadd.f32 %v1566_v38, %v616_v35  ;;  %v875_v37 = vld [vmem:[%s1571_s9] sm:$0xff] (%p1460_p9)  ;;  %v877_v38 = vld [vmem:[%s1571_s9 + $0x8] sm:$0xff] (%p1460_p9)  ;;  %v919_v63 = vld [vmem:[%s1571_s9 + $0xb0] sm:$0xff] (%p1460_p9)  ;;  %918 = vst [vmem:[%s1647_s18 + $0x148] sm:$0xff] (%p1460_p9), %v917_v62 }
  0xf7   : > { %844 = vst [vmem:[%s1571_s9 + $0xd0] sm:$0xff] %v812_v30  ;;  %v921_v0 = vld [vmem:[%s1571_s9 + $0xb8] sm:$0xff] (%p1460_p9) }
  0xf8   : > { %845 = vst [vmem:[%s1571_s9 + $0xd8] sm:$0xff] %v813_v33  ;;  %v923_v1 = vld [vmem:[%s1571_s9 + $0xc0] sm:$0xff] (%p1460_p9) }
  0xf9   : > { %846 = vst [vmem:[%s1571_s9 + $0xe0] sm:$0xff] %v814_v34  ;;  %v925_v2 = vld [vmem:[%s1571_s9 + $0xc8] sm:$0xff] (%p1460_p9) }
  0xfa   : > { %847 = vst [vmem:[%s1571_s9 + $0xe8] sm:$0xff] %v815_v36 }
  0xfb   : > { %876 = vst [vmem:[%s1647_s18] sm:$0xff] (%p1460_p9), %v875_v37 }
  0xfc   : > { %v645_v39 = vpop.f32.mrf.mxu2  ;;  %v674_v41 = vpop.f32.mrf.mxu3  ;;  %856 = sbr.rel (!%p1460_p9) target bundleno = 267 (0x10b), region = 48  ;;  %878 = vst [vmem:[%s1647_s18 + $0x8] sm:$0xff] (%p1460_p9), %v877_v38 }
  0xfd   : > { %v816_v40 = vadd.f32 %v1575_v43, %v645_v39  ;;  %v817_v42 = vadd.f32 %v1577_v44, %v674_v41  ;;  %v879_v43 = vld [vmem:[%s1571_s9 + $0x10] sm:$0xff] (%p1460_p9)  ;;  %v881_v44 = vld [vmem:[%s1571_s9 + $0x18] sm:$0xff] (%p1460_p9)  ;;  %920 = vst [vmem:[%s1647_s18 + $0x150] sm:$0xff] (%p1460_p9), %v919_v63 }
  0xfe   : > { %880 = vst [vmem:[%s1647_s18 + $0x10] sm:$0xff] (%p1460_p9), %v879_v43  ;;  %v927_v3 = vld [vmem:[%s1571_s9 + $0xd0] sm:$0xff] (%p1460_p9) }
  0xff   : > { %848 = vst [vmem:[%s1571_s9 + $0xf0] sm:$0xff] %v816_v40  ;;  %v929_v4 = vld [vmem:[%s1571_s9 + $0xd8] sm:$0xff] (%p1460_p9) }
 0x100   : > { %849 = vst [vmem:[%s1571_s9 + $0xf8] sm:$0xff] %v817_v42  ;;  %v931_v5 = vld [vmem:[%s1571_s9 + $0xe0] sm:$0xff] (%p1460_p9) }
 0x101   : > { %882 = vst [vmem:[%s1647_s18 + $0x18] sm:$0xff] %v881_v44  ;;  %v933_v6 = vld [vmem:[%s1571_s9 + $0xe8] sm:$0xff] }
 0x102   : > { %922 = vst [vmem:[%s1647_s18 + $0x158] sm:$0xff] %v921_v0 }
 0x103   : > { %924 = vst [vmem:[%s1647_s18 + $0x180] sm:$0xff] %v923_v1 }
 0x104   : > { %926 = vst [vmem:[%s1647_s18 + $0x188] sm:$0xff] %v925_v2 }
 0x105   : > { %928 = vst [vmem:[%s1647_s18 + $0x190] sm:$0xff] %v927_v3 }
 0x106   : > { %930 = vst [vmem:[%s1647_s18 + $0x198] sm:$0xff] %v929_v4  ;;  %v935_v7 = vld [vmem:[%s1571_s9 + $0xf0] sm:$0xff] }
 0x107   : > { %932 = vst [vmem:[%s1647_s18 + $0x1c0] sm:$0xff] %v931_v5  ;;  %v937_v8 = vld [vmem:[%s1571_s9 + $0xf8] sm:$0xff] }
 0x108   : > { %934 = vst [vmem:[%s1647_s18 + $0x1c8] sm:$0xff] %v933_v6 }
 0x109   : > { %936 = vst [vmem:[%s1647_s18 + $0x1d0] sm:$0xff] %v935_v7 }
 0x10a   : > { %938 = vst [vmem:[%s1647_s18 + $0x1d8] sm:$0xff] %v937_v8 }
 0x10b PF: > { %s16_s17 = sadd.s32 1, %s1385_s17   ;;  %s1736_s12 = smov %s1369_s13 }
 0x10c   : > { %p13_p2 = scmp.ge.s32.totalorder %s16_s17, 4   ;;  %s1737_s13 = smov %s1373_s14 }
 0x10d   : > { %s1738_s14 = smov %s1458_s24  ;;  %s1739_s15 = smov %s1381_s16 }
 0x10e   : > { %s1740_s16 = smov %s1742_s19  ;;  %15 = sbr.rel (!%p13_p2) target bundleno = 4 (0x4), region = 109 }
 0x113   :  { %954 = vsyncpa [#allocation4], 1 }
 0x114   :  { %956 = vsyncpa [#allocation4 + $0x1], 1 }

// kernel: encoder_forward.10
= control target key start
LH: loop header
LB: loop body
LE: loop exit
PB: predicated region body
PF: predicated region fallthrough
CT: control target
= control target key end

     0   :  { %8 = vsyncpa [#allocation3], 0  ;;  %s1205_s12 = smov 0   ;;  %s1207_s13 = smov 0   ;;  %s1269_s0 = inlined_call_operand.vmem [shape: bf16[2,10,256], index: 0, kind: input, shape index: {}]   ;;  %s1270_s1 = inlined_call_operand.hbm [shape: bf16[3,256,128], index: 1, kind: input, shape index: {}]   ;;  %s1271_s2 = inlined_call_operand.vmem [shape: f32[1,128], index: 2, kind: input, shape index: {}]   ;;  %s1272_s3 = inlined_call_operand.vmem [shape: bf16[2,8,128], index: 3, kind: output, shape index: {}]  }
   0x1   :  { %s1209_s14 = smov 0  }
   0x2 LB: > { %s832_s15 = sadd.s32 4294967295, %s1180_s14   ;;  %s26_s16 = sadd.s32 1, %s1176_s13  ;;  %s1180_s14 = sphi %s1209_s14, %s14_s14   ;;  %s1176_s13 = sphi %s1207_s13, %s1274_s13   ;;  %s1172_s12 = sphi %s1205_s12, %s1273_s12  }
   0x3   : > { %p28_p0 = scmp.ge.s32.totalorder %s26_s16, 2  ;;  %p834_p1 = scmp.ge.s32.totalorder %s1180_s14, 1 }
   0x4   : > { %p137_p2 = scmp.lt.s32.totalorder %s1180_s14, 3  ;;  %p1094_p4 = scmp.eq.s32.totalorder %s832_s15, 0 }
   0x5   : > { %s1276_s16 = smov (%p28_p0, %s26_s16), 0  ;;  %s150_s19 = sshll.u32 %s1270_s1, 4  ;;  %s151_s19 = int_to_ptr.hbm [resolvable:$true] %s150_s19 }
   0x6   : > { %p138_p3 = pnand %p834_p1, %p137_p2  ;;  %s1182_s20 = smov [#allocation2]  }
   0x7   : > { %s152_s21 = sshll.u32 %s1182_s20, 4  ;;  %s1183_s22 = smov 64   ;;  %s153_s21 = int_to_ptr.vmem [resolvable:$true] %s152_s21 }
   0x8   : > { %p1090_p5 = pneg %p138_p3  ;;  %s1184_s23 = smov 4  }
   0x9   : > { %182 = sbr.rel (%p138_p3) target bundleno = 217 (0xd9), region = 32 }
   0xa   : > { %p1091_p6 = pnand %p1094_p4, %p1090_p5 }
   0xc   : > { %1093 = dma.hbm_to_vmem [thread:$0]  (!%p1091_p6), %s151_s19, 6144, %s153_s21, [#allocation3], %s1183_s22, %s1183_s22, %s1184_s23  }
   0xe   : > { %1167 = dma.done.wait (%p1094_p4), [#allocation3], 6144  }
   0xf   : > { %1169 = vsyncadd (%p1094_p4), [#allocation3], 4294961152  ;;  %p212_p7 = scmp.lt.s32.totalorder %s1172_s12, 1  ;;  %v1061_v0 = vld [vmem:[#allocation2 + $0xb8] sm:$0xff]  ;;  %v1060_v2 = vld [vmem:[#allocation2 + $0xb0] sm:$0xff] }
  0x10   : > { %v1069_v1 = vld [vmem:[#allocation2 + $0xf8] sm:$0xff]  ;;  %414 = vmatpush.bf16.msra.mxu0 %v1061_v0  ;;  %v1068_v3 = vld [vmem:[#allocation2 + $0xf0] sm:$0xff]  ;;  %v1059_v8 = vld [vmem:[#allocation2 + $0xa8] sm:$0xff] }
  0x11   : > { %s1278_s12 = smov (!%p212_p7, %s1172_s12), 1  ;;  %427 = vmatpush.bf16.msra.mxu1 %v1069_v1  ;;  %v1045_v4 = vld [vmem:[#allocation2 + $0x38] sm:$0xff]  ;;  %v1044_v6 = vld [vmem:[#allocation2 + $0x30] sm:$0xff]  ;;  %v1067_v9 = vld [vmem:[#allocation2 + $0xe8] sm:$0xff] }
  0x12   : > { %v1053_v5 = vld [vmem:[#allocation2 + $0x78] sm:$0xff]  ;;  %540 = vmatpush.bf16.msra.mxu2 %v1045_v4  ;;  %v1052_v7 = vld [vmem:[#allocation2 + $0x70] sm:$0xff]  ;;  %s1037_s24 = sshll.u32 %s1278_s12, 4  ;;  %v1043_v10 = vld [vmem:[#allocation2 + $0x28] sm:$0xff]  ;;  %s842_s30 = sshll.u32 %s1278_s12, 2 }
  0x13   : > { %553 = vmatpush.bf16.msra.mxu3 %v1053_v5  ;;  %v1051_v11 = vld [vmem:[#allocation2 + $0x68] sm:$0xff]  ;;  %s216_s27 = scalar_lea.vmem %s1269_s0, %s1037_s24  ;;  %v1058_v12 = vld [vmem:[#allocation2 + $0xa0] sm:$0xff]  ;;  %v1057_v22 = vld [vmem:[#allocation2 + $0x98] sm:$0xff]  ;;  %s226_s6 = scalar_lea.vmem %s1272_s3, %s842_s30 }
  0x14   : > { %415 = vmatpush.bf16.msra.mxu0 %v1060_v2  ;;  %v1066_v13 = vld [vmem:[#allocation2 + $0xe0] sm:$0xff]  ;;  %v228_v15 = vld [vmem:[%s216_s27 + $0x8] sm:$0x11]  ;;  %v1065_v23 = vld [vmem:[#allocation2 + $0xd8] sm:$0xff] }
  0x15   : > { %428 = vmatpush.bf16.msra.mxu1 %v1068_v3  ;;  %v227_v14 = vld [vmem:[%s216_s27] sm:$0xff]  ;;  %v298_v19 = vunpack.c.l.b16 %v228_v15  ;;  %v299_v21 = vunpack.c.h.b16 %v228_v15  ;;  %v1041_v24 = vld [vmem:[#allocation2 + $0x18] sm:$0xff]  ;;  %v1056_v28 = vld [vmem:[#allocation2 + $0x90] sm:$0xff] }
  0x16   : > { %541 = vmatpush.bf16.msra.mxu2 %v1044_v6  ;;  %v1042_v16 = vld [vmem:[#allocation2 + $0x20] sm:$0xff]  ;;  %v1233_v18 = vunpack.c.l.b16 %v227_v14  ;;  %v1235_v20 = vunpack.c.h.b16 %v227_v14  ;;  %v1049_v25 = vld [vmem:[#allocation2 + $0x58] sm:$0xff]  ;;  %v1064_v29 = vld [vmem:[#allocation2 + $0xd0] sm:$0xff] }
  0x17   : > { %554 = vmatpush.bf16.msra.mxu3 %v1052_v7  ;;  %v1050_v17 = vld [vmem:[#allocation2 + $0x60] sm:$0xff]  ;;  %v1040_v30 = vld [vmem:[#allocation2 + $0x10] sm:$0xff]  ;;  %v1055_v34 = vld [vmem:[#allocation2 + $0x88] sm:$0xff] }
  0x18   : > { %416 = vmatpush.bf16.msra.mxu0 %v1059_v8  ;;  %v1238_v26 = vpack.c.b16 %v298_v19, %v1233_v18  ;;  %v1241_v27 = vpack.c.b16 %v299_v21, %v1235_v20  ;;  %v1048_v31 = vld [vmem:[#allocation2 + $0x50] sm:$0xff]  ;;  %v1063_v35 = vld [vmem:[#allocation2 + $0xc8] sm:$0xff]  ;;  %v1054_v42 = vld [vmem:[#allocation2 + $0x80] sm:$0xff]  ;;  %v440_v52 = vpack.c.b16 %v1233_v18, %v1233_v18  ;;  %v441_v53 = vpack.c.b16 %v1235_v20, %v1235_v20 }
  0x19   : > { %429 = vmatpush.bf16.msra.mxu1 %v1067_v9  ;;  %v1039_v36 = vld [vmem:[#allocation2 + $0x8] sm:$0xff]  ;;  %v1062_v43 = vld [vmem:[#allocation2 + $0xc0] sm:$0xff]  ;;  %v1077_v44 = vld [vmem:[#allocation2 + $0x138] sm:$0xff] }
  0x1a   : > { %542 = vmatpush.bf16.msra.mxu2 %v1043_v10  ;;  %v305_v32 = vshll.u32 %v1238_v26, 16  ;;  %v312_v33 = vshll.u32 %v1241_v27, 16  ;;  %v1047_v37 = vld [vmem:[#allocation2 + $0x48] sm:$0xff]  ;;  %v303_v38 = vshrl.u32 %v1238_v26, 16  ;;  %v310_v40 = vshrl.u32 %v1241_v27, 16  ;;  %v1085_v45 = vld [vmem:[#allocation2 + $0x178] sm:$0xff] }
  0x1b   : > { %555 = vmatpush.bf16.msra.mxu3 %v1051_v11  ;;  %v1038_v46 = vld [vmem:[#allocation2] sm:$0xff]  ;;  %v1076_v50 = vld [vmem:[#allocation2 + $0x130] sm:$0xff]  ;;  %v1075_v54 = vld [vmem:[#allocation2 + $0x128] sm:$0xff]  ;;  %v599_v2 = vrot.slane %v1238_v26, 1  ;;  %v600_v3 = vrot.slane %v1241_v27, 1 }
  0x1c   : > { %417 = vmatpush.bf16.msra.mxu0 %v1058_v12  ;;  %v307_v39 = vrot.slane %v305_v32, 1  ;;  %v314_v41 = vrot.slane %v312_v33, 1  ;;  %v1046_v47 = vld [vmem:[#allocation2 + $0x40] sm:$0xff]  ;;  %v1084_v51 = vld [vmem:[#allocation2 + $0x170] sm:$0xff]  ;;  %v1083_v55 = vld [vmem:[#allocation2 + $0x168] sm:$0xff] }
  0x1d   : > { %430 = vmatpush.bf16.msra.mxu1 %v1066_v13  ;;  %v1074_v56 = vld [vmem:[#allocation2 + $0x120] sm:$0xff]  ;;  %v1073_v58 = vld [vmem:[#allocation2 + $0x118] sm:$0xff]  ;;  %v1072_v60 = vld [vmem:[#allocation2 + $0x110] sm:$0xff] }
  0x1e   : > { %543 = vmatpush.bf16.msra.mxu2 %v1042_v16  ;;  %v308_v48 = vor.u32 %v307_v39, %v303_v38  ;;  %v315_v49 = vor.u32 %v314_v41, %v310_v40  ;;  %v1082_v57 = vld [vmem:[#allocation2 + $0x160] sm:$0xff]  ;;  %v1081_v59 = vld [vmem:[#allocation2 + $0x158] sm:$0xff]  ;;  %v1080_v61 = vld [vmem:[#allocation2 + $0x150] sm:$0xff] }
  0x1f   : > { %556 = vmatpush.bf16.msra.mxu3 %v1050_v17  ;;  %v1071_v62 = vld [vmem:[#allocation2 + $0x108] sm:$0xff]  ;;  %v1070_v0 = vld [vmem:[#allocation2 + $0x100] sm:$0xff] }
  0x20   : > { %418 = vmatpush.bf16.msra.mxu0 %v1057_v22  ;;  %v1079_v63 = vld [vmem:[#allocation2 + $0x148] sm:$0xff]  ;;  %v1078_v1 = vld [vmem:[#allocation2 + $0x140] sm:$0xff] }
  0x21   : > { %431 = vmatpush.bf16.msra.mxu1 %v1065_v23  ;;  %v1123_v18 = vld [vmem:[%s1271_s2] ss:$0 sm:$0xff] }
  0x22   : > { %544 = vmatpush.bf16.msra.mxu2 %v1041_v24 }
  0x23   : > { %557 = vmatpush.bf16.msra.mxu3 %v1049_v25 }
  0x24   : > { %419 = vmatpush.bf16.msra.mxu0 %v1056_v28 }
  0x25   : > { %432 = vmatpush.bf16.msra.mxu1 %v1064_v29 }
  0x26   : > { %545 = vmatpush.bf16.msra.mxu2 %v1040_v30 }
  0x27   : > { %558 = vmatpush.bf16.msra.mxu3 %v1048_v31 }
  0x28   : > { %420 = vmatpush.bf16.msra.mxu0 %v1055_v34 }
  0x29   : > { %433 = vmatpush.bf16.msra.mxu1 %v1063_v35 }
  0x2a   : > { %546 = vmatpush.bf16.msra.mxu2 %v1039_v36 }
  0x2b   : > { %559 = vmatpush.bf16.msra.mxu3 %v1047_v37 }
  0x2c   : > { %421 = vmatpush.bf16.msra.mxu0 %v1054_v42 }
  0x2d   : > { %434 = vmatpush.bf16.msra.mxu1 %v1062_v43 }
  0x2e   : > { %547 = vmatpush.bf16.msra.mxu2 %v1038_v46 }
  0x2f   : > { %560 = vmatpush.bf16.msra.mxu3 %v1046_v47  ;;  %422 = vmatmul.bf16.vlgmr.msra.gmra.mxu0 %v308_v48 }
  0x30   : > { %699 = vmatpush.bf16.msrb.mxu0 %v1077_v44  ;;  %435 = vmatmul.bf16.vlgmr.msra.gmra.mxu1 %v315_v49 }
  0x31   : > { %712 = vmatpush.bf16.msrb.mxu1 %v1085_v45  ;;  %548 = vmatmul.bf16.vlgmr.msra.gmra.mxu2 %v440_v52 }
  0x32   : > { %561 = vmatmul.bf16.vlgmr.msra.gmra.mxu3 %v441_v53 }
  0x34   : > { %700 = vmatpush.bf16.msrb.mxu0 %v1076_v50 }
  0x35   : > { %713 = vmatpush.bf16.msrb.mxu1 %v1084_v51 }
  0x38   : > { %701 = vmatpush.bf16.msrb.mxu0 %v1075_v54 }
  0x39   : > { %714 = vmatpush.bf16.msrb.mxu1 %v1083_v55 }
  0x3c   : > { %702 = vmatpush.bf16.msrb.mxu0 %v1074_v56 }
  0x3d   : > { %715 = vmatpush.bf16.msrb.mxu1 %v1082_v57 }
  0x40   : > { %703 = vmatpush.bf16.msrb.mxu0 %v1073_v58 }
  0x41   : > { %716 = vmatpush.bf16.msrb.mxu1 %v1081_v59 }
  0x44   : > { %704 = vmatpush.bf16.msrb.mxu0 %v1072_v60 }
  0x45   : > { %717 = vmatpush.bf16.msrb.mxu1 %v1080_v61 }
  0x48   : > { %705 = vmatpush.bf16.msrb.mxu0 %v1071_v62 }
  0x49   : > { %718 = vmatpush.bf16.msrb.mxu1 %v1079_v63 }
  0x4c   : > { %706 = vmatpush.bf16.msrb.mxu0 %v1070_v0 }
  0x4d   : > { %719 = vmatpush.bf16.msrb.mxu1 %v1078_v1 }
  0x4f   : > { %707 = vmatmul.bf16.vlgmr.msrb.gmra.mxu0 %v599_v2 }
  0x50   : > { %720 = vmatmul.bf16.vlgmr.msrb.gmra.mxu1 %v600_v3 }
  0xac   : > { %v423_v4 = vpop.f32.mrf.mxu0 }
  0xad   : > { %v436_v5 = vpop.f32.mrf.mxu1 }
  0xae   : > { %v437_v12 = vadd.f32 %v436_v5, %v423_v4 }
  0xb4   : > { %v425_v6 = vpop.f32.mrf.mxu0  ;;  %v549_v8 = vpop.f32.mrf.mxu2 }
  0xb5   : > { %v438_v7 = vpop.f32.mrf.mxu1  ;;  %v562_v9 = vpop.f32.mrf.mxu3  ;;  %v550_v13 = vadd.f32 %v549_v8, %v437_v12 }
  0xb7   : > { %v563_v16 = vadd.f32 %v562_v9, %v550_v13 }
  0xbc   : > { %v551_v10 = vpop.f32.mrf.mxu2 }
  0xbd   : > { %v564_v11 = vpop.f32.mrf.mxu3 }
  0xcc   : > { %v708_v14 = vpop.f32.mrf.mxu0 }
  0xcd   : > { %v721_v15 = vpop.f32.mrf.mxu1 }
  0xce   : > { %v722_v17 = vadd.f32 %v721_v15, %v708_v14 }
  0xd0   : > { %v725_v19 = vadd.f32 %v722_v17, %v563_v16 }
  0xd2   : > { %v730_v20 = vadd.f32 %v1123_v18, %v725_v19 }
  0xd4   : > { %v731_v21 = vmax.f32 %v730_v20, 0.0  ;;  %v710_v22 = vpop.f32.mrf.mxu0 }
  0xd5   : > { %v723_v23 = vpop.f32.mrf.mxu1 }
  0xd6   : > { %v732_v24 = vpack.c.bf16 %v731_v21, %v731_v21 }
  0xd8   : > { %733 = vst [vmem:[%s226_s6] sm:$0xf] %v732_v24 }
  0xd9 PF: > { %s14_s14 = sadd.s32 1, %s1180_s14   ;;  %s1273_s12 = smov %s1176_s13 }
  0xda   : > { %p11_p8 = scmp.ge.s32.totalorder %s14_s14, 4   ;;  %s1274_s13 = smov %s1276_s16 }
  0xdc   :  { %13 = sbr.rel (!%p11_p8) target bundleno = 2 (0x2), region = 73 }
  0xe1   :  { %759 = vsyncpa [#allocation3], 1 }
  0xe2   :  { %761 = vsyncpa [#allocation3 + $0x1], 1 }

// kernel: encoder_forward.14
= control target key start
LH: loop header
LB: loop body
LE: loop exit
PB: predicated region body
PF: predicated region fallthrough
CT: control target
= control target key end

     0   :  { %8 = vsyncpa [#allocation4], 0  ;;  %s1507_s0 = inlined_call_operand.vmem [shape: bf16[32,128], index: 0, kind: input, shape index: {}]   ;;  %s1508_s1 = inlined_call_operand.hbm [shape: bf16[128,1024], index: 1, kind: input, shape index: {}]   ;;  %s1509_s2 = inlined_call_operand.hbm [shape: f32[1,1024], index: 2, kind: input, shape index: {}]   ;;  %s1510_s3 = inlined_call_operand.vmem [shape: f32[32,1024], index: 3, kind: output, shape index: {}]  }
   0x1   :  { %10 = vsyncpa [#allocation4 + $0x1], 0 }
   0x2   :  { %11 = vsyncpa [#allocation6], 0 }
   0x3   :  { %13 = vsyncpa [#allocation6 + $0x1], 0  ;;  %s1276_s12 = smov 0   ;;  %s1278_s13 = smov 0  }
   0x4   :  { %s1280_s14 = smov 0   ;;  %s1282_s15 = smov 0  }
   0x5   :  { %s1284_s16 = smov 0   ;;  %s1286_s17 = smov 0  }
   0x6 LB: > { %s883_s18 = sadd.s32 4294967295, %s1251_s17   ;;  %s34_s19 = sadd.s32 1, %s1247_s16  ;;  %s1251_s17 = sphi %s1286_s17, %s19_s17   ;;  %s1247_s16 = sphi %s1284_s16, %s1519_s16   ;;  %s1243_s15 = sphi %s1282_s15, %s1518_s15   ;;  %s1239_s14 = sphi %s1280_s14, %s1517_s14   ;;  %s1235_s13 = sphi %s1278_s13, %s1516_s13   ;;  %s1231_s12 = sphi %s1276_s12, %s1515_s12  }
   0x7   : > { %p36_p0 = scmp.ge.s32.totalorder %s34_s19, 2  ;;  %s75_s20 = sadd.s32 1, %s1239_s14 }
   0x8   : > { %p82_p1 = scmp.ne.s32.totalorder %s1239_s14, %s1235_s13  ;;  %p83_p2 = scmp.eq.s32.totalorder %s1251_s17, 0 }
   0x9   : > { %s1521_s19 = smov (%p36_p0, %s34_s19), 0  ;;  %p88_p4 = scmp.ne.s32.totalorder %s1235_s13, %s1231_s12 }
   0xa   : > { %p1312_p3 = por %p83_p2, %p82_p1  ;;  %s71_s22 = ssub.s32 %s1247_s16, %s1521_s19 }
   0xb   : > { %p89_p5 = scmp.eq.s32.totalorder %s883_s18, 0  ;;  %p73_p6 = scmp.eq.s32.totalorder %s71_s22, 0 }
   0xc   : > { %p140_p7 = scmp.eq.s32.totalorder %s883_s18, 1  ;;  %p1085_p10 = scmp.lt.s32.totalorder %s1251_s17, 2 }
   0xd   : > { %p1319_p8 = por %p89_p5, %p88_p4  ;;  %s1332_s26 = sand.u32 1, %s1239_s14  }
   0xe   : > { %s1324_s24 = scalar_select %p73_p6, %s1239_s14, %s75_s20  }
   0xf   : > { %p1326_p9 = por %p140_p7, %p82_p1  ;;  %s1038_s27 = sshll.u32 %s1247_s16, 4 }
  0x10   : > { %s888_s28 = sshll.u32 %s1332_s26, 8  ;;  %s190_s4 = scalar_lea.hbm %s1508_s1, %s1038_s27 }
  0x11   : > { %s191_s5 = sshll.u32 %s190_s4, 4  ;;  %s182_s6 = scalar_lea.vmem [#allocation3], %s888_s28  ;;  %s192_s5 = int_to_ptr.hbm [resolvable:$true] %s191_s5 }
  0x12   : > { %s193_s7 = sshll.u32 %s182_s6, 4  ;;  %p1341_p11 = pnand %p1085_p10, %p1312_p3  ;;  %s194_s7 = int_to_ptr.vmem [resolvable:$true] %s193_s7 }
  0x13   : > { %p893_p12 = scmp.ge.s32.totalorder %s1251_s17, 1  ;;  %s179_s9 = scalar_lea.sflag [#allocation4], %s1332_s26 }
  0x14   : > { %s1253_s10 = smov 512   ;;  %s1254_s11 = smov 256  }
  0x15   : > { %s1255_s12 = smov 16   ;;  %p220_p13 = scmp.lt.s32.totalorder %s1251_s17, 3 }
  0x16   : > { %1081 = dma.hbm_to_vmem [thread:$0]  (!%p1341_p11), %s192_s5, 4096, %s194_s7, %s179_s9, %s1253_s10, %s1254_s11, %s1255_s12  }
  0x17   : > { %s891_s18 = sshll.u32 %s1332_s26, 2  ;;  %s892_s20 = sshll.u32 %s1247_s16, 2 }
  0x18   : > { %p221_p0 = pnand %p893_p12, %p220_p13  ;;  %s211_s27 = scalar_lea.hbm %s1509_s2, %s892_s20 }
  0x19   : > { %s207_s28 = scalar_lea.vmem [#allocation5], %s891_s18  ;;  %s213_s30 = sshll.u32 %s211_s27, 4  ;;  %s214_s30 = int_to_ptr.hbm [resolvable:$true] %s213_s30 }
  0x1a   : > { %s215_s29 = sshll.u32 %s207_s28, 4  ;;  %s204_s4 = scalar_lea.sflag [#allocation6], %s1332_s26  ;;  %s216_s29 = int_to_ptr.vmem [resolvable:$true] %s215_s29 }
  0x1b   : > { %1084 = dma.hbm_to_vmem [thread:$0]  (!%p1341_p11), %s214_s30, 64, %s216_s29, %s204_s4  }
  0x1c   : > { %224 = sbr.rel (%p221_p0) target bundleno = 241 (0xf1), region = 32  ;;  %s1359_s5 = sand.u32 (!%p221_p0), 1, %s1235_s13  }
  0x1d   : > { %s894_s6 = sshll.u32 (!%p221_p0), %s1359_s5, 8  ;;  %s227_s7 = scalar_lea.sflag (!%p221_p0), [#allocation4], %s1359_s5 }
  0x1e   : > { %s1363_s9 = scalar_lea.vmem (!%p221_p0), [#allocation3], %s894_s6 }
  0x21   : > { %1222 = dma.done.wait (%p1319_p8), %s227_s7, 4096  }
  0x22   : > { %1224 = vsyncadd (%p1319_p8), %s227_s7, 4294963200  ;;  %s895_s26 = sshll.u32 %s1359_s5, 2  ;;  %s237_s8 = scalar_lea.sflag [#allocation6], %s1359_s5 }
  0x23   : > { %s1371_s10 = scalar_lea.vmem [#allocation5], %s895_s26 }
  0x24   : > { %1226 = dma.done.wait (%p1319_p8), %s237_s8, 64  }
  0x25   : > { %1228 = vsyncadd (%p1319_p8), %s237_s8, 4294967232  ;;  %v1019_v0 = vld [vmem:[%s1363_s9 + $0xe0] sm:$0xf]  ;;  %v1071_v1 = vld [vmem:[%s1363_s9 + $0xec] sm:$0xf0]  ;;  %s896_s20 = sshll.u32 %s1359_s5, 7 }
  0x26   : > { %v1069_v2 = vld [vmem:[%s1363_s9 + $0xe4] sm:$0xf]  ;;  %v1020_v3 = vor.u32 %v1071_v1, %v1019_v0  ;;  %v1021_v4 = vld [vmem:[%s1363_s9 + $0xf0] sm:$0xf0]  ;;  %v1027_v5 = vld [vmem:[%s1363_s9 + $0xe8] sm:$0xf] }
  0x27   : > { %v1072_v6 = vld [vmem:[%s1363_s9 + $0xf4] sm:$0xf0]  ;;  %v1024_v7 = vor.u32 %v1069_v2, %v1021_v4  ;;  %v1070_v9 = vld [vmem:[%s1363_s9 + $0xec] sm:$0xf]  ;;  %v1029_v10 = vld [vmem:[%s1363_s9 + $0xf8] sm:$0xf0] }
  0x28   : > { %v1028_v8 = vor.u32 %v1072_v6, %v1027_v5  ;;  %v1003_v11 = vld [vmem:[%s1363_s9 + $0xc0] sm:$0xf]  ;;  %534 = vmatpush.bf16.msra.mxu0 %v1020_v3  ;;  %v1032_v12 = vor.u32 %v1070_v9, %v1029_v10  ;;  %v1067_v13 = vld [vmem:[%s1363_s9 + $0xcc] sm:$0xf0]  ;;  %v1065_v14 = vld [vmem:[%s1363_s9 + $0xc4] sm:$0xf] }
  0x29   : > { %v1005_v15 = vld [vmem:[%s1363_s9 + $0xd0] sm:$0xf0]  ;;  %553 = vmatpush.bf16.msra.mxu1 %v1024_v7  ;;  %v1004_v16 = vor.u32 %v1067_v13, %v1003_v11  ;;  %v1011_v18 = vld [vmem:[%s1363_s9 + $0xc8] sm:$0xf]  ;;  %v1068_v19 = vld [vmem:[%s1363_s9 + $0xd4] sm:$0xf0] }
  0x2a   : > { %572 = vmatpush.bf16.msra.mxu2 %v1028_v8  ;;  %v1008_v17 = vor.u32 %v1065_v14, %v1005_v15  ;;  %v1066_v20 = vld [vmem:[%s1363_s9 + $0xcc] sm:$0xf]  ;;  %591 = vmatpush.bf16.msra.mxu3 %v1032_v12  ;;  %v1012_v21 = vor.u32 %v1068_v19, %v1011_v18  ;;  %v1013_v22 = vld [vmem:[%s1363_s9 + $0xd8] sm:$0xf0]  ;;  %v987_v23 = vld [vmem:[%s1363_s9 + $0xa0] sm:$0xf] }
  0x2b   : > { %v1063_v24 = vld [vmem:[%s1363_s9 + $0xac] sm:$0xf0]  ;;  %v1016_v25 = vor.u32 %v1066_v20, %v1013_v22  ;;  %v1061_v26 = vld [vmem:[%s1363_s9 + $0xa4] sm:$0xf]  ;;  %v989_v27 = vld [vmem:[%s1363_s9 + $0xb0] sm:$0xf0] }
  0x2c   : > { %v995_v28 = vld [vmem:[%s1363_s9 + $0xa8] sm:$0xf]  ;;  %535 = vmatpush.bf16.msra.mxu0 %v1004_v16  ;;  %v988_v29 = vor.u32 %v1063_v24, %v987_v23  ;;  %v1064_v30 = vld [vmem:[%s1363_s9 + $0xb4] sm:$0xf0]  ;;  %v1062_v31 = vld [vmem:[%s1363_s9 + $0xac] sm:$0xf]  ;;  %v992_v33 = vor.u32 %v1061_v26, %v989_v27 }
  0x2d   : > { %v997_v32 = vld [vmem:[%s1363_s9 + $0xb8] sm:$0xf0]  ;;  %554 = vmatpush.bf16.msra.mxu1 %v1008_v17  ;;  %v996_v34 = vor.u32 %v1064_v30, %v995_v28  ;;  %v971_v35 = vld [vmem:[%s1363_s9 + $0x80] sm:$0xf]  ;;  %v1059_v36 = vld [vmem:[%s1363_s9 + $0x8c] sm:$0xf0] }
  0x2e   : > { %573 = vmatpush.bf16.msra.mxu2 %v1012_v21  ;;  %v1057_v37 = vld [vmem:[%s1363_s9 + $0x84] sm:$0xf]  ;;  %592 = vmatpush.bf16.msra.mxu3 %v1016_v25  ;;  %v1000_v38 = vor.u32 %v1062_v31, %v997_v32  ;;  %v973_v39 = vld [vmem:[%s1363_s9 + $0x90] sm:$0xf0]  ;;  %v979_v40 = vld [vmem:[%s1363_s9 + $0x88] sm:$0xf]  ;;  %v972_v44 = vor.u32 %v1059_v36, %v971_v35 }
  0x2f   : > { %v1060_v41 = vld [vmem:[%s1363_s9 + $0x94] sm:$0xf0]  ;;  %v1058_v42 = vld [vmem:[%s1363_s9 + $0x8c] sm:$0xf]  ;;  %v981_v43 = vld [vmem:[%s1363_s9 + $0x98] sm:$0xf0]  ;;  %v976_v45 = vor.u32 %v1057_v37, %v973_v39 }
  0x30   : > { %536 = vmatpush.bf16.msra.mxu0 %v988_v29  ;;  %v980_v46 = vor.u32 %v1060_v41, %v979_v40  ;;  %v955_v47 = vld [vmem:[%s1363_s9 + $0x60] sm:$0xf]  ;;  %v1055_v48 = vld [vmem:[%s1363_s9 + $0x6c] sm:$0xf0]  ;;  %v1053_v49 = vld [vmem:[%s1363_s9 + $0x64] sm:$0xf]  ;;  %v984_v50 = vor.u32 %v1058_v42, %v981_v43 }
  0x31   : > { %555 = vmatpush.bf16.msra.mxu1 %v992_v33  ;;  %v957_v51 = vld [vmem:[%s1363_s9 + $0x70] sm:$0xf0]  ;;  %v963_v52 = vld [vmem:[%s1363_s9 + $0x68] sm:$0xf]  ;;  %v1056_v53 = vld [vmem:[%s1363_s9 + $0x74] sm:$0xf0]  ;;  %v956_v56 = vor.u32 %v1055_v48, %v955_v47 }
  0x32   : > { %574 = vmatpush.bf16.msra.mxu2 %v996_v34  ;;  %593 = vmatpush.bf16.msra.mxu3 %v1000_v38  ;;  %v1054_v54 = vld [vmem:[%s1363_s9 + $0x6c] sm:$0xf]  ;;  %v965_v55 = vld [vmem:[%s1363_s9 + $0x78] sm:$0xf0]  ;;  %v960_v57 = vor.u32 %v1053_v49, %v957_v51  ;;  %v964_v58 = vor.u32 %v1056_v53, %v963_v52  ;;  %v939_v59 = vld [vmem:[%s1363_s9 + $0x40] sm:$0xf] }
  0x33   : > { %v1051_v60 = vld [vmem:[%s1363_s9 + $0x4c] sm:$0xf0]  ;;  %v1049_v61 = vld [vmem:[%s1363_s9 + $0x44] sm:$0xf]  ;;  %v968_v62 = vor.u32 %v1054_v54, %v965_v55  ;;  %v941_v63 = vld [vmem:[%s1363_s9 + $0x50] sm:$0xf0] }
  0x34   : > { %537 = vmatpush.bf16.msra.mxu0 %v972_v44  ;;  %v947_v0 = vld [vmem:[%s1363_s9 + $0x48] sm:$0xf]  ;;  %v1052_v1 = vld [vmem:[%s1363_s9 + $0x54] sm:$0xf0]  ;;  %v1050_v2 = vld [vmem:[%s1363_s9 + $0x4c] sm:$0xf]  ;;  %v940_v4 = vor.u32 %v1051_v60, %v939_v59  ;;  %v944_v5 = vor.u32 %v1049_v61, %v941_v63 }
  0x35   : > { %556 = vmatpush.bf16.msra.mxu1 %v976_v45  ;;  %v949_v3 = vld [vmem:[%s1363_s9 + $0x58] sm:$0xf0]  ;;  %v948_v6 = vor.u32 %v1052_v1, %v947_v0  ;;  %v923_v7 = vld [vmem:[%s1363_s9 + $0x20] sm:$0xf]  ;;  %v1047_v8 = vld [vmem:[%s1363_s9 + $0x2c] sm:$0xf0] }
  0x36   : > { %575 = vmatpush.bf16.msra.mxu2 %v980_v46  ;;  %594 = vmatpush.bf16.msra.mxu3 %v984_v50  ;;  %v1045_v9 = vld [vmem:[%s1363_s9 + $0x24] sm:$0xf]  ;;  %v952_v10 = vor.u32 %v1050_v2, %v949_v3  ;;  %v925_v11 = vld [vmem:[%s1363_s9 + $0x30] sm:$0xf0]  ;;  %v931_v12 = vld [vmem:[%s1363_s9 + $0x28] sm:$0xf]  ;;  %v924_v16 = vor.u32 %v1047_v8, %v923_v7 }
  0x37   : > { %v1048_v13 = vld [vmem:[%s1363_s9 + $0x34] sm:$0xf0]  ;;  %v1046_v14 = vld [vmem:[%s1363_s9 + $0x2c] sm:$0xf]  ;;  %v933_v15 = vld [vmem:[%s1363_s9 + $0x38] sm:$0xf0]  ;;  %v928_v17 = vor.u32 %v1045_v9, %v925_v11 }
  0x38   : > { %538 = vmatpush.bf16.msra.mxu0 %v956_v56  ;;  %v932_v18 = vor.u32 %v1048_v13, %v931_v12  ;;  %v907_v19 = vld [vmem:[%s1363_s9] sm:$0xf]  ;;  %v1043_v20 = vld [vmem:[%s1363_s9 + $0xc] sm:$0xf0]  ;;  %v1041_v21 = vld [vmem:[%s1363_s9 + $0x4] sm:$0xf]  ;;  %v936_v22 = vor.u32 %v1046_v14, %v933_v15 }
  0x39   : > { %557 = vmatpush.bf16.msra.mxu1 %v960_v57  ;;  %v909_v23 = vld [vmem:[%s1363_s9 + $0x10] sm:$0xf0]  ;;  %v915_v24 = vld [vmem:[%s1363_s9 + $0x8] sm:$0xf]  ;;  %v1044_v25 = vld [vmem:[%s1363_s9 + $0x14] sm:$0xf0]  ;;  %v908_v28 = vor.u32 %v1043_v20, %v907_v19 }
  0x3a   : > { %576 = vmatpush.bf16.msra.mxu2 %v964_v58  ;;  %595 = vmatpush.bf16.msra.mxu3 %v968_v62  ;;  %v1042_v26 = vld [vmem:[%s1363_s9 + $0xc] sm:$0xf]  ;;  %v917_v27 = vld [vmem:[%s1363_s9 + $0x18] sm:$0xf0]  ;;  %v912_v29 = vor.u32 %v1041_v21, %v909_v23  ;;  %v916_v30 = vor.u32 %v1044_v25, %v915_v24  ;;  %v1039_v32 = vld [vmem:[%s1507_s0] sm:$0xff]  ;;  %s1449_s22 = scalar_lea.vmem [#allocation7], %s896_s20 }
  0x3b   : > { %v920_v31 = vor.u32 %v1042_v26, %v917_v27  ;;  %v1040_v33 = vld [vmem:[%s1507_s0 + $0x8] sm:$0xff]  ;;  %v661_v34 = vld [vmem:[%s1371_s10] sm:$0xf]  ;;  %s1073_s21 = sshll.u32 (%p1326_p9), %s1243_s15, 5 }
  0x3c   : > { %539 = vmatpush.bf16.msra.mxu0 %v940_v4  ;;  %v663_v35 = vperm.slane %v661_v34, 0  ;;  %v664_v36 = vperm.slane %v661_v34, 1  ;;  %v665_v41 = vperm.slane %v661_v34, 2  ;;  %v666_v42 = vperm.slane %v661_v34, 3  ;;  %s715_s29 = scalar_lea.vmem (%p1326_p9), %s1510_s3, %s1073_s21 }
  0x3d   : > { %558 = vmatpush.bf16.msra.mxu1 %v944_v5 }
  0x3e   : > { %577 = vmatpush.bf16.msra.mxu2 %v948_v6  ;;  %596 = vmatpush.bf16.msra.mxu3 %v952_v10 }
  0x40   : > { %540 = vmatpush.bf16.msra.mxu0 %v924_v16 }
  0x41   : > { %559 = vmatpush.bf16.msra.mxu1 %v928_v17 }
  0x42   : > { %578 = vmatpush.bf16.msra.mxu2 %v932_v18  ;;  %597 = vmatpush.bf16.msra.mxu3 %v936_v22 }
  0x44   : > { %541 = vmatpush.bf16.msra.mxu0 %v908_v28 }
  0x45   : > { %560 = vmatpush.bf16.msra.mxu1 %v912_v29 }
  0x46   : > { %579 = vmatpush.bf16.msra.mxu2 %v916_v30  ;;  %598 = vmatpush.bf16.msra.mxu3 %v920_v31 }
  0x47   : > { %542 = vmatmul.bf16.vlgmr.msra.gmra.mxu0 %v1039_v32 }
  0x48   : > { %561 = vmatmul.bf16.vlgmr.msra.gmra.mxu1 %v1039_v32 }
  0x49   : > { %580 = vmatmul.bf16.vlgmr.msra.gmra.mxu2 %v1039_v32  ;;  %599 = vmatmul.bf16.vlgmr.msra.gmra.mxu3 %v1039_v32 }
  0x57   : > { %547 = vmatmul.bf16.gmra.mxu0 %v1040_v33 }
  0x58   : > { %566 = vmatmul.bf16.gmra.mxu1 %v1040_v33 }
  0x59   : > { %585 = vmatmul.bf16.gmra.mxu2 %v1040_v33  ;;  %604 = vmatmul.bf16.gmra.mxu3 %v1040_v33 }
  0xc4   : > { %v543_v37 = vpop.f32.mrf.mxu0 }
  0xc5   : > { %v671_v38 = vadd.f32 %v663_v35, %v543_v37  ;;  %v562_v39 = vpop.f32.mrf.mxu1 }
  0xc6   : > { %v672_v40 = vadd.f32 %v664_v36, %v562_v39 }
  0xc7   : > { %687 = vst [vmem:[%s1449_s22] sm:$0xff] %v671_v38 }
  0xc8   : > { %688 = vst [vmem:[%s1449_s22 + $0x8] sm:$0xff] %v672_v40 }
  0xcc   : > { %v581_v43 = vpop.f32.mrf.mxu2  ;;  %v600_v45 = vpop.f32.mrf.mxu3 }
  0xcd   : > { %v673_v44 = vadd.f32 %v665_v41, %v581_v43  ;;  %v545_v46 = vpop.f32.mrf.mxu0  ;;  %v674_v47 = vadd.f32 %v666_v42, %v600_v45  ;;  %v564_v49 = vpop.f32.mrf.mxu1 }
  0xce   : > { %v675_v48 = vadd.f32 %v663_v35, %v545_v46  ;;  %v676_v50 = vadd.f32 %v664_v36, %v564_v49  ;;  %v728_v7 = vld [vmem:[%s1449_s22] sm:$0xff] (%p1326_p9) }
  0xcf   : > { %689 = vst [vmem:[%s1449_s22 + $0x10] sm:$0xff] %v673_v44  ;;  %v730_v8 = vld [vmem:[%s1449_s22 + $0x8] sm:$0xff] (%p1326_p9) }
  0xd0   : > { %690 = vst [vmem:[%s1449_s22 + $0x18] sm:$0xff] %v674_v47 }
  0xd1   : > { %691 = vst [vmem:[%s1449_s22 + $0x20] sm:$0xff] %v675_v48 }
  0xd2   : > { %692 = vst [vmem:[%s1449_s22 + $0x28] sm:$0xff] %v676_v50 }
  0xd3   : > { %729 = vst [vmem:[%s715_s29] sm:$0xff] (%p1326_p9), %v728_v7 }
  0xd4   : > { %v583_v51 = vpop.f32.mrf.mxu2  ;;  %v602_v53 = vpop.f32.mrf.mxu3  ;;  %731 = vst [vmem:[%s715_s29 + $0x8] sm:$0xff] (%p1326_p9), %v730_v8 }
  0xd5   : > { %v677_v52 = vadd.f32 %v665_v41, %v583_v51  ;;  %v548_v54 = vpop.f32.mrf.mxu0  ;;  %v678_v55 = vadd.f32 %v666_v42, %v602_v53  ;;  %v567_v57 = vpop.f32.mrf.mxu1 }
  0xd6   : > { %v679_v56 = vadd.f32 %v663_v35, %v548_v54  ;;  %v680_v58 = vadd.f32 %v664_v36, %v567_v57  ;;  %v732_v9 = vld [vmem:[%s1449_s22 + $0x10] sm:$0xff] (%p1326_p9) }
  0xd7   : > { %693 = vst [vmem:[%s1449_s22 + $0x30] sm:$0xff] %v677_v52  ;;  %v734_v10 = vld [vmem:[%s1449_s22 + $0x18] sm:$0xff] (%p1326_p9) }
  0xd8   : > { %694 = vst [vmem:[%s1449_s22 + $0x38] sm:$0xff] %v678_v55  ;;  %v736_v11 = vld [vmem:[%s1449_s22 + $0x20] sm:$0xff] (%p1326_p9) }
  0xd9   : > { %695 = vst [vmem:[%s1449_s22 + $0x40] sm:$0xff] %v679_v56  ;;  %v738_v12 = vld [vmem:[%s1449_s22 + $0x28] sm:$0xff] (%p1326_p9) }
  0xda   : > { %696 = vst [vmem:[%s1449_s22 + $0x48] sm:$0xff] %v680_v58 }
  0xdb   : > { %733 = vst [vmem:[%s715_s29 + $0x10] sm:$0xff] (%p1326_p9), %v732_v9 }
  0xdc   : > { %v586_v59 = vpop.f32.mrf.mxu2  ;;  %v605_v61 = vpop.f32.mrf.mxu3  ;;  %735 = vst [vmem:[%s715_s29 + $0x18] sm:$0xff] (%p1326_p9), %v734_v10 }
  0xdd   : > { %v681_v60 = vadd.f32 %v665_v41, %v586_v59  ;;  %v550_v62 = vpop.f32.mrf.mxu0  ;;  %v682_v63 = vadd.f32 %v666_v42, %v605_v61  ;;  %v569_v1 = vpop.f32.mrf.mxu1  ;;  %737 = vst [vmem:[%s715_s29 + $0x40] sm:$0xff] (%p1326_p9), %v736_v11 }
  0xde   : > { %v683_v0 = vadd.f32 %v663_v35, %v550_v62  ;;  %v684_v2 = vadd.f32 %v664_v36, %v569_v1  ;;  %v740_v13 = vld [vmem:[%s1449_s22 + $0x30] sm:$0xff] (%p1326_p9)  ;;  %739 = vst [vmem:[%s715_s29 + $0x48] sm:$0xff] (%p1326_p9), %v738_v12 }
  0xdf   : > { %697 = vst [vmem:[%s1449_s22 + $0x50] sm:$0xff] %v681_v60  ;;  %v742_v14 = vld [vmem:[%s1449_s22 + $0x38] sm:$0xff] (%p1326_p9) }
  0xe0   : > { %698 = vst [vmem:[%s1449_s22 + $0x58] sm:$0xff] %v682_v63  ;;  %v744_v15 = vld [vmem:[%s1449_s22 + $0x40] sm:$0xff] (%p1326_p9) }
  0xe1   : > { %699 = vst [vmem:[%s1449_s22 + $0x60] sm:$0xff] %v683_v0  ;;  %v746_v16 = vld [vmem:[%s1449_s22 + $0x48] sm:$0xff] (%p1326_p9) }
  0xe2   : > { %700 = vst [vmem:[%s1449_s22 + $0x68] sm:$0xff] %v684_v2 }
  0xe3   : > { %741 = vst [vmem:[%s715_s29 + $0x50] sm:$0xff] (%p1326_p9), %v740_v13 }
  0xe4   : > { %v588_v3 = vpop.f32.mrf.mxu2  ;;  %v607_v5 = vpop.f32.mrf.mxu3  ;;  %709 = sbr.rel (!%p1326_p9) target bundleno = 241 (0xf1), region = 52  ;;  %743 = vst [vmem:[%s715_s29 + $0x58] sm:$0xff] (%p1326_p9), %v742_v14 }
  0xe5   : > { %v685_v4 = vadd.f32 %v665_v41, %v588_v3  ;;  %v686_v6 = vadd.f32 %v666_v42, %v607_v5  ;;  %745 = vst [vmem:[%s715_s29 + $0x80] sm:$0xff] (%p1326_p9), %v744_v15 }
  0xe6   : > { %v748_v17 = vld [vmem:[%s1449_s22 + $0x50] sm:$0xff] (%p1326_p9)  ;;  %747 = vst [vmem:[%s715_s29 + $0x88] sm:$0xff] (%p1326_p9), %v746_v16 }
  0xe7   : > { %701 = vst [vmem:[%s1449_s22 + $0x70] sm:$0xff] %v685_v4  ;;  %v750_v18 = vld [vmem:[%s1449_s22 + $0x58] sm:$0xff] (%p1326_p9) }
  0xe8   : > { %702 = vst [vmem:[%s1449_s22 + $0x78] sm:$0xff] %v686_v6  ;;  %v752_v19 = vld [vmem:[%s1449_s22 + $0x60] sm:$0xff] (%p1326_p9) }
  0xe9   : > { %749 = vst [vmem:[%s715_s29 + $0x90] sm:$0xff] %v748_v17  ;;  %v754_v20 = vld [vmem:[%s1449_s22 + $0x68] sm:$0xff] }
  0xea   : > { %751 = vst [vmem:[%s715_s29 + $0x98] sm:$0xff] %v750_v18 }
  0xeb   : > { %753 = vst [vmem:[%s715_s29 + $0xc0] sm:$0xff] %v752_v19 }
  0xec   : > { %755 = vst [vmem:[%s715_s29 + $0xc8] sm:$0xff] %v754_v20 }
  0xee   : > { %v756_v21 = vld [vmem:[%s1449_s22 + $0x70] sm:$0xff] }
  0xef   : > { %v758_v22 = vld [vmem:[%s1449_s22 + $0x78] sm:$0xff]  ;;  %757 = vst [vmem:[%s715_s29 + $0xd0] sm:$0xff] %v756_v21 }
  0xf0   : > { %759 = vst [vmem:[%s715_s29 + $0xd8] sm:$0xff] %v758_v22 }
  0xf1 PF: > { %s19_s17 = sadd.s32 1, %s1251_s17   ;;  %s1515_s12 = smov %s1235_s13 }
  0xf2   : > { %p16_p1 = scmp.ge.s32.totalorder %s19_s17, 4   ;;  %s1516_s13 = smov %s1239_s14 }
  0xf3   : > { %s1517_s14 = smov %s1324_s24  ;;  %s1518_s15 = smov %s1247_s16 }
  0xf4   : > { %s1519_s16 = smov %s1521_s19  ;;  %18 = sbr.rel (!%p16_p1) target bundleno = 6 (0x6), region = 119 }
  0xf9   :  { %775 = vsyncpa [#allocation4], 1 }
  0xfa   :  { %777 = vsyncpa [#allocation4 + $0x1], 1 }
  0xfb   :  { %778 = vsyncpa [#allocation6], 1 }
  0xfc   :  { %780 = vsyncpa [#allocation6 + $0x1], 1 }

// kernel: encoder_forward.12
= control target key start
LH: loop header
LB: loop body
LE: loop exit
PB: predicated region body
PF: predicated region fallthrough
CT: control target
= control target key end

     0   :  { %7 = vsyncpa [#allocation6], 0  ;;  %s2862_s0 = inlined_call_operand.vmem [shape: f32[8,8,1024], index: 0, kind: input, shape index: {}]   ;;  %s2863_s1 = inlined_call_operand.hbm [shape: f32[2,128,512], index: 1, kind: input, shape index: {}]   ;;  %s2864_s2 = inlined_call_operand.vmem [shape: f32[8,8,256], index: 2, kind: output, shape index: {}]  }
   0x1   :  { %9 = vsyncpa [#allocation6 + $0x1], 0  ;;  %s1666_s9 = smov 0   ;;  %s1668_s10 = smov 0  }
   0x2   :  { %s1670_s11 = smov 0   ;;  %s1672_s12 = smov 0  }
   0x3 LB: > { %s1685_s13 = sadd.s32 4294967295, %s1642_s12   ;;  %s1688_s14 = sadd.s32 1, %s1642_s12   ;;  %s1642_s12 = sphi %s1672_s12, %s2978_s12   ;;  %s1638_s11 = sphi %s1670_s11, %s2977_s11   ;;  %s1634_s10 = sphi %s1668_s10, %s2976_s10   ;;  %s1630_s9 = sphi %s1666_s9, %s2975_s9  }
   0x4   : > { %s19_s15 = ssub.s32 %s1642_s12, %s1688_s14  ;;  %s22_s16 = sadd.s32 1, %s1638_s11 }
   0x5   : > { %p20_p0 = scmp.eq.s32.totalorder %s19_s15, 0  ;;  %p29_p1 = scmp.ne.s32.totalorder %s1638_s11, %s1634_s10 }
   0x6   : > { %p30_p2 = scmp.eq.s32.totalorder %s1642_s12, 0  ;;  %p61_p3 = scmp.ne.s32.totalorder %s1634_s10, %s1630_s9 }
   0x7   : > { %s1698_s17 = scalar_select %p20_p0, %s1638_s11, %s22_s16  }
   0x8   : > { %p1700_p4 = por %p30_p2, %p29_p1  ;;  %p62_p5 = scmp.eq.s32.totalorder %s1685_s13, 0 }
   0x9   : > { %p85_p6 = scmp.eq.s32.totalorder %s1685_s13, 1  ;;  %p1345_p9 = scmp.ge.s32.totalorder %s1642_s12, 2 }
   0xa   : > { %p1708_p7 = por %p62_p5, %p61_p3 }
   0xb   : > { %p1712_p8 = por %p85_p6, %p29_p1  ;;  %107 = sbr.rel (%p1345_p9) target bundleno = 69 (0x45), region = 16 }
  0x10   : > { %110 = sbr.rel (!%p1700_p4) target bundleno = 52 (0x34), region = 20  ;;  %s112_s21 = sand.u32 (%p1700_p4), 1, %s1638_s11  }
  0x11   : > { %s1400_s22 = sshll.u32 (%p1700_p4), %s1642_s12, 5  ;;  %s1346_s23 = sshll.u32 (%p1700_p4), %s112_s21, 8 }
  0x12   : > { %s1724_s26 = scalar_lea.vmem (%p1700_p4), %s2862_s0, %s1400_s22  ;;  %s1729_s27 = scalar_lea.vmem (%p1700_p4), [#allocation4], %s1346_s23 }
  0x13   : > { %v130_v0 = vld [vmem:[%s1724_s26] sm:$0xff] (%p1700_p4)  ;;  %v132_v1 = vld [vmem:[%s1724_s26 + $0x8] sm:$0xff] (%p1700_p4)  ;;  %v134_v2 = vld [vmem:[%s1724_s26 + $0x10] sm:$0xff] (%p1700_p4) }
  0x14   : > { %131 = vst [vmem:[%s1729_s27] sm:$0xff] (%p1700_p4), %v130_v0  ;;  %v136_v3 = vld [vmem:[%s1724_s26 + $0x18] sm:$0xff] (%p1700_p4)  ;;  %v138_v4 = vld [vmem:[%s1724_s26 + $0x40] sm:$0xff] (%p1700_p4)  ;;  %v140_v5 = vld [vmem:[%s1724_s26 + $0x48] sm:$0xff] (%p1700_p4) }
  0x15   : > { %133 = vst [vmem:[%s1729_s27 + $0x8] sm:$0xff] %v132_v1  ;;  %v142_v6 = vld [vmem:[%s1724_s26 + $0x50] sm:$0xff]  ;;  %v144_v7 = vld [vmem:[%s1724_s26 + $0x58] sm:$0xff]  ;;  %v146_v8 = vld [vmem:[%s1724_s26 + $0x80] sm:$0xff] }
  0x16   : > { %135 = vst [vmem:[%s1729_s27 + $0x10] sm:$0xff] %v134_v2  ;;  %v148_v9 = vld [vmem:[%s1724_s26 + $0x88] sm:$0xff]  ;;  %v150_v10 = vld [vmem:[%s1724_s26 + $0x90] sm:$0xff]  ;;  %v152_v11 = vld [vmem:[%s1724_s26 + $0x98] sm:$0xff] }
  0x17   : > { %137 = vst [vmem:[%s1729_s27 + $0x18] sm:$0xff] %v136_v3  ;;  %v154_v12 = vld [vmem:[%s1724_s26 + $0xc0] sm:$0xff]  ;;  %v156_v13 = vld [vmem:[%s1724_s26 + $0xc8] sm:$0xff]  ;;  %v158_v14 = vld [vmem:[%s1724_s26 + $0xd0] sm:$0xff] }
  0x18   : > { %139 = vst [vmem:[%s1729_s27 + $0x20] sm:$0xff] %v138_v4  ;;  %v160_v15 = vld [vmem:[%s1724_s26 + $0xd8] sm:$0xff]  ;;  %v162_v16 = vld [vmem:[%s1724_s26 + $0x100] sm:$0xff]  ;;  %v164_v17 = vld [vmem:[%s1724_s26 + $0x108] sm:$0xff] }
  0x19   : > { %141 = vst [vmem:[%s1729_s27 + $0x28] sm:$0xff] %v140_v5  ;;  %v166_v18 = vld [vmem:[%s1724_s26 + $0x110] sm:$0xff]  ;;  %v168_v19 = vld [vmem:[%s1724_s26 + $0x118] sm:$0xff]  ;;  %v170_v20 = vld [vmem:[%s1724_s26 + $0x140] sm:$0xff] }
  0x1a   : > { %143 = vst [vmem:[%s1729_s27 + $0x30] sm:$0xff] %v142_v6  ;;  %v172_v21 = vld [vmem:[%s1724_s26 + $0x148] sm:$0xff]  ;;  %v174_v22 = vld [vmem:[%s1724_s26 + $0x150] sm:$0xff]  ;;  %v176_v23 = vld [vmem:[%s1724_s26 + $0x158] sm:$0xff] }
  0x1b   : > { %145 = vst [vmem:[%s1729_s27 + $0x38] sm:$0xff] %v144_v7  ;;  %v178_v24 = vld [vmem:[%s1724_s26 + $0x180] sm:$0xff]  ;;  %v180_v25 = vld [vmem:[%s1724_s26 + $0x188] sm:$0xff]  ;;  %v182_v26 = vld [vmem:[%s1724_s26 + $0x190] sm:$0xff] }
  0x1c   : > { %147 = vst [vmem:[%s1729_s27 + $0x40] sm:$0xff] %v146_v8  ;;  %v184_v27 = vld [vmem:[%s1724_s26 + $0x198] sm:$0xff]  ;;  %v186_v28 = vld [vmem:[%s1724_s26 + $0x1c0] sm:$0xff]  ;;  %v188_v29 = vld [vmem:[%s1724_s26 + $0x1c8] sm:$0xff] }
  0x1d   : > { %149 = vst [vmem:[%s1729_s27 + $0x48] sm:$0xff] %v148_v9  ;;  %v190_v30 = vld [vmem:[%s1724_s26 + $0x1d0] sm:$0xff]  ;;  %v192_v31 = vld [vmem:[%s1724_s26 + $0x1d8] sm:$0xff] }
  0x1e   : > { %151 = vst [vmem:[%s1729_s27 + $0x50] sm:$0xff] %v150_v10 }
  0x1f   : > { %153 = vst [vmem:[%s1729_s27 + $0x58] sm:$0xff] %v152_v11 }
  0x20   : > { %155 = vst [vmem:[%s1729_s27 + $0x60] sm:$0xff] %v154_v12 }
  0x21   : > { %157 = vst [vmem:[%s1729_s27 + $0x68] sm:$0xff] %v156_v13 }
  0x22   : > { %159 = vst [vmem:[%s1729_s27 + $0x70] sm:$0xff] %v158_v14 }
  0x23   : > { %161 = vst [vmem:[%s1729_s27 + $0x78] sm:$0xff] %v160_v15 }
  0x24   : > { %163 = vst [vmem:[%s1729_s27 + $0x80] sm:$0xff] %v162_v16 }
  0x25   : > { %165 = vst [vmem:[%s1729_s27 + $0x88] sm:$0xff] %v164_v17 }
  0x26   : > { %167 = vst [vmem:[%s1729_s27 + $0x90] sm:$0xff] %v166_v18 }
  0x27   : > { %169 = vst [vmem:[%s1729_s27 + $0x98] sm:$0xff] %v168_v19 }
  0x28   : > { %171 = vst [vmem:[%s1729_s27 + $0xa0] sm:$0xff] %v170_v20 }
  0x29   : > { %173 = vst [vmem:[%s1729_s27 + $0xa8] sm:$0xff] %v172_v21 }
  0x2a   : > { %175 = vst [vmem:[%s1729_s27 + $0xb0] sm:$0xff] %v174_v22 }
  0x2b   : > { %177 = vst [vmem:[%s1729_s27 + $0xb8] sm:$0xff] %v176_v23 }
  0x2c   : > { %179 = vst [vmem:[%s1729_s27 + $0xc0] sm:$0xff] %v178_v24 }
  0x2d   : > { %181 = vst [vmem:[%s1729_s27 + $0xc8] sm:$0xff] %v180_v25 }
  0x2e   : > { %183 = vst [vmem:[%s1729_s27 + $0xd0] sm:$0xff] %v182_v26 }
  0x2f   : > { %185 = vst [vmem:[%s1729_s27 + $0xd8] sm:$0xff] %v184_v27 }
  0x30   : > { %187 = vst [vmem:[%s1729_s27 + $0xe0] sm:$0xff] %v186_v28 }
  0x31   : > { %189 = vst [vmem:[%s1729_s27 + $0xe8] sm:$0xff] %v188_v29 }
  0x32   : > { %191 = vst [vmem:[%s1729_s27 + $0xf0] sm:$0xff] %v190_v30 }
  0x33   : > { %193 = vst [vmem:[%s1729_s27 + $0xf8] sm:$0xff] %v192_v31 }
  0x34 PF: > { %s200_s28 = sand.u32 1, %s1638_s11   ;;  %s1401_s29 = sshll.u32 %s1642_s12, 9 }
  0x35   : > { %s1349_s30 = sshll.u32 %s200_s28, 9  ;;  %s209_s5 = scalar_lea.hbm %s2863_s1, %s1401_s29 }
  0x36   : > { %s210_s6 = sshll.u32 %s209_s5, 4  ;;  %s204_s7 = scalar_lea.vmem [#allocation5], %s1349_s30  ;;  %s211_s6 = int_to_ptr.hbm [resolvable:$true] %s210_s6 }
  0x37   : > { %s212_s8 = sshll.u32 %s204_s7, 4  ;;  %s201_s9 = scalar_lea.sflag [#allocation6], %s200_s28  ;;  %s213_s8 = int_to_ptr.vmem [resolvable:$true] %s212_s8 }
  0x38   : > { %s1576_s15 = sshra.s32 %s211_s6, 4  ;;  %s1582_s23 = scalar_lea.hbm %s2863_s1, 1024  ;;  %s1577_s15 = int_to_ptr.hbm [resolvable:$true] %s1576_s15 }
  0x39   : > { %s1578_s16 = scalar_lea.hbm %s1577_s15, 512  ;;  %p1583_p13 = scmp.lt.s32.totalorder %s1577_s15, %s2863_s1 }
  0x3a   : > { %p1579_p10 = scmp.ne.s32.totalorder %s1577_s15, %s1578_s16  ;;  %p1584_p0 = scmp.lt.s32.totalorder %s1582_s23, %s1578_s16 }
  0x3c   : > { %p1580_p11 = pnand %p1579_p10, %p1700_p4  ;;  %p1585_p1 = por %p1584_p0, %p1583_p13 }
  0x3e   : > { %p1581_p12 = pneg %p1580_p11 }
  0x40   : > { %p1586_p2 = pnand %p1585_p1, %p1581_p12 }
  0x42   : > { %1589 = shalt.err (!%p1586_p2)
}
  0x43   : > { %s1648_s26 = smov 512   ;;  %s1649_s27 = smov 32  }
  0x44   : > { %1403 = dma.hbm_to_vmem [thread:$0]  (%p1700_p4), %s211_s6, 8192, %s213_s8, %s201_s9, %s1648_s26, %s1648_s26, %s1649_s27  }
  0x45 PF: > { %p1352_p3 = scmp.ge.s32.totalorder %s1642_s12, 1  ;;  %p220_p6 = scmp.lt.s32.totalorder %s1642_s12, 3 }
  0x47   : > { %p221_p9 = pnand %p1352_p3, %p220_p6 }
  0x48   : > { %s227_s28 = sand.u32 (!%p221_p9), 1, %s1634_s10  }
  0x49   : > { %224 = sbr.rel (%p221_p9) target bundleno = 398 (0x18e), region = 47  ;;  %s1353_s29 = sshll.u32 (!%p221_p9), %s227_s28, 8 }
  0x4a   : > { %s1354_s30 = sshll.u32 (!%p221_p9), %s227_s28, 9  ;;  %s1810_s3 = scalar_lea.vmem (!%p221_p9), [#allocation4], %s1353_s29 }
  0x4b   : > { %s234_s4 = scalar_lea.sflag (!%p221_p9), [#allocation6], %s227_s28  ;;  %s1812_s5 = scalar_lea.vmem (!%p221_p9), [#allocation5], %s1354_s30 }
  0x4e   : > { %1625 = dma.done.wait (%p1708_p7), %s234_s4, 8192  }
  0x4f   : > { %1627 = vsyncadd (%p1708_p7), %s234_s4, 4294959104  ;;  %s1355_s18 = sshll.u32 %s227_s28, 6  ;;  %v1650_v32 = vmov 0.0   ;;  %s1820_s6 = smov 0  }
  0x50   : > { %263 = vst [vmem:[#allocation2] sm:$0xff] %v1650_v32  ;;  %s1818_s12 = scalar_lea.vmem [#allocation7], %s1355_s18 }
  0x51   : > { %264 = vst [vmem:[#allocation3] sm:$0xff] %v1650_v32 }
  0x52 LB: >> { %v367_v33 = vld [vmem:[%s1812_s5 + $0x1f0] sm:$0xff]  ;;  %v368_v34 = vld [vmem:[%s1812_s5 + $0x1f8] sm:$0xff]  ;;  %v366_v39 = vld [vmem:[%s1812_s5 + $0x1e8] sm:$0xff]  ;;  %s272_s19 = ssub.s32 7, %s1646_s6  ;;  %vm462_vm0 = vcmask 1041409   ;;  %vm464_vm1 = vcmask 1043459   ;;  %s1646_s6 = sphi %s1820_s6, %s270_s6  }
  0x53   : >> { %v363_v35 = vld [vmem:[%s1812_s5 + $0x1d0] sm:$0xff]  ;;  %409 = vmatpush.msra.mxu2 %v367_v33  ;;  %429 = vmatpush.msra.mxu3 %v368_v34  ;;  %v364_v36 = vld [vmem:[%s1812_s5 + $0x1d8] sm:$0xff]  ;;  %v365_v40 = vld [vmem:[%s1812_s5 + $0x1e0] sm:$0xff]  ;;  %s1893_s7 = scalar_select %p62_p5, %s1646_s6, %s272_s19  ;;  %vm456_vm2 = vcmask 1040384   ;;  %vm458_vm3 = vcmask 1042434   ;;  %vm470_vm4 = vcmask 1044484  }
  0x54   : >> { %v359_v37 = vld [vmem:[%s1812_s5 + $0x1b0] sm:$0xff]  ;;  %v360_v38 = vld [vmem:[%s1812_s5 + $0x1b8] sm:$0xff]  ;;  %v362_v41 = vld [vmem:[%s1812_s5 + $0x1c8] sm:$0xff]  ;;  %389 = vmatpush.msra.mxu1 %v366_v39  ;;  %369 = vmatpush.msra.mxu0 %v365_v40  ;;  %vm466_vm5 = vcmask 1042433   ;;  %vm460_vm6 = vcmask 1041408   ;;  %vm472_vm7 = vcmask 1043458  }
  0x55   : >> { %410 = vmatpush.msra.mxu2 %v363_v35  ;;  %430 = vmatpush.msra.mxu3 %v364_v36  ;;  %v355_v42 = vld [vmem:[%s1812_s5 + $0x190] sm:$0xff]  ;;  %v356_v43 = vld [vmem:[%s1812_s5 + $0x198] sm:$0xff]  ;;  %v361_v44 = vld [vmem:[%s1812_s5 + $0x1c0] sm:$0xff]  ;;  %s274_s8 = sshra.s32 %s1893_s7, 3  ;;  %s277_s9 = sand.u32 7, %s1893_s7  ;;  %vm476_vm8 = vcmask 1045509  }
  0x56   : >> { %v358_v45 = vld [vmem:[%s1812_s5 + $0x1a8] sm:$0xff]  ;;  %v357_v46 = vld [vmem:[%s1812_s5 + $0x1a0] sm:$0xff]  ;;  %390 = vmatpush.msra.mxu1 %v362_v41  ;;  %v351_v47 = vld [vmem:[%s1812_s5 + $0x170] sm:$0xff]  ;;  %370 = vmatpush.msra.mxu0 %v361_v44  ;;  %s1402_s15 = sshll.u32 %s274_s8, 5  ;;  %vm482_vm9 = vcmask 1046534   ;;  %vm478_vm10 = vcmask 1044483   ;;  %s2775_s22 = scalar_lea.vmem %s1818_s12, %s1893_s7 [#allocation7] }
  0x57   : >> { %411 = vmatpush.msra.mxu2 %v359_v37  ;;  %431 = vmatpush.msra.mxu3 %v360_v38  ;;  %v352_v48 = vld [vmem:[%s1812_s5 + $0x178] sm:$0xff]  ;;  %v354_v49 = vld [vmem:[%s1812_s5 + $0x188] sm:$0xff]  ;;  %v353_v50 = vld [vmem:[%s1812_s5 + $0x180] sm:$0xff]  ;;  %s280_s16 = sadd.s32 %s1402_s15, %s277_s9  ;;  %vm488_vm11 = vcmask 1046528   ;;  %vm484_vm12 = vcmask 1045508   ;;  %vm490_vm13 = vcmask 1046533  }
  0x58   : >> { %391 = vmatpush.msra.mxu1 %v358_v45  ;;  %v347_v51 = vld [vmem:[%s1812_s5 + $0x150] sm:$0xff]  ;;  %v348_v52 = vld [vmem:[%s1812_s5 + $0x158] sm:$0xff]  ;;  %371 = vmatpush.msra.mxu0 %v357_v46  ;;  %v350_v53 = vld [vmem:[%s1812_s5 + $0x168] sm:$0xff]  ;;  %s1900_s21 = scalar_lea.vmem %s1810_s3, %s280_s16 [#allocation4]  ;;  %vm495_vm14 = vcmask 1045504   ;;  %vm500_vm15 = vcmask 1046529   ;;  %s270_s6 = sadd.s32 1, %s1646_s6  }
  0x59   : >> { %412 = vmatpush.msra.mxu2 %v355_v42  ;;  %432 = vmatpush.msra.mxu3 %v356_v43  ;;  %v349_v54 = vld [vmem:[%s1812_s5 + $0x160] sm:$0xff]  ;;  %v343_v55 = vld [vmem:[%s1812_s5 + $0x130] sm:$0xff]  ;;  %v344_v56 = vld [vmem:[%s1812_s5 + $0x138] sm:$0xff]  ;;  %p267_p4 = scmp.ge.s32.totalorder %s270_s6, 8  }
  0x5a   : >> { %392 = vmatpush.msra.mxu1 %v354_v49  ;;  %372 = vmatpush.msra.mxu0 %v353_v50  ;;  %v346_v57 = vld [vmem:[%s1812_s5 + $0x148] sm:$0xff]  ;;  %v345_v58 = vld [vmem:[%s1812_s5 + $0x140] sm:$0xff]  ;;  %v339_v59 = vld [vmem:[%s1812_s5 + $0x110] sm:$0xff] }
  0x5b   : >> { %413 = vmatpush.msra.mxu2 %v351_v47  ;;  %433 = vmatpush.msra.mxu3 %v352_v48  ;;  %v340_v60 = vld [vmem:[%s1812_s5 + $0x118] sm:$0xff]  ;;  %v342_v61 = vld [vmem:[%s1812_s5 + $0x128] sm:$0xff]  ;;  %v341_v62 = vld [vmem:[%s1812_s5 + $0x120] sm:$0xff] }
  0x5c   : >> { %393 = vmatpush.msra.mxu1 %v350_v53  ;;  %373 = vmatpush.msra.mxu0 %v349_v54  ;;  %v335_v63 = vld [vmem:[%s1812_s5 + $0xf0] sm:$0xff]  ;;  %v336_v0 = vld [vmem:[%s1812_s5 + $0xf8] sm:$0xff]  ;;  %v338_v1 = vld [vmem:[%s1812_s5 + $0x108] sm:$0xff] }
  0x5d   : >> { %414 = vmatpush.msra.mxu2 %v347_v51  ;;  %434 = vmatpush.msra.mxu3 %v348_v52  ;;  %v337_v2 = vld [vmem:[%s1812_s5 + $0x100] sm:$0xff]  ;;  %v331_v3 = vld [vmem:[%s1812_s5 + $0xd0] sm:$0xff]  ;;  %v332_v4 = vld [vmem:[%s1812_s5 + $0xd8] sm:$0xff] }
  0x5e   : >> { %394 = vmatpush.msra.mxu1 %v346_v57  ;;  %374 = vmatpush.msra.mxu0 %v345_v58  ;;  %v334_v5 = vld [vmem:[%s1812_s5 + $0xe8] sm:$0xff]  ;;  %v333_v6 = vld [vmem:[%s1812_s5 + $0xe0] sm:$0xff]  ;;  %v327_v7 = vld [vmem:[%s1812_s5 + $0xb0] sm:$0xff] }
  0x5f   : >> { %415 = vmatpush.msra.mxu2 %v343_v55  ;;  %435 = vmatpush.msra.mxu3 %v344_v56  ;;  %v328_v8 = vld [vmem:[%s1812_s5 + $0xb8] sm:$0xff]  ;;  %v330_v9 = vld [vmem:[%s1812_s5 + $0xc8] sm:$0xff]  ;;  %v329_v10 = vld [vmem:[%s1812_s5 + $0xc0] sm:$0xff] }
  0x60   : >> { %395 = vmatpush.msra.mxu1 %v342_v61  ;;  %375 = vmatpush.msra.mxu0 %v341_v62  ;;  %v323_v11 = vld [vmem:[%s1812_s5 + $0x90] sm:$0xff]  ;;  %v324_v12 = vld [vmem:[%s1812_s5 + $0x98] sm:$0xff]  ;;  %v326_v13 = vld [vmem:[%s1812_s5 + $0xa8] sm:$0xff] }
  0x61   : >> { %416 = vmatpush.msra.mxu2 %v339_v59  ;;  %436 = vmatpush.msra.mxu3 %v340_v60  ;;  %v325_v14 = vld [vmem:[%s1812_s5 + $0xa0] sm:$0xff]  ;;  %v319_v15 = vld [vmem:[%s1812_s5 + $0x70] sm:$0xff]  ;;  %v320_v16 = vld [vmem:[%s1812_s5 + $0x78] sm:$0xff] }
  0x62   : >> { %396 = vmatpush.msra.mxu1 %v338_v1  ;;  %376 = vmatpush.msra.mxu0 %v337_v2  ;;  %v322_v17 = vld [vmem:[%s1812_s5 + $0x88] sm:$0xff]  ;;  %v321_v18 = vld [vmem:[%s1812_s5 + $0x80] sm:$0xff]  ;;  %v315_v19 = vld [vmem:[%s1812_s5 + $0x50] sm:$0xff] }
  0x63   : >> { %417 = vmatpush.msra.mxu2 %v335_v63  ;;  %437 = vmatpush.msra.mxu3 %v336_v0  ;;  %v316_v20 = vld [vmem:[%s1812_s5 + $0x58] sm:$0xff]  ;;  %v318_v21 = vld [vmem:[%s1812_s5 + $0x68] sm:$0xff]  ;;  %v317_v22 = vld [vmem:[%s1812_s5 + $0x60] sm:$0xff] }
  0x64   : >> { %397 = vmatpush.msra.mxu1 %v334_v5  ;;  %377 = vmatpush.msra.mxu0 %v333_v6  ;;  %v311_v23 = vld [vmem:[%s1812_s5 + $0x30] sm:$0xff]  ;;  %v312_v24 = vld [vmem:[%s1812_s5 + $0x38] sm:$0xff]  ;;  %v314_v25 = vld [vmem:[%s1812_s5 + $0x48] sm:$0xff] }
  0x65   : >> { %418 = vmatpush.msra.mxu2 %v331_v3  ;;  %438 = vmatpush.msra.mxu3 %v332_v4  ;;  %v313_v26 = vld [vmem:[%s1812_s5 + $0x40] sm:$0xff]  ;;  %v307_v27 = vld [vmem:[%s1812_s5 + $0x10] sm:$0xff]  ;;  %v308_v28 = vld [vmem:[%s1812_s5 + $0x18] sm:$0xff] }
  0x66   : >> { %398 = vmatpush.msra.mxu1 %v330_v9  ;;  %378 = vmatpush.msra.mxu0 %v329_v10  ;;  %v304_v29 = vld [vmem:[#allocation2] sm:$0xff]  ;;  %v310_v30 = vld [vmem:[%s1812_s5 + $0x28] sm:$0xff]  ;;  %v309_v31 = vld [vmem:[%s1812_s5 + $0x20] sm:$0xff] }
  0x67   : >> { %419 = vmatpush.msra.mxu2 %v327_v7  ;;  %439 = vmatpush.msra.mxu3 %v328_v8  ;;  %v306_v32 = vld [vmem:[%s1812_s5 + $0x8] sm:$0xff]  ;;  %v305_v33 = vld [vmem:[%s1812_s5] sm:$0xff] }
  0x68   : >> { %399 = vmatpush.msra.mxu1 %v326_v13  ;;  %379 = vmatpush.msra.mxu0 %v325_v14  ;;  %v282_v48 = vld [vmem:[%s1900_s21] ss:$8 sm:$0xf] }
  0x69   : >> { %420 = vmatpush.msra.mxu2 %v323_v11  ;;  %440 = vmatpush.msra.mxu3 %v324_v12  ;;  %v1359_v56 = vld [vmem:[%s1900_s21 + $0x20] ss:$8 sm:$0xf] }
  0x6a   : >> { %400 = vmatpush.msra.mxu1 %v322_v17  ;;  %380 = vmatpush.msra.mxu0 %v321_v18  ;;  %v1361_v62 = vld [vmem:[%s1900_s21 + $0x40] ss:$8 sm:$0xf] }
  0x6b   : >> { %421 = vmatpush.msra.mxu2 %v319_v15  ;;  %441 = vmatpush.msra.mxu3 %v320_v16  ;;  %v1363_v4 = vld [vmem:[%s1900_s21 + $0x60] ss:$8 sm:$0xf] }
  0x6c   : >> { %401 = vmatpush.msra.mxu1 %v318_v21  ;;  %381 = vmatpush.msra.mxu0 %v317_v22  ;;  %v1365_v9 = vld [vmem:[%s1900_s21 + $0x80] ss:$8 sm:$0xf] }
  0x6d   : >> { %422 = vmatpush.msra.mxu2 %v315_v19  ;;  %442 = vmatpush.msra.mxu3 %v316_v20  ;;  %v1367_v12 = vld [vmem:[%s1900_s21 + $0xa0] ss:$8 sm:$0xf] }
  0x6e   : >> { %402 = vmatpush.msra.mxu1 %v314_v25  ;;  %382 = vmatpush.msra.mxu0 %v313_v26  ;;  %v1369_v21 = vld [vmem:[%s1900_s21 + $0xc0] ss:$8 sm:$0xf] }
  0x6f   : >> { %423 = vmatpush.msra.mxu2 %v311_v23  ;;  %443 = vmatpush.msra.mxu3 %v312_v24 }
  0x70   : >> { %403 = vmatpush.msra.mxu1 %v310_v30  ;;  %383 = vmatpush.msra.mxu0 %v309_v31 }
  0x71   : >> { %424 = vmatpush.msra.mxu2 %v307_v27  ;;  %444 = vmatpush.msra.mxu3 %v308_v28 }
  0x72   : >> { %425 = vmatmul.f32.vlgmr.msra.gmra.mxu2 %v304_v29  ;;  %445 = vmatmul.f32.vlgmr.msra.gmra.mxu3 %v304_v29 }
  0x73   : >> { %404 = vmatpush.msra.mxu1 %v306_v32  ;;  %384 = vmatpush.msra.mxu0 %v305_v33 }
  0x74   : >> { %405 = vmatmul.f32.vlgmr.msra.gmra.mxu1 %v304_v29  ;;  %385 = vmatmul.f32.vlgmr.msra.gmra.mxu0 %v304_v29  ;;  %v1371_v29 = vld [vmem:[%s1900_s21 + $0xe0] ss:$8 sm:$0xf] }
  0xf1   : >> { %v406_v34 = vpop.f32.mrf.mxu1  ;;  %v386_v40 = vpop.f32.mrf.mxu0 }
  0xf2   : >> { %v453_v37 = vrot.slane %v406_v34, 7 }
  0xf4   : >> { %v463_v41 = vsel %vm462_vm0, %v386_v40, %v453_v37  ;;  %v457_v43 = vsel %vm456_vm2, %v386_v40, %v453_v37  ;;  %v469_v45 = vsel %vm458_vm3, %v386_v40, %v453_v37  ;;  %v475_v51 = vsel %vm464_vm1, %v386_v40, %v453_v37 }
  0xf5   : >> { %v426_v35 = vpop.f32.mrf.mxu2  ;;  %v446_v36 = vpop.f32.mrf.mxu3  ;;  %v481_v54 = vsel %vm470_vm4, %v386_v40, %v453_v37  ;;  %v487_v60 = vsel %vm476_vm8, %v386_v40, %v453_v37  ;;  %v493_v6 = vsel %vm482_vm9, %v386_v40, %v453_v37  ;;  %v498_v15 = vsel %vm488_vm11, %v453_v37, %v386_v40 }
  0xf6   : >> { %v454_v38 = vrot.slane %v426_v35, 6  ;;  %v455_v39 = vrot.slane %v446_v36, 5 }
  0xf8   : >> { %v465_v42 = vsel %vm464_vm1, %v454_v38, %v455_v39  ;;  %v459_v44 = vsel %vm458_vm3, %v454_v38, %v455_v39  ;;  %v471_v46 = vsel %vm470_vm4, %v454_v38, %v455_v39  ;;  %v477_v52 = vsel %vm476_vm8, %v454_v38, %v455_v39 }
  0xf9   : >> { %v467_v47 = vsel %vm466_vm5, %v463_v41, %v465_v42  ;;  %v461_v49 = vsel %vm460_vm6, %v457_v43, %v459_v44  ;;  %v473_v50 = vsel %vm472_vm7, %v469_v45, %v471_v46  ;;  %v483_v55 = vsel %vm482_vm9, %v454_v38, %v455_v39 }
  0xfa   : >> { %v468_v53 = vrot.slane %v467_v47, 1  ;;  %v1910_v57 = vadd.f32 %v461_v49, %v282_v48  ;;  %v474_v58 = vrot.slane %v473_v50, 2  ;;  %v479_v59 = vsel %vm478_vm10, %v475_v51, %v477_v52 }
  0xfb   : >> { %v489_v61 = vsel %vm488_vm11, %v455_v39, %v454_v38  ;;  %v485_v63 = vsel %vm484_vm12, %v481_v54, %v483_v55  ;;  %v480_v1 = vrot.slane %v479_v59, 3  ;;  %v494_v7 = vsel %vm456_vm2, %v454_v38, %v455_v39 }
  0xfc   : >> { %v1915_v0 = vadd.f32 %v1359_v56, %v468_v53  ;;  %v491_v2 = vsel %vm490_vm13, %v487_v60, %v489_v61  ;;  %v1372_v3 = vmul.f32 -1.442695, %v1910_v57  ;;  %v486_v5 = vrot.slane %v485_v63, 4 }
  0xfd   : >> { %v1921_v8 = vadd.f32 %v1361_v62, %v474_v58  ;;  %v492_v10 = vrot.slane %v491_v2, 5  ;;  %v496_v13 = vsel %vm495_vm14, %v494_v7, %v493_v6  ;;  %v1926_v14 = vadd.f32 %v1363_v4, %v480_v1 }
  0xfe   : >> { %v1373_v11 = vmul.f32 -1.442695, %v1915_v0  ;;  %1448 = vpow2.f32 %v1372_v3  ;;  %v499_v16 = vsel %vm462_vm0, %v454_v38, %v455_v39  ;;  %v1930_v17 = vadd.f32 %v1365_v9, %v486_v5 }
  0xff   : >> { %v1374_v18 = vmul.f32 -1.442695, %v1921_v8  ;;  %v497_v19 = vrot.slane %v496_v13, 6  ;;  %v1933_v20 = vadd.f32 %v1367_v12, %v492_v10  ;;  %v501_v22 = vsel %vm500_vm15, %v499_v16, %v498_v15 }
 0x100   : >> { %1450 = vpow2.f32 %v1373_v11  ;;  %v1375_v23 = vmul.f32 -1.442695, %v1926_v14  ;;  %v1376_v24 = vmul.f32 -1.442695, %v1930_v17  ;;  %v502_v26 = vrot.slane %v501_v22, 7 }
 0x101   : >> { %1452 = vpow2.f32 %v1374_v18  ;;  %v1938_v27 = vadd.f32 %v1369_v21, %v497_v19  ;;  %v1377_v28 = vmul.f32 -1.442695, %v1933_v20  ;;  %v679_v46 = vrot.slane %v1910_v57, 1 }
 0x102   : >> { %1454 = vpow2.f32 %v1375_v23  ;;  %v1944_v33 = vadd.f32 %v1371_v29, %v502_v26  ;;  %v680_v49 = vrot.slane %v1915_v0, 1  ;;  %v681_v50 = vrot.slane %v1921_v8, 1 }
 0x103   : >> { %1456 = vpow2.f32 %v1376_v24  ;;  %v1378_v34 = vmul.f32 -1.442695, %v1938_v27  ;;  %v682_v51 = vrot.slane %v1926_v14, 1  ;;  %v683_v52 = vrot.slane %v1930_v17, 1 }
 0x104   : >> { %v1449_v25 = vpop.eup %1448  ;;  %1458 = vpow2.f32 %v1377_v28  ;;  %v1379_v39 = vmul.f32 -1.442695, %v1944_v33  ;;  %v684_v55 = vrot.slane %v1933_v20, 1  ;;  %v685_v59 = vrot.slane %v1938_v27, 1 }
 0x105   : >> { %v1942_v31 = vadd.f32 1.0, %v1449_v25  ;;  %v1380_v60 = vmul.f32 -1.442695, %v679_v46  ;;  %v686_v62 = vrot.slane %v1944_v33, 1  ;;  %v1381_v63 = vmul.f32 -1.442695, %v680_v49 }
 0x106   : >> { %v1451_v30 = vpop.eup %1450  ;;  %v1382_v3 = vmul.f32 -1.442695, %v681_v50  ;;  %v1988_v4 = vmul.f32 -1.442695, %v682_v51  ;;  %v1990_v5 = vmul.f32 -1.442695, %v683_v52 }
 0x107   : >> { %v1453_v32 = vpop.eup %1452  ;;  %v1947_v35 = vadd.f32 1.0, %v1451_v30  ;;  %1460 = vrcp.f32 %v1942_v31  ;;  %v562_v9 = vand.u32 2147483648, %v1942_v31  ;;  %v1998_v10 = vmul.f32 -1.442695, %v684_v55 }
 0x108   : >> { %v1455_v36 = vpop.eup %1454  ;;  %v1950_v37 = vadd.f32 1.0, %v1453_v32  ;;  %1462 = vpow2.f32 %v1378_v34  ;;  %v560_v11 = vand.u32 2147483647, %v1942_v31  ;;  %v2001_v13 = vmul.f32 -1.442695, %v685_v59 }
 0x109   : >> { %v1457_v38 = vpop.eup %1456  ;;  %1464 = vrcp.f32 %v1947_v35  ;;  %v1954_v41 = vadd.f32 1.0, %v1455_v36  ;;  %vm556_vm0 = vweird.f32 %v1942_v31  ;;  %v577_v18 = vand.u32 2147483648, %v1947_v35 }
 0x10a   : >> { %v1459_v40 = vpop.eup %1458  ;;  %v1956_v42 = vadd.f32 1.0, %v1457_v38  ;;  %1466 = vrcp.f32 %v1950_v37  ;;  %v2008_v19 = vmul.f32 -1.442695, %v686_v62  ;;  %vm571_vm1 = vweird.f32 %v1947_v35 }
 0x10b   : >> { %1468 = vpow2.f32 %v1379_v39  ;;  %v1961_v44 = vadd.f32 1.0, %v1459_v40  ;;  %v575_v21 = vand.u32 2147483647, %v1947_v35  ;;  %v563_v25 = vor.u32 1.1754944e-38, %v562_v9 }
 0x10c   : >> { %1470 = vrcp.f32 %v1954_v41  ;;  %v592_v26 = vand.u32 2147483648, %v1950_v37  ;;  %v607_v28 = vand.u32 2147483648, %v1954_v41  ;;  %vm2019_vm2 = vcmp.eq.f32.partialorder %v560_v11, 8.507059e+37 }
 0x10d   : >> { %v1959_v43 = vpop.eup %1460  ;;  %1472 = vrcp.f32 %v1956_v42  ;;  %vm586_vm3 = vweird.f32 %v1950_v37  ;;  %v590_v32 = vand.u32 2147483647, %v1950_v37  ;;  %v578_v39 = vor.u32 1.1754944e-38, %v577_v18 }
 0x10e   : >> { %v1463_v45 = vpop.eup %1462  ;;  %v552_v48 = vmul.f32 %v1959_v43, %v1942_v31  ;;  %1474 = vrcp.f32 %v1961_v44  ;;  %vm557_vm4 = vweird.f32 %v1959_v43  ;;  %vm2032_vm5 = vcmp.eq.f32.partialorder %v575_v21, 8.507059e+37 }
 0x10f   : >> { %v1965_v47 = vpop.eup %1464  ;;  %v1976_v54 = vadd.f32 1.0, %v1463_v45  ;;  %v605_v49 = vand.u32 2147483647, %v1954_v41  ;;  %v593_v51 = vor.u32 1.1754944e-38, %v592_v26  ;;  %vm601_vm7 = vweird.f32 %v1954_v41  ;;  %vm2045_vm8 = vmor %vm556_vm0, %vm557_vm4 }
 0x110   : >> { %v1974_v53 = vpop.eup %1466  ;;  %v567_v58 = vmul.f32 %v1965_v47, %v1947_v35  ;;  %v553_v61 = vsub.f32 1.0, %v552_v48  ;;  %vm572_vm6 = vweird.f32 %v1965_v47  ;;  %v2040_v52 = vor.u32 1.1754944e-38, %v607_v28 }
 0x111   : >> { %v1469_v56 = vpop.eup %1468  ;;  %v582_v2 = vmul.f32 %v1974_v53, %v1950_v37  ;;  %1476 = vrcp.f32 %v1976_v54  ;;  %v622_v55 = vand.u32 2147483648, %v1956_v42  ;;  %vm2050_vm9 = vcmp.eq.f32.partialorder %v590_v32, 8.507059e+37  ;;  %vm2075_vm12 = vmor %vm571_vm1, %vm572_vm6 }
 0x112   : >> { %v1984_v1 = vpop.eup %1470  ;;  %v1994_v7 = vadd.f32 1.0, %v1469_v56  ;;  %v568_v12 = vsub.f32 1.0, %v567_v58  ;;  %1478 = vpow2.f32 %v1380_v60  ;;  %v554_v16 = vmul.f32 %v1959_v43, %v553_v61 }
 0x113   : >> { %v1992_v6 = vpop.eup %1472  ;;  %v583_v22 = vsub.f32 1.0, %v582_v2  ;;  %v597_v23 = vmul.f32 %v1984_v1, %v1954_v41  ;;  %vm616_vm10 = vweird.f32 %v1956_v42  ;;  %v620_v60 = vand.u32 2147483647, %v1956_v42 }
 0x114   : >> { %v2003_v15 = vpop.eup %1474  ;;  %v612_v24 = vmul.f32 %v1992_v6, %v1956_v42  ;;  %1480 = vrcp.f32 %v1994_v7  ;;  %v569_v30 = vmul.f32 %v1965_v47, %v568_v12  ;;  %v555_v38 = vadd.f32 %v1959_v43, %v554_v16 }
 0x115   : >> { %v627_v34 = vmul.f32 %v2003_v15, %v1961_v44  ;;  %1482 = vpow2.f32 %v1381_v63  ;;  %v584_v46 = vmul.f32 %v1974_v53, %v583_v22  ;;  %v598_v48 = vsub.f32 1.0, %v597_v23 }
 0x116   : >> { %1484 = vpow2.f32 %v1382_v3  ;;  %v613_v50 = vsub.f32 1.0, %v612_v24  ;;  %v570_v58 = vadd.f32 %v1965_v47, %v569_v30  ;;  %v559_v31 = vsel %vm2045_vm8, %v1959_v43, %v555_v38 }
 0x117   : >> { %v2028_v36 = vpop.eup %1476  ;;  %v628_v61 = vsub.f32 1.0, %v627_v34  ;;  %vm587_vm11 = vweird.f32 %v1974_v53  ;;  %v635_v2 = vand.u32 2147483647, %v1961_v44  ;;  %v585_v11 = vadd.f32 %v1974_v53, %v584_v46 }
 0x118   : >> { %v1479_v40 = vpop.eup %1478  ;;  %v642_v62 = vmul.f32 %v2028_v36, %v1976_v54  ;;  %v599_v12 = vmul.f32 %v1984_v1, %v598_v48  ;;  %v614_v16 = vmul.f32 %v1992_v6, %v613_v50  ;;  %1486 = vpow2.f32 %v1988_v4  ;;  %vm2100_vm0 = vmor %vm586_vm3, %vm587_vm11 }
 0x119   : >> { %v2065_v3 = vadd.f32 1.0, %v1479_v40  ;;  %vm602_vm13 = vweird.f32 %v1984_v1  ;;  %v623_v21 = vor.u32 1.1754944e-38, %v622_v55  ;;  %vm631_vm14 = vweird.f32 %v1961_v44 }
 0x11a   : >> { %v2058_v63 = vpop.eup %1480  ;;  %v637_v22 = vand.u32 2147483648, %v1961_v44  ;;  %v574_v4 = vsel %vm2075_vm12, %v1965_v47, %v570_v58  ;;  %vm2085_vm15 = vcmp.eq.f32.partialorder %v605_v49, 8.507059e+37  ;;  %v629_v35 = vmul.f32 %v2003_v15, %v628_v61  ;;  %vm2134_vm8 = vmor %vm601_vm7, %vm602_vm13 }
 0x11b   : >> { %v1483_v9 = vpop.eup %1482  ;;  %v643_v24 = vsub.f32 1.0, %v642_v62  ;;  %v657_v26 = vmul.f32 %v2058_v63, %v1994_v7  ;;  %v2094_v28 = vsel %vm2019_vm2, %v563_v25, %v559_v31  ;;  %vm617_vm1 = vweird.f32 %v1992_v6 }
 0x11c   : >> { %v1485_v18 = vpop.eup %1484  ;;  %vm2105_vm4 = vcmp.eq.f32.partialorder %v620_v60, 8.507059e+37  ;;  %v2109_v32 = vadd.f32 1.0, %v1483_v9  ;;  %1488 = vrcp.f32 %v2065_v3  ;;  %v589_v25 = vsel %vm2100_vm0, %v1974_v53, %v585_v11 }
 0x11d   : >> { %v600_v37 = vadd.f32 %v1984_v1, %v599_v12  ;;  %v615_v29 = vadd.f32 %v1992_v6, %v614_v16  ;;  %vm2117_vm2 = vcmp.eq.f32.partialorder %v635_v2, 8.507059e+37  ;;  %vm646_vm3 = vweird.f32 %v1976_v54 }
 0x11e   : >> { %v2122_v38 = vadd.f32 1.0, %v1485_v18  ;;  %v2126_v40 = vsel %vm2032_vm5, %v578_v39, %v574_v4  ;;  %vm632_vm6 = vweird.f32 %v2003_v15  ;;  %v638_v46 = vor.u32 1.1754944e-38, %v637_v22  ;;  %v1487_v53 = vpop.eup %1486  ;;  %vm2149_vm5 = vmor %vm616_vm10, %vm617_vm1 }
 0x11f   : >> { %1490 = vpow2.f32 %v1990_v5  ;;  %v630_v49 = vadd.f32 %v2003_v15, %v629_v35  ;;  %v644_v45 = vmul.f32 %v2028_v36, %v643_v24  ;;  %v658_v39 = vsub.f32 1.0, %v657_v26  ;;  %vm2170_vm7 = vmor %vm631_vm14, %vm632_vm6 }
 0x120   : >> { %1492 = vpow2.f32 %v1998_v10  ;;  %v2143_v50 = vsel %vm2050_vm9, %v593_v51, %v589_v25  ;;  %v650_v5 = vand.u32 2147483647, %v1976_v54  ;;  %v652_v55 = vand.u32 2147483648, %v1976_v54 }
 0x121   : >> { %1494 = vrcp.f32 %v2109_v32  ;;  %v604_v10 = vsel %vm2134_vm8, %v1984_v1, %v600_v37  ;;  %v619_v51 = vsel %vm2149_vm5, %v1992_v6, %v615_v29  ;;  %v665_v42 = vand.u32 2147483647, %v1994_v7 }
 0x122   : >> { %1496 = vrcp.f32 %v2122_v38  ;;  %v2164_v56 = vpop.eup %1488  ;;  %vm647_vm9 = vweird.f32 %v2028_v36  ;;  %v667_v1 = vand.u32 2147483648, %v1994_v7  ;;  %v2177_v6 = vadd.f32 1.0, %v1487_v53 }
 0x123   : >> { %1498 = vpow2.f32 %v2001_v13  ;;  %v634_v59 = vsel %vm2170_vm7, %v2003_v15, %v630_v49  ;;  %v645_v60 = vadd.f32 %v2028_v36, %v644_v45  ;;  %v659_v44 = vmul.f32 %v2058_v63, %v658_v39  ;;  %vm2216_vm13 = vmor %vm646_vm3, %vm647_vm9 }
 0x124   : >> { %1500 = vpow2.f32 %v2008_v19  ;;  %v2188_v62 = vsel %vm2085_vm15, %v2040_v52, %v604_v10  ;;  %vm2190_vm10 = vcmp.eq.f32.partialorder %v650_v5, 8.507059e+37  ;;  %vm661_vm11 = vweird.f32 %v1994_v7 }
 0x125   : >> { %v1491_v61 = vpop.eup %1490  ;;  %v738_v15 = vand.u32 2147483648, %v2065_v3  ;;  %v2198_v2 = vsel %vm2105_vm4, %v623_v21, %v619_v51  ;;  %v653_v19 = vor.u32 1.1754944e-38, %v652_v55  ;;  %vm2200_vm12 = vcmp.eq.f32.partialorder %v665_v42, 8.507059e+37 }
 0x126   : >> { %v1493_v31 = vpop.eup %1492  ;;  %v728_v52 = vmul.f32 %v2164_v56, %v2065_v3  ;;  %v2210_v12 = vsel %vm2117_vm2, %v638_v46, %v634_v59  ;;  %v668_v18 = vor.u32 1.1754944e-38, %v667_v1  ;;  %1502 = vrcp.f32 %v2177_v6 }
 0x127   : >> { %v2206_v11 = vpop.eup %1494  ;;  %v847_v43 = vrot.slane %v1910_v57, 2  ;;  %v649_v22 = vsel %vm2216_vm13, %v2028_v36, %v645_v60  ;;  %v660_v4 = vadd.f32 %v2058_v63, %v659_v44  ;;  %vm662_vm14 = vweird.f32 %v2058_v63 }
 0x128   : >> { %v2222_v21 = vpop.eup %1496  ;;  %v736_v54 = vand.u32 2147483647, %v2065_v3  ;;  %v2230_v35 = vadd.f32 1.0, %v1491_v61  ;;  %v2232_v24 = vor.u32 1.1754944e-38, %v738_v15  ;;  %v848_v26 = vrot.slane %v1915_v0, 2  ;;  %vm2247_vm15 = vmor %vm661_vm11, %vm662_vm14 }
 0x129   : >> { %v1499_v23 = vpop.eup %1498  ;;  %v849_v47 = vrot.slane %v1921_v8, 2  ;;  %v2236_v25 = vadd.f32 1.0, %v1493_v31  ;;  %v729_v37 = vsub.f32 1.0, %v728_v52  ;;  %v743_v36 = vmul.f32 %v2206_v11, %v2109_v32 }
 0x12a   : >> { %v1501_v30 = vpop.eup %1500  ;;  %v850_v29 = vrot.slane %v1926_v14, 2  ;;  %v2243_v34 = vsel %vm2190_vm10, %v653_v19, %v649_v22  ;;  %v753_v53 = vand.u32 2147483648, %v2109_v32  ;;  %v758_v48 = vmul.f32 %v2222_v21, %v2122_v38 }
 0x12b   : >> { %v851_v49 = vrot.slane %v1930_v17, 2  ;;  %v664_v45 = vsel %vm2247_vm15, %v2058_v63, %v660_v4  ;;  %v2258_v39 = vadd.f32 1.0, %v1499_v23  ;;  %vm732_vm0 = vweird.f32 %v2065_v3 }
 0x12c   : >> { %v751_v7 = vand.u32 2147483647, %v2109_v32  ;;  %v871_v41 = vrot.slane %v1910_v57, 3  ;;  %v2263_v5 = vpop.eup %1502  ;;  %v2265_v55 = vadd.f32 1.0, %v1501_v30  ;;  %1504 = vrcp.f32 %v2230_v35 }
 0x12d   : >> { %v872_v10 = vrot.slane %v1915_v0, 3  ;;  %v873_v51 = vrot.slane %v1921_v8, 3  ;;  %v730_v63 = vmul.f32 %v2164_v56, %v729_v37  ;;  %v744_v42 = vsub.f32 1.0, %v743_v36 }
 0x12e   : >> { %v766_v58 = vand.u32 2147483647, %v2122_v38  ;;  %1506 = vrcp.f32 %v2236_v25  ;;  %v2275_v1 = vsel %vm2200_vm12, %v668_v18, %v664_v45  ;;  %v2277_v59 = vor.u32 1.1754944e-38, %v753_v53 }
 0x12f   : >> { %v759_v60 = vsub.f32 1.0, %v758_v48  ;;  %v768_v44 = vand.u32 2147483648, %v2122_v38  ;;  %vm2280_vm1 = vcmp.eq.f32.partialorder %v736_v54, 8.507059e+37  ;;  %vm747_vm4 = vweird.f32 %v2109_v32 }
 0x130   : >> { %v773_v13 = vmul.f32 %v2263_v5, %v2177_v6  ;;  %1508 = vrcp.f32 %v2258_v39  ;;  %v874_v15 = vrot.slane %v1926_v14, 3  ;;  %v1388_v31 = vmul.f32 -1.442695, %v871_v41 }
 0x131   : >> { %1510 = vrcp.f32 %v2265_v55  ;;  %v875_v19 = vrot.slane %v1930_v17, 3  ;;  %v1389_v9 = vmul.f32 -1.442695, %v872_v10  ;;  %v1390_v52 = vmul.f32 -1.442695, %v873_v51 }
 0x132   : >> { %v731_v16 = vadd.f32 %v2164_v56, %v730_v63  ;;  %vm733_vm2 = vweird.f32 %v2164_v56  ;;  %v745_v18 = vmul.f32 %v2206_v11, %v744_v42  ;;  %1512 = vpow2.f32 %v1388_v31  ;;  %v2294_v22 = vpop.eup %1504 }
 0x133   : >> { %v2296_v4 = vor.u32 1.1754944e-38, %v768_v44  ;;  %v781_v54 = vand.u32 2147483647, %v2177_v6  ;;  %v783_v23 = vand.u32 2147483648, %v2177_v6  ;;  %1514 = vpow2.f32 %v1389_v9  ;;  %vm2307_vm8 = vmor %vm732_vm0, %vm733_vm2 }
 0x134   : >> { %v2300_v30 = vpop.eup %1506  ;;  %vm748_vm3 = vweird.f32 %v2206_v11  ;;  %vm762_vm6 = vweird.f32 %v2122_v38  ;;  %v798_v37 = vand.u32 2147483648, %v2230_v35  ;;  %1516 = vpow2.f32 %v1390_v52 }
 0x135   : >> { %v1391_v36 = vmul.f32 -1.442695, %v874_v15  ;;  %vm2311_vm5 = vcmp.eq.f32.partialorder %v751_v7, 8.507059e+37  ;;  %v760_v48 = vmul.f32 %v2222_v21, %v759_v60  ;;  %v774_v45 = vsub.f32 1.0, %v773_v13  ;;  %vm2348_vm11 = vmor %vm747_vm4, %vm748_vm3 }
 0x136   : >> { %v796_v41 = vand.u32 2147483647, %v2230_v35  ;;  %v1392_v10 = vmul.f32 -1.442695, %v875_v19  ;;  %v2317_v51 = vpop.eup %1508  ;;  %v735_v3 = vsel %vm2307_vm8, %v2164_v56, %v731_v16  ;;  %v746_v63 = vadd.f32 %v2206_v11, %v745_v18 }
 0x137   : >> { %v788_v7 = vmul.f32 %v2294_v22, %v2230_v35  ;;  %v876_v42 = vrot.slane %v1933_v20, 3  ;;  %v2326_v44 = vpop.eup %1510  ;;  %vm763_vm7 = vweird.f32 %v2222_v21  ;;  %vm777_vm9 = vweird.f32 %v2177_v6 }
 0x138   : >> { %v2330_v60 = vor.u32 1.1754944e-38, %v783_v23  ;;  %v803_v13 = vmul.f32 %v2300_v30, %v2236_v25  ;;  %v811_v56 = vand.u32 2147483647, %v2236_v25  ;;  %v1513_v15 = vpop.eup %1512  ;;  %vm778_vm10 = vweird.f32 %v2263_v5  ;;  %vm2383_vm0 = vmor %vm762_vm6, %vm763_vm7 }
 0x139   : >> { %v2336_v31 = vor.u32 1.1754944e-38, %v798_v37  ;;  %v813_v19 = vand.u32 2147483648, %v2236_v25  ;;  %1518 = vpow2.f32 %v1391_v36  ;;  %v1515_v9 = vpop.eup %1514  ;;  %v2342_v52 = vsel %vm2280_vm1, %v2232_v24, %v735_v3  ;;  %vm2410_vm4 = vmor %vm777_vm9, %vm778_vm10 }
 0x13a   : >> { %v761_v18 = vadd.f32 %v2222_v21, %v760_v48  ;;  %vm2353_vm12 = vcmp.eq.f32.partialorder %v766_v58, 8.507059e+37  ;;  %v775_v37 = vmul.f32 %v2263_v5, %v774_v45  ;;  %1520 = vpow2.f32 %v1392_v10  ;;  %v1517_v61 = vpop.eup %1516 }
 0x13b   : >> { %v750_v24 = vsel %vm2348_vm11, %v2206_v11, %v746_v63  ;;  %v789_v36 = vsub.f32 1.0, %v788_v7  ;;  %vm793_vm13 = vweird.f32 %v2294_v22  ;;  %v1393_v32 = vmul.f32 -1.442695, %v876_v42 }
 0x13c   : >> { %vm2362_vm14 = vcmp.eq.f32.partialorder %v781_v54, 8.507059e+37  ;;  %v804_v58 = vsub.f32 1.0, %v803_v13  ;;  %v818_v48 = vmul.f32 %v2317_v51, %v2258_v39  ;;  %v877_v45 = vrot.slane %v1938_v27, 3 }
 0x13d   : >> { %v2369_v10 = vadd.f32 1.0, %v1513_v15  ;;  %vm792_vm15 = vweird.f32 %v2230_v35  ;;  %v833_v11 = vmul.f32 %v2326_v44, %v2265_v55  ;;  %1522 = vtanh.f32 %v847_v43 }
 0x13e   : >> { %v878_v54 = vrot.slane %v1944_v33, 3  ;;  %v2377_v3 = vadd.f32 1.0, %v1515_v9  ;;  %v776_v7 = vadd.f32 %v2263_v5, %v775_v37  ;;  %v2388_v42 = vor.u32 1.1754944e-38, %v813_v19  ;;  %vm2464_vm7 = vmor %vm792_vm15, %vm793_vm13 }
 0x13f   : >> { %1524 = vtanh.f32 %v848_v26  ;;  %v2392_v57 = vadd.f32 1.0, %v1517_v61  ;;  %v1519_v43 = vpop.eup %1518  ;;  %v2397_v13 = vsel %vm2311_vm5, %v2277_v59, %v750_v24  ;;  %v765_v38 = vsel %vm2383_vm0, %v2222_v21, %v761_v18 }
 0x140   : >> { %v790_v15 = vmul.f32 %v2294_v22, %v789_v36  ;;  %vm807_vm1 = vweird.f32 %v2236_v25  ;;  %1526 = vpow2.f32 %v1393_v32  ;;  %v1521_v19 = vpop.eup %1520  ;;  %v819_v0 = vsub.f32 1.0, %v818_v48 }
 0x141   : >> { %v826_v26 = vand.u32 2147483647, %v2258_v39  ;;  %v1394_v9 = vmul.f32 -1.442695, %v877_v45  ;;  %1528 = vrcp.f32 %v2369_v10  ;;  %v805_v21 = vmul.f32 %v2300_v30, %v804_v58 }
 0x142   : >> { %v834_v53 = vsub.f32 1.0, %v833_v11  ;;  %v1395_v16 = vmul.f32 -1.442695, %v878_v54  ;;  %1530 = vrcp.f32 %v2377_v3  ;;  %v780_v18 = vsel %vm2410_vm4, %v2263_v5, %v776_v7 }
 0x143   : >> { %vm2421_vm2 = vcmp.eq.f32.partialorder %v796_v41, 8.507059e+37  ;;  %vm822_vm3 = vweird.f32 %v2258_v39  ;;  %v828_v6 = vand.u32 2147483648, %v2258_v39  ;;  %v2427_v61 = vadd.f32 1.0, %v1519_v43  ;;  %v2430_v24 = vpop.eup %1522 }
 0x144   : >> { %1532 = vrcp.f32 %v2392_v57  ;;  %v2435_v5 = vsel %vm2353_vm12, %v2296_v4, %v765_v38  ;;  %v791_v41 = vadd.f32 %v2294_v22, %v790_v15  ;;  %vm2438_vm6 = vcmp.eq.f32.partialorder %v811_v56, 8.507059e+37 }
 0x145   : >> { %1534 = vtanh.f32 %v849_v47  ;;  %v2444_v32 = vadd.f32 1.0, %v1521_v19  ;;  %v2446_v58 = vpop.eup %1524  ;;  %vm808_vm8 = vweird.f32 %v2300_v30  ;;  %v820_v48 = vmul.f32 %v2317_v51, %v819_v0 }
 0x146   : >> { %vm837_vm5 = vweird.f32 %v2265_v55  ;;  %1536 = vpow2.f32 %v1394_v9  ;;  %v1527_v4 = vpop.eup %1526  ;;  %v2454_v56 = vsel %vm2362_vm14, %v2330_v60, %v780_v18  ;;  %v806_v8 = vadd.f32 %v2300_v30, %v805_v21  ;;  %vm2489_vm10 = vmor %vm807_vm1, %vm808_vm8 }
 0x147   : >> { %v835_v47 = vmul.f32 %v2326_v44, %v834_v53  ;;  %1538 = vpow2.f32 %v1395_v16  ;;  %v2458_v23 = vpop.eup %1528  ;;  %vm2468_vm9 = vcmp.eq.f32.partialorder %v826_v26, 8.507059e+37  ;;  %v829_v60 = vor.u32 1.1754944e-38, %v828_v6 }
 0x148   : >> { %v841_v46 = vand.u32 2147483647, %v2265_v55  ;;  %v852_v54 = vrot.slane %v1933_v20, 2  ;;  %1540 = vrcp.f32 %v2427_v61  ;;  %v2475_v63 = vpop.eup %1530  ;;  %v795_v35 = vsel %vm2464_vm7, %v2294_v22, %v791_v41 }
 0x149   : >> { %v843_v7 = vand.u32 2147483648, %v2265_v55  ;;  %v853_v43 = vrot.slane %v1938_v27, 2  ;;  %1542 = vrcp.f32 %v2444_v32  ;;  %v821_v15 = vadd.f32 %v2317_v51, %v820_v48 }
 0x14a   : >> { %v2483_v38 = vpop.eup %1532  ;;  %vm823_vm11 = vweird.f32 %v2317_v51  ;;  %1544 = vtanh.f32 %v850_v29  ;;  %v2497_v27 = vadd.f32 1.0, %v1527_v4  ;;  %v810_v19 = vsel %vm2489_vm10, %v2300_v30, %v806_v8 }
 0x14b   : >> { %v2499_v22 = vpop.eup %1534  ;;  %v836_v25 = vadd.f32 %v2326_v44, %v835_v47  ;;  %vm838_vm12 = vweird.f32 %v2326_v44  ;;  %1546 = vtanh.f32 %v851_v49  ;;  %v854_v26 = vrot.slane %v1944_v33, 2  ;;  %vm2522_vm13 = vmor %vm822_vm3, %vm823_vm11 }
 0x14c   : >> { %v1537_v0 = vpop.eup %1536  ;;  %1548 = vtanh.f32 %v852_v54  ;;  %v920_v14 = vmul.f32 %v2458_v23, %v2369_v10  ;;  %v935_v29 = vmul.f32 %v2475_v63, %v2377_v3  ;;  %v2516_v30 = vsel %vm2421_vm2, %v2336_v31, %v795_v35  ;;  %vm2546_vm15 = vmor %vm837_vm5, %vm838_vm12 }
 0x14d   : >> { %v1539_v9 = vpop.eup %1538  ;;  %vm2526_vm14 = vcmp.eq.f32.partialorder %v841_v46, 8.507059e+37  ;;  %1550 = vtanh.f32 %v853_v43  ;;  %v950_v49 = vmul.f32 %v2483_v38, %v2392_v57  ;;  %v2537_v31 = vsel %vm2438_vm6, %v2388_v42, %v810_v19 }
 0x14e   : >> { %v2532_v59 = vpop.eup %1540  ;;  %v825_v39 = vsel %vm2522_vm13, %v2317_v51, %v821_v15  ;;  %v844_v53 = vor.u32 1.1754944e-38, %v843_v7  ;;  %1552 = vrcp.f32 %v2497_v27  ;;  %v840_v42 = vsel %vm2546_vm15, %v2326_v44, %v836_v25  ;;  %v2591_v15 = vld [vmem:[#allocation3] sm:$0xff] }
 0x14f   : >> { %v2551_v16 = vpop.eup %1542  ;;  %v2556_v18 = vadd.f32 1.0, %v1537_v0  ;;  %v930_v51 = vand.u32 2147483648, %v2369_v10  ;;  %v945_v37 = vand.u32 2147483648, %v2377_v3  ;;  %1554 = vtanh.f32 %v854_v26 }
 0x150   : >> { %v2560_v55 = vpop.eup %1544  ;;  %v2562_v6 = vadd.f32 1.0, %v1539_v9  ;;  %v921_v41 = vsub.f32 1.0, %v920_v14  ;;  %v936_v36 = vsub.f32 1.0, %v935_v29  ;;  %v2568_v4 = vsel %vm2468_vm9, %v829_v60, %v825_v39 }
 0x151   : >> { %v2564_v48 = vpop.eup %1546  ;;  %v951_v44 = vsub.f32 1.0, %v950_v49  ;;  %v960_v8 = vand.u32 2147483648, %v2392_v57  ;;  %v965_v47 = vmul.f32 %v2532_v59, %v2427_v61  ;;  %v2577_v46 = vsel %vm2526_vm14, %v844_v53, %v840_v42 }
 0x152   : >> { %v2573_v45 = vpop.eup %1548  ;;  %v928_v54 = vand.u32 2147483647, %v2369_v10  ;;  %v975_v35 = vand.u32 2147483648, %v2427_v61  ;;  %v980_v11 = vmul.f32 %v2551_v16, %v2444_v32  ;;  %v2585_v7 = vor.u32 1.1754944e-38, %v930_v51 }
 0x153   : >> { %v2583_v60 = vpop.eup %1550  ;;  %v943_v43 = vand.u32 2147483647, %v2377_v3  ;;  %v2588_v20 = vor.u32 1.1754944e-38, %v945_v37  ;;  %1556 = vrcp.f32 %v2556_v18  ;;  %v922_v25 = vmul.f32 %v2458_v23, %v921_v41 }
 0x154   : >> { %2932 = vst [vmem:[#allocation9_spill] sm:$0xff] %v2585_v7  ;;  %v2593_v19 = vpop.eup %1552  ;;  %v937_v0 = vmul.f32 %v2475_v63, %v936_v36  ;;  %v958_v26 = vand.u32 2147483647, %v2392_v57  ;;  %1558 = vrcp.f32 %v2562_v6  ;;  %v952_v14 = vmul.f32 %v2483_v38, %v951_v44 }
 0x155   : >> { %2933 = vst [vmem:[#allocation10_spill] sm:$0xff] %v2588_v20  ;;  %v2600_v29 = vor.u32 1.1754944e-38, %v960_v8  ;;  %v966_v9 = vsub.f32 1.0, %v965_v47  ;;  %v973_v17 = vand.u32 2147483647, %v2427_v61  ;;  %v2603_v33 = vpop.eup %1554  ;;  %vm925_vm0 = vweird.f32 %v2458_v23 }
 0x156   : >> { %v2606_v49 = vor.u32 1.1754944e-38, %v975_v35  ;;  %v981_v39 = vsub.f32 1.0, %v980_v11  ;;  %v988_v21 = vand.u32 2147483647, %v2444_v32  ;;  %v1041_v53 = vrot.slane %v2591_v15, 1 }
 0x157   : >> { %2934 = vst [vmem:[#allocation11_spill] sm:$0xff] %v2600_v29  ;;  %vm940_vm1 = vweird.f32 %v2475_v63  ;;  %v995_v51 = vmul.f32 %v2593_v19, %v2497_v27  ;;  %v1042_v37 = vrot.slane %v2591_v15, 2  ;;  %v1043_v41 = vrot.slane %v2591_v15, 3 }
 0x158   : >> { %2935 = vst [vmem:[#allocation12_spill] sm:$0xff] %v2606_v49  ;;  %v2617_v36 = vadd.f32 %v2458_v23, %v922_v25  ;;  %vm924_vm4 = vweird.f32 %v2369_v10  ;;  %v2621_v44 = vadd.f32 %v2475_v63, %v937_v0  ;;  %vm955_vm2 = vweird.f32 %v2483_v38 }
 0x159   : >> { %v1044_v47 = vrot.slane %v2591_v15, 4  ;;  %v2626_v35 = vpop.eup %1556  ;;  %vm939_vm3 = vweird.f32 %v2377_v3  ;;  %v2630_v11 = vadd.f32 %v2483_v38, %v952_v14  ;;  %v967_v25 = vmul.f32 %v2532_v59, %v966_v9  ;;  %vm2700_vm12 = vmor %vm924_vm4, %vm925_vm0 }
 0x15a   : >> { %2936 = vst [vmem:[#allocation13_spill] sm:$0xff] %v2621_v44  ;;  %vm970_vm6 = vweird.f32 %v2532_v59  ;;  %v1045_v42 = vrot.slane %v2591_v15, 5  ;;  %v2636_v49 = vpop.eup %1558  ;;  %vm954_vm8 = vweird.f32 %v2392_v57  ;;  %v982_v8 = vmul.f32 %v2551_v16, %v981_v39  ;;  %vm2711_vm9 = vmor %vm939_vm3, %vm940_vm1 }
 0x15b   : >> { %2937 = vst [vmem:[#allocation14_spill] sm:$0xff] %v2630_v11  ;;  %vm985_vm5 = vweird.f32 %v2551_v16  ;;  %v1046_v29 = vrot.slane %v2591_v15, 6  ;;  %v1055_v14 = vmul.f32 %v2591_v15, %v2342_v52  ;;  %v1056_v9 = vmul.f32 %v1041_v53, %v2397_v13  ;;  %vm2724_vm0 = vmor %vm954_vm8, %vm955_vm2 }
 0x15c   : >> { %vm969_vm7 = vweird.f32 %v2427_v61  ;;  %v996_v0 = vsub.f32 1.0, %v995_v51  ;;  %v1047_v20 = vrot.slane %v2591_v15, 7  ;;  %v1057_v7 = vmul.f32 %v1042_v37, %v2435_v5 }
 0x15d   : >> { %v1058_v11 = vmul.f32 %v1043_v41, %v2454_v56  ;;  %v1010_v39 = vmul.f32 %v2626_v35, %v2556_v18  ;;  %v1059_v44 = vmul.f32 %v1044_v47, %v2516_v30  ;;  %v1063_v52 = vmul.f32 %v2430_v24, %v2094_v28  ;;  %vm2737_vm1 = vmor %vm969_vm7, %vm970_vm6 }
 0x15e   : >> { %v1064_v13 = vmul.f32 %v2446_v58, %v2126_v40  ;;  %vm2657_vm10 = vcmp.eq.f32.partialorder %v928_v54, 8.507059e+37  ;;  %v2663_v5 = vmul.f32 %v2636_v49, %v2562_v6  ;;  %v1060_v56 = vmul.f32 %v1045_v42, %v2537_v31  ;;  %v2971_v53 = vld [vmem:[#allocation11_spill] sm:$0xff] }
 0x15f   : >> { %v1065_v15 = vmul.f32 %v2499_v22, %v2143_v50  ;;  %v1066_v30 = vmul.f32 %v2560_v55, %v2188_v62  ;;  %vm2670_vm11 = vcmp.eq.f32.partialorder %v943_v43, 8.507059e+37  ;;  %v1061_v40 = vmul.f32 %v1046_v29, %v2568_v4 }
 0x160   : >> { %v1067_v24 = vmul.f32 %v2564_v48, %v2198_v2  ;;  %v1071_v58 = vadd.f32 %v1063_v52, %v1055_v14  ;;  %v1072_v54 = vadd.f32 %v1064_v13, %v1056_v9  ;;  %vm2678_vm13 = vcmp.eq.f32.partialorder %v958_v26, 8.507059e+37 }
 0x161   : >> { %v1062_v50 = vmul.f32 %v1047_v20, %v2577_v46  ;;  %v1068_v62 = vmul.f32 %v2573_v45, %v2210_v12  ;;  %v1073_v22 = vadd.f32 %v1065_v15, %v1057_v7  ;;  %v1074_v55 = vadd.f32 %v1066_v30, %v1058_v11 }
 0x162   : >> { %vm2685_vm14 = vcmp.eq.f32.partialorder %v973_v17, 8.507059e+37  ;;  %vm2689_vm15 = vcmp.eq.f32.partialorder %v988_v21, 8.507059e+37  ;;  %v997_v2 = vmul.f32 %v2593_v19, %v996_v0  ;;  %v1069_v48 = vmul.f32 %v2583_v60, %v2243_v34  ;;  %1103 = vst [vmem:[#allocation1] ss:$9 sm:$0xff] %v1071_v58  ;;  %v2957_v42 = vld [vmem:[#allocation14_spill] sm:$0xff] }
 0x163   : >> { %v1075_v26 = vadd.f32 %v1067_v24, %v1059_v44  ;;  %1560 = vtanh.f32 %v1071_v58  ;;  %v968_v45 = vadd.f32 %v2532_v59, %v967_v25  ;;  %v1070_v46 = vmul.f32 %v2603_v33, %v2275_v1  ;;  %1105 = vst [vmem:[#allocation1 + $0x1] ss:$9 sm:$0xff] %v1072_v54  ;;  %v2954_v33 = vld [vmem:[#allocation13_spill] sm:$0xff]  ;;  %v2966_v0 = vld [vmem:[#allocation10_spill] sm:$0xff] }
 0x164   : >> { %v1076_v7 = vadd.f32 %v1068_v62, %v1060_v56  ;;  %1562 = vtanh.f32 %v1072_v54  ;;  %v983_v10 = vadd.f32 %v2551_v16, %v982_v8  ;;  %v1011_v60 = vsub.f32 1.0, %v1010_v39  ;;  %1107 = vst [vmem:[#allocation1 + $0x2] ss:$9 sm:$0xff] %v1073_v22  ;;  %v2965_v44 = vld [vmem:[#allocation9_spill] sm:$0xff] }
 0x165   : >> { %v1077_v20 = vadd.f32 %v1069_v48, %v1061_v40  ;;  %1564 = vtanh.f32 %v1073_v22  ;;  %v927_v1 = vsel %vm2700_vm12, %v2458_v23, %v2617_v36  ;;  %v1026_v29 = vsub.f32 1.0, %v2663_v5  ;;  %1109 = vst [vmem:[#allocation1 + $0x3] ss:$9 sm:$0xff] %v1074_v55 }
 0x166   : >> { %v1078_v17 = vadd.f32 %v1070_v46, %v1062_v50  ;;  %1566 = vtanh.f32 %v1074_v55  ;;  %v942_v21 = vsel %vm2711_vm9, %v2475_v63, %v2954_v33  ;;  %v998_v23 = vadd.f32 %v2593_v19, %v997_v2  ;;  %1111 = vst [vmem:[#allocation1 + $0x4] ss:$9 sm:$0xff] %v1075_v26 }
 0x167   : >> { %vm1000_vm4 = vweird.f32 %v2593_v19  ;;  %1568 = vtanh.f32 %v1075_v26  ;;  %v957_v63 = vsel %vm2724_vm0, %v2483_v38, %v2957_v42  ;;  %vm2958_vm2 = vweird.f32 %v2444_v32  ;;  %1113 = vst [vmem:[#allocation1 + $0x5] ss:$9 sm:$0xff] %v1076_v7 }
 0x168   : >> { %vm2751_vm3 = vmor %vm2958_vm2, %vm985_vm5  ;;  %v2961_v51 = vand.u32 2147483648, %v2444_v32  ;;  %v2962_v41 = vand.u32 2147483647, %v2497_v27  ;;  %1570 = vtanh.f32 %v1076_v7  ;;  %v932_v8 = vsel %vm2657_vm10, %v2965_v44, %v927_v1  ;;  %1115 = vst [vmem:[#allocation1 + $0x6] ss:$9 sm:$0xff] %v1077_v20 }
 0x169   : >> { %v1561_v38 = vpop.eup %1560  ;;  %v972_v47 = vsel %vm2737_vm1, %v2532_v59, %v968_v45  ;;  %v987_v32 = vsel %vm2751_vm3, %v2551_v16, %v983_v10  ;;  %v1012_v11 = vmul.f32 %v2626_v35, %v1011_v60  ;;  %v947_v14 = vsel %vm2670_vm11, %v2966_v0, %v942_v21  ;;  %1117 = vst [vmem:[#allocation1 + $0x7] ss:$9 sm:$0xff] %v1078_v17 }
 0x16a   : >> { %v991_v37 = vor.u32 1.1754944e-38, %v2961_v51  ;;  %vm2759_vm6 = vcmp.eq.f32.partialorder %v2962_v41, 8.507059e+37  ;;  %v1563_v25 = vpop.eup %1562  ;;  %vm2967_vm8 = vweird.f32 %v2497_v27  ;;  %v2970_v16 = vand.u32 2147483648, %v2497_v27  ;;  %v2972_v27 = vld [vmem:[#allocation12_spill] sm:$0xff] }
 0x16b   : >> { %vm2784_vm5 = vmor %vm2967_vm8, %vm1000_vm4  ;;  %v1027_v39 = vmul.f32 %v2636_v49, %v1026_v29  ;;  %v1087_v52 = vmul.f32 %v1561_v38, %v932_v8  ;;  %v1565_v13 = vpop.eup %1564  ;;  %v962_v5 = vsel %vm2678_vm13, %v2971_v53, %v957_v63  ;;  %v1020_v15 = vand.u32 2147483648, %v2556_v18 }
 0x16c   : >> { %v1006_v9 = vor.u32 1.1754944e-38, %v2970_v16  ;;  %v1002_v56 = vsel %vm2784_vm5, %v2593_v19, %v998_v23  ;;  %v1088_v30 = vmul.f32 %v1563_v25, %v947_v14  ;;  %v1567_v28 = vpop.eup %1566  ;;  %v977_v40 = vsel %vm2685_vm14, %v2972_v27, %v972_v47 }
 0x16d   : >> { %v992_v24 = vsel %vm2689_vm15, %v991_v37, %v987_v32  ;;  %1572 = vtanh.f32 %v1077_v20  ;;  %v1089_v58 = vmul.f32 %v1565_v13, %v962_v5  ;;  %1148 = vst [vmem:[%s2775_s22] sm:$0x1] %v1087_v52  ;;  %v1569_v54 = vpop.eup %1568  ;;  %v1013_v31 = vadd.f32 %v2626_v35, %v1012_v11 }
 0x16e   : >> { %vm1015_vm7 = vweird.f32 %v2626_v35  ;;  %1574 = vtanh.f32 %v1078_v17  ;;  %v1090_v19 = vmul.f32 %v1567_v28, %v977_v40  ;;  %1149 = vst [vmem:[%s2775_s22 + $0x8] sm:$0x1] %v1088_v30  ;;  %v1571_v50 = vpop.eup %1570  ;;  %v1007_v62 = vsel %vm2759_vm6, %v1006_v9, %v1002_v56 }
 0x16f   : >> { %v1028_v22 = vadd.f32 %v2636_v49, %v1027_v39  ;;  %vm1030_vm9 = vweird.f32 %v2636_v49  ;;  %v1091_v55 = vmul.f32 %v1569_v54, %v992_v24  ;;  %1150 = vst [vmem:[%s2775_s22 + $0x10] sm:$0x1] %v1089_v58  ;;  %vm1014_vm10 = vweird.f32 %v2556_v18 }
 0x170   : >> { %v1018_v43 = vand.u32 2147483647, %v2556_v18  ;;  %v1035_v4 = vand.u32 2147483648, %v2562_v6  ;;  %v1092_v2 = vmul.f32 %v1571_v50, %v1007_v62  ;;  %1151 = vst [vmem:[%s2775_s22 + $0x18] sm:$0x1] %v1090_v19  ;;  %vm2818_vm11 = vmor %vm1014_vm10, %vm1015_vm7  ;;  %vm1029_vm12 = vweird.f32 %v2562_v6  ;;  %v1118_v18 = vld [vmem:[#allocation1] sm:$0xff] }
 0x171   : >> { %v1033_v26 = vand.u32 2147483647, %v2562_v6  ;;  %1152 = vst [vmem:[%s2775_s22 + $0x20] sm:$0x1] %v1091_v55  ;;  %v1017_v12 = vsel %vm2818_vm11, %v2626_v35, %v1013_v31  ;;  %vm1031_vm13 = vmor %vm1029_vm12, %vm1030_vm9  ;;  %v1021_v46 = vor.u32 1.1754944e-38, %v1020_v15 }
 0x172   : >> { %1153 = vst [vmem:[%s2775_s22 + $0x28] sm:$0x1] %v1092_v2  ;;  %v1032_v7 = vsel %vm1031_vm13, %v2636_v49, %v1028_v22  ;;  %vm1019_vm14 = vcmp.eq.f32.partialorder %v1018_v43, 8.507059e+37  ;;  %v1036_v10 = vor.u32 1.1754944e-38, %v1035_v4 }
 0x173   : >> { %v1573_v45 = vpop.eup %1572  ;;  %1120 = vst [vmem:[#allocation3] sm:$0xff] %v1118_v18  ;;  %v1022_v6 = vsel %vm1019_vm14, %v1021_v46, %v1017_v12  ;;  %vm1034_vm15 = vcmp.eq.f32.partialorder %v1033_v26, 8.507059e+37 }
 0x174   : >> { %v1575_v34 = vpop.eup %1574  ;;  %1129 = vst [vmem:[#allocation1] ss:$9 sm:$0xff] %v1087_v52  ;;  %v1037_v60 = vsel %vm1034_vm15, %v1036_v10, %v1032_v7  ;;  %v1093_v20 = vmul.f32 %v1573_v45, %v1022_v6 }
 0x175   : >> { %1131 = vst [vmem:[#allocation1 + $0x1] ss:$9 sm:$0xff] %v1088_v30  ;;  %v1094_v35 = vmul.f32 %v1575_v34, %v1037_v60 }
 0x176   : >> { %1133 = vst [vmem:[#allocation1 + $0x2] ss:$9 sm:$0xff] %v1089_v58 }
 0x177   : >> { %1135 = vst [vmem:[#allocation1 + $0x3] ss:$9 sm:$0xff] %v1090_v19 }
 0x178   : >> { %1137 = vst [vmem:[#allocation1 + $0x4] ss:$9 sm:$0xff] %v1091_v55 }
 0x179   : >> { %1139 = vst [vmem:[#allocation1 + $0x5] ss:$9 sm:$0xff] %v1092_v2 }
 0x17a   : >> { %1141 = vst [vmem:[#allocation1 + $0x6] ss:$9 sm:$0xff] %v1093_v20 }
 0x17b   : >> { %1143 = vst [vmem:[#allocation1 + $0x7] ss:$9 sm:$0xff] %v1094_v35 }
 0x17c   : >> { %1154 = vst [vmem:[%s2775_s22 + $0x30] sm:$0x1] %v1093_v20 }
 0x17d   : >> { %1155 = vst [vmem:[%s2775_s22 + $0x38] sm:$0x1] %v1094_v35 }
 0x17f   : > { %269 = sbr.rel (!%p267_p4) target bundleno = 82 (0x52), region = 167 }
 0x182   : >> { %v1144_v49 = vld [vmem:[#allocation1] sm:$0xff] }
 0x183   : >> { %1146 = vst [vmem:[#allocation2] sm:$0xff] %v1144_v49 }
 0x184   : > { %1162 = sbr.rel (!%p1712_p8) target bundleno = 398 (0x18e), region = 66  ;;  %s1397_s23 = sshll.u32 (%p1712_p8), %s1685_s13, 3  ;;  %v1207_v1 = vld [vmem:[%s1818_s12] sm:$0xff] (%p1712_p8)  ;;  %v1209_v3 = vld [vmem:[%s1818_s12 + $0x8] sm:$0xff] (%p1712_p8)  ;;  %v1211_v29 = vld [vmem:[%s1818_s12 + $0x10] sm:$0xff] (%p1712_p8) }
 0x185   : > { %s1164_s26 = scalar_lea.vmem (%p1712_p8), %s2864_s2, %s1397_s23  ;;  %v1213_v17 = vld [vmem:[%s1818_s12 + $0x18] sm:$0xff] (%p1712_p8)  ;;  %v1215_v33 = vld [vmem:[%s1818_s12 + $0x20] sm:$0xff] (%p1712_p8)  ;;  %v1217_v21 = vld [vmem:[%s1818_s12 + $0x28] sm:$0xff] (%p1712_p8) }
 0x186   : > { %1208 = vst [vmem:[%s1164_s26] sm:$0xff] (%p1712_p8), %v1207_v1  ;;  %v1219_v57 = vld [vmem:[%s1818_s12 + $0x30] sm:$0xff] (%p1712_p8)  ;;  %v1221_v23 = vld [vmem:[%s1818_s12 + $0x38] sm:$0xff] (%p1712_p8) }
 0x187   : > { %1210 = vst [vmem:[%s1164_s26 + $0x10] sm:$0xff] (%p1712_p8), %v1209_v3 }
 0x188   : > { %1212 = vst [vmem:[%s1164_s26 + $0x20] sm:$0xff] (%p1712_p8), %v1211_v29 }
 0x189   : > { %1214 = vst [vmem:[%s1164_s26 + $0x30] sm:$0xff] %v1213_v17 }
 0x18a   : > { %1216 = vst [vmem:[%s1164_s26 + $0x40] sm:$0xff] %v1215_v33 }
 0x18b   : > { %1218 = vst [vmem:[%s1164_s26 + $0x50] sm:$0xff] %v1217_v21 }
 0x18c   : > { %1220 = vst [vmem:[%s1164_s26 + $0x60] sm:$0xff] %v1219_v57 }
 0x18d   : > { %1222 = vst [vmem:[%s1164_s26 + $0x70] sm:$0xff] %v1221_v23 }
 0x18e PF: > { %p12_p5 = scmp.ge.s32.totalorder %s1688_s14, 4   ;;  %s2975_s9 = smov %s1634_s10 }
 0x18f   : > { %s2976_s10 = smov %s1638_s11  ;;  %s2977_s11 = smov %s1698_s17 }
 0x190   : > { %s2978_s12 = smov %s1688_s14  ;;  %14 = sbr.rel (!%p12_p5) target bundleno = 3 (0x3), region = 178 }
 0x195   :  { %1238 = vsyncpa [#allocation6], 1 }
 0x196   :  { %1240 = vsyncpa [#allocation6 + $0x1], 1 }

// kernel: encoder_forward.15
= control target key start
LH: loop header
LB: loop body
LE: loop exit
PB: predicated region body
PF: predicated region fallthrough
CT: control target
= control target key end

     0   :  { %s1553_s9 = smov 0   ;;  %s1555_s10 = smov 0   ;;  %s2666_s0 = inlined_call_operand.vmem [shape: f32[8,4,1024], index: 0, kind: input, shape index: {}]   ;;  %s2667_s1 = inlined_call_operand.vmem [shape: f32[2,128,512], index: 1, kind: input, shape index: {}]   ;;  %s2668_s2 = inlined_call_operand.vmem [shape: f32[8,4,256], index: 2, kind: output, shape index: {}]  }
   0x1   :  { %s1557_s11 = smov 0  }
   0x2 LB: > { %s1569_s12 = sadd.s32 4294967295, %s1531_s11   ;;  %s1572_s13 = sadd.s32 1, %s1531_s11   ;;  %s1531_s11 = sphi %s1557_s11, %s2779_s11   ;;  %s1527_s10 = sphi %s1555_s10, %s2778_s10   ;;  %s1523_s9 = sphi %s1553_s9, %s2777_s9  }
   0x3   : > { %s16_s14 = ssub.s32 %s1531_s11, %s1572_s13  ;;  %s19_s15 = sadd.s32 1, %s1527_s10 }
   0x4   : > { %p17_p0 = scmp.eq.s32.totalorder %s16_s14, 0  ;;  %p26_p1 = scmp.ne.s32.totalorder %s1527_s10, %s1523_s9 }
   0x5   : > { %p27_p2 = scmp.eq.s32.totalorder %s1531_s11, 0  ;;  %p82_p3 = scmp.eq.s32.totalorder %s1569_s12, 1 }
   0x6   : > { %s1582_s16 = scalar_select %p17_p0, %s1527_s10, %s19_s15  }
   0x7   : > { %p28_p4 = por %p27_p2, %p26_p1  ;;  %p1584_p5 = por %p82_p3, %p26_p1 }
   0x8   : > { %p1288_p6 = scmp.ge.s32.totalorder %s1531_s11, 2 }
   0xa   : > { %104 = sbr.rel (%p1288_p6) target bundleno = 35 (0x23), region = 16 }
   0xf   : > { %107 = sbr.rel (!%p28_p4) target bundleno = 35 (0x23), region = 20  ;;  %s109_s18 = sand.u32 (%p28_p4), 1, %s1527_s10  }
  0x10   : > { %s1341_s19 = sshll.u32 (%p28_p4), %s1531_s11, 4  ;;  %s1289_s20 = sshll.u32 (%p28_p4), %s109_s18, 7 }
  0x11   : > { %s1594_s23 = scalar_lea.vmem (%p28_p4), %s2666_s0, %s1341_s19  ;;  %s111_s24 = scalar_lea.vmem (%p28_p4), [#allocation4], %s1289_s20 }
  0x12   : > { %v127_v0 = vld [vmem:[%s1594_s23] sm:$0xff] (%p28_p4)  ;;  %v129_v1 = vld [vmem:[%s1594_s23 + $0x8] sm:$0xff] (%p28_p4) }
  0x13   : > { %v131_v2 = vld [vmem:[%s1594_s23 + $0x20] sm:$0xff] (%p28_p4)  ;;  %128 = vst [vmem:[%s111_s24] sm:$0xff] (%p28_p4), %v127_v0  ;;  %v133_v3 = vld [vmem:[%s1594_s23 + $0x28] sm:$0xff] (%p28_p4) }
  0x14   : > { %130 = vst [vmem:[%s111_s24 + $0x8] sm:$0xff] %v129_v1  ;;  %v135_v4 = vld [vmem:[%s1594_s23 + $0x40] sm:$0xff]  ;;  %v137_v5 = vld [vmem:[%s1594_s23 + $0x48] sm:$0xff] }
  0x15   : > { %132 = vst [vmem:[%s111_s24 + $0x10] sm:$0xff] %v131_v2  ;;  %v139_v6 = vld [vmem:[%s1594_s23 + $0x60] sm:$0xff]  ;;  %v141_v7 = vld [vmem:[%s1594_s23 + $0x68] sm:$0xff] }
  0x16   : > { %134 = vst [vmem:[%s111_s24 + $0x18] sm:$0xff] %v133_v3  ;;  %v143_v8 = vld [vmem:[%s1594_s23 + $0x80] sm:$0xff]  ;;  %v145_v9 = vld [vmem:[%s1594_s23 + $0x88] sm:$0xff] }
  0x17   : > { %136 = vst [vmem:[%s111_s24 + $0x20] sm:$0xff] %v135_v4  ;;  %v147_v10 = vld [vmem:[%s1594_s23 + $0xa0] sm:$0xff]  ;;  %v149_v11 = vld [vmem:[%s1594_s23 + $0xa8] sm:$0xff] }
  0x18   : > { %138 = vst [vmem:[%s111_s24 + $0x28] sm:$0xff] %v137_v5  ;;  %v151_v12 = vld [vmem:[%s1594_s23 + $0xc0] sm:$0xff]  ;;  %v153_v13 = vld [vmem:[%s1594_s23 + $0xc8] sm:$0xff] }
  0x19   : > { %140 = vst [vmem:[%s111_s24 + $0x30] sm:$0xff] %v139_v6  ;;  %v155_v14 = vld [vmem:[%s1594_s23 + $0xe0] sm:$0xff]  ;;  %v157_v15 = vld [vmem:[%s1594_s23 + $0xe8] sm:$0xff] }
  0x1a   : > { %142 = vst [vmem:[%s111_s24 + $0x38] sm:$0xff] %v141_v7 }
  0x1b   : > { %144 = vst [vmem:[%s111_s24 + $0x40] sm:$0xff] %v143_v8 }
  0x1c   : > { %146 = vst [vmem:[%s111_s24 + $0x48] sm:$0xff] %v145_v9 }
  0x1d   : > { %148 = vst [vmem:[%s111_s24 + $0x50] sm:$0xff] %v147_v10 }
  0x1e   : > { %150 = vst [vmem:[%s111_s24 + $0x58] sm:$0xff] %v149_v11 }
  0x1f   : > { %152 = vst [vmem:[%s111_s24 + $0x60] sm:$0xff] %v151_v12 }
  0x20   : > { %154 = vst [vmem:[%s111_s24 + $0x68] sm:$0xff] %v153_v13 }
  0x21   : > { %156 = vst [vmem:[%s111_s24 + $0x70] sm:$0xff] %v155_v14 }
  0x22   : > { %158 = vst [vmem:[%s111_s24 + $0x78] sm:$0xff] %v157_v15 }
  0x23 PF: > { %p1292_p7 = scmp.ge.s32.totalorder %s1531_s11, 1  ;;  %p171_p8 = scmp.lt.s32.totalorder %s1531_s11, 3 }
  0x25   : > { %p172_p9 = pnand %p1292_p7, %p171_p8 }
  0x26   : > { %s178_s25 = sand.u32 (!%p172_p9), 1, %s1523_s9   ;;  %p204_p10 = scmp.lt.s32.totalorder (!%p172_p9), %s1569_s12, 1 }
  0x27   : > { %175 = sbr.rel (%p172_p9) target bundleno = 364 (0x16c), region = 47  ;;  %s1616_s26 = sshll.u32 (!%p172_p9), %s178_s25, 7 }
  0x28   : > { %s1294_s27 = sshll.u32 (!%p172_p9), %s178_s25, 5  ;;  %s180_s5 = scalar_lea.vmem (!%p172_p9), [#allocation4], %s1616_s26 }
  0x29   : > { %s1625_s6 = scalar_lea.vmem (!%p172_p9), [#allocation5], %s1294_s27  ;;  %s1627_s7 = smov (!%p172_p9), 0  }
  0x2c   : > { %v1537_v16 = vmov 0.0   ;;  %s205_s28 = scalar_select %p204_p10, %s1569_s12, 1 }
  0x2d   : > { %209 = vst [vmem:[#allocation2] sm:$0xff] %v1537_v16 }
  0x2e   : > { %210 = vst [vmem:[#allocation3] sm:$0xff] %v1537_v16  ;;  %s1342_s29 = sshll.u32 %s205_s28, 9 }
  0x2f   : > { %s1622_s4 = scalar_lea.vmem %s2667_s1, %s1342_s29 }
  0x30 LB: >> { %v313_v17 = vld [vmem:[%s1622_s4 + $0x1f0] sm:$0xff]  ;;  %v314_v18 = vld [vmem:[%s1622_s4 + $0x1f8] sm:$0xff]  ;;  %v312_v23 = vld [vmem:[%s1622_s4 + $0x1e8] sm:$0xff]  ;;  %p217_p11 = scmp.eq.s32.totalorder %s1569_s12, 0  ;;  %s218_s8 = ssub.s32 3, %s1535_s7  ;;  %vm408_vm0 = vcmask 1041409   ;;  %s1535_s7 = sphi %s1627_s7, %s216_s7  }
  0x31   : >> { %v309_v19 = vld [vmem:[%s1622_s4 + $0x1d0] sm:$0xff]  ;;  %355 = vmatpush.msra.mxu2 %v313_v17  ;;  %375 = vmatpush.msra.mxu3 %v314_v18  ;;  %v310_v20 = vld [vmem:[%s1622_s4 + $0x1d8] sm:$0xff]  ;;  %v311_v24 = vld [vmem:[%s1622_s4 + $0x1e0] sm:$0xff]  ;;  %vm410_vm1 = vcmask 1043459   ;;  %vm402_vm2 = vcmask 1040384   ;;  %vm404_vm3 = vcmask 1042434  }
  0x32   : >> { %v305_v21 = vld [vmem:[%s1622_s4 + $0x1b0] sm:$0xff]  ;;  %v306_v22 = vld [vmem:[%s1622_s4 + $0x1b8] sm:$0xff]  ;;  %v308_v25 = vld [vmem:[%s1622_s4 + $0x1c8] sm:$0xff]  ;;  %335 = vmatpush.msra.mxu1 %v312_v23  ;;  %315 = vmatpush.msra.mxu0 %v311_v24  ;;  %s1699_s9 = scalar_select %p217_p11, %s1535_s7, %s218_s8  ;;  %vm416_vm4 = vcmask 1044484   ;;  %vm412_vm5 = vcmask 1042433   ;;  %vm406_vm6 = vcmask 1041408  }
  0x33   : >> { %356 = vmatpush.msra.mxu2 %v309_v19  ;;  %376 = vmatpush.msra.mxu3 %v310_v20  ;;  %v301_v26 = vld [vmem:[%s1622_s4 + $0x190] sm:$0xff]  ;;  %v302_v27 = vld [vmem:[%s1622_s4 + $0x198] sm:$0xff]  ;;  %v307_v28 = vld [vmem:[%s1622_s4 + $0x1c0] sm:$0xff]  ;;  %vm418_vm7 = vcmask 1043458   ;;  %vm422_vm8 = vcmask 1045509   ;;  %vm428_vm9 = vcmask 1046534  }
  0x34   : >> { %v304_v29 = vld [vmem:[%s1622_s4 + $0x1a8] sm:$0xff]  ;;  %v303_v30 = vld [vmem:[%s1622_s4 + $0x1a0] sm:$0xff]  ;;  %336 = vmatpush.msra.mxu1 %v308_v25  ;;  %v297_v31 = vld [vmem:[%s1622_s4 + $0x170] sm:$0xff]  ;;  %316 = vmatpush.msra.mxu0 %v307_v28  ;;  %s220_s11 = sshra.s32 %s1699_s9, 2  ;;  %s223_s14 = sand.u32 3, %s1699_s9  ;;  %vm424_vm10 = vcmask 1044483  }
  0x35   : >> { %357 = vmatpush.msra.mxu2 %v305_v21  ;;  %377 = vmatpush.msra.mxu3 %v306_v22  ;;  %v298_v32 = vld [vmem:[%s1622_s4 + $0x178] sm:$0xff]  ;;  %v300_v33 = vld [vmem:[%s1622_s4 + $0x188] sm:$0xff]  ;;  %v299_v34 = vld [vmem:[%s1622_s4 + $0x180] sm:$0xff]  ;;  %s1343_s15 = sshll.u32 %s220_s11, 4  ;;  %vm434_vm11 = vcmask 1046528   ;;  %vm430_vm12 = vcmask 1045508   ;;  %s2582_s20 = scalar_lea.vmem %s1625_s6, %s1699_s9 [#allocation5] }
  0x36   : >> { %337 = vmatpush.msra.mxu1 %v304_v29  ;;  %v293_v35 = vld [vmem:[%s1622_s4 + $0x150] sm:$0xff]  ;;  %v294_v36 = vld [vmem:[%s1622_s4 + $0x158] sm:$0xff]  ;;  %317 = vmatpush.msra.mxu0 %v303_v30  ;;  %v296_v37 = vld [vmem:[%s1622_s4 + $0x168] sm:$0xff]  ;;  %s226_s18 = sadd.s32 %s1343_s15, %s223_s14  ;;  %vm436_vm13 = vcmask 1046533   ;;  %vm441_vm14 = vcmask 1045504   ;;  %vm446_vm15 = vcmask 1046529  }
  0x37   : >> { %358 = vmatpush.msra.mxu2 %v301_v26  ;;  %378 = vmatpush.msra.mxu3 %v302_v27  ;;  %v295_v38 = vld [vmem:[%s1622_s4 + $0x160] sm:$0xff]  ;;  %v289_v39 = vld [vmem:[%s1622_s4 + $0x130] sm:$0xff]  ;;  %v290_v40 = vld [vmem:[%s1622_s4 + $0x138] sm:$0xff]  ;;  %s1707_s19 = scalar_lea.vmem %s180_s5, %s226_s18 [#allocation4]  ;;  %s216_s7 = sadd.s32 1, %s1535_s7  }
  0x38   : >> { %338 = vmatpush.msra.mxu1 %v300_v33  ;;  %318 = vmatpush.msra.mxu0 %v299_v34  ;;  %v292_v41 = vld [vmem:[%s1622_s4 + $0x148] sm:$0xff]  ;;  %v291_v42 = vld [vmem:[%s1622_s4 + $0x140] sm:$0xff]  ;;  %v285_v43 = vld [vmem:[%s1622_s4 + $0x110] sm:$0xff]  ;;  %p213_p12 = scmp.ge.s32.totalorder %s216_s7, 4  }
  0x39   : >> { %359 = vmatpush.msra.mxu2 %v297_v31  ;;  %379 = vmatpush.msra.mxu3 %v298_v32  ;;  %v286_v44 = vld [vmem:[%s1622_s4 + $0x118] sm:$0xff]  ;;  %v288_v45 = vld [vmem:[%s1622_s4 + $0x128] sm:$0xff]  ;;  %v287_v46 = vld [vmem:[%s1622_s4 + $0x120] sm:$0xff] }
  0x3a   : >> { %339 = vmatpush.msra.mxu1 %v296_v37  ;;  %319 = vmatpush.msra.mxu0 %v295_v38  ;;  %v281_v47 = vld [vmem:[%s1622_s4 + $0xf0] sm:$0xff]  ;;  %v282_v48 = vld [vmem:[%s1622_s4 + $0xf8] sm:$0xff]  ;;  %v284_v49 = vld [vmem:[%s1622_s4 + $0x108] sm:$0xff] }
  0x3b   : >> { %360 = vmatpush.msra.mxu2 %v293_v35  ;;  %380 = vmatpush.msra.mxu3 %v294_v36  ;;  %v283_v50 = vld [vmem:[%s1622_s4 + $0x100] sm:$0xff]  ;;  %v277_v51 = vld [vmem:[%s1622_s4 + $0xd0] sm:$0xff]  ;;  %v278_v52 = vld [vmem:[%s1622_s4 + $0xd8] sm:$0xff] }
  0x3c   : >> { %340 = vmatpush.msra.mxu1 %v292_v41  ;;  %320 = vmatpush.msra.mxu0 %v291_v42  ;;  %v280_v53 = vld [vmem:[%s1622_s4 + $0xe8] sm:$0xff]  ;;  %v279_v54 = vld [vmem:[%s1622_s4 + $0xe0] sm:$0xff]  ;;  %v273_v55 = vld [vmem:[%s1622_s4 + $0xb0] sm:$0xff] }
  0x3d   : >> { %361 = vmatpush.msra.mxu2 %v289_v39  ;;  %381 = vmatpush.msra.mxu3 %v290_v40  ;;  %v274_v56 = vld [vmem:[%s1622_s4 + $0xb8] sm:$0xff]  ;;  %v276_v57 = vld [vmem:[%s1622_s4 + $0xc8] sm:$0xff]  ;;  %v275_v58 = vld [vmem:[%s1622_s4 + $0xc0] sm:$0xff] }
  0x3e   : >> { %341 = vmatpush.msra.mxu1 %v288_v45  ;;  %321 = vmatpush.msra.mxu0 %v287_v46  ;;  %v269_v59 = vld [vmem:[%s1622_s4 + $0x90] sm:$0xff]  ;;  %v270_v60 = vld [vmem:[%s1622_s4 + $0x98] sm:$0xff]  ;;  %v272_v61 = vld [vmem:[%s1622_s4 + $0xa8] sm:$0xff] }
  0x3f   : >> { %362 = vmatpush.msra.mxu2 %v285_v43  ;;  %382 = vmatpush.msra.mxu3 %v286_v44  ;;  %v271_v62 = vld [vmem:[%s1622_s4 + $0xa0] sm:$0xff]  ;;  %v265_v63 = vld [vmem:[%s1622_s4 + $0x70] sm:$0xff]  ;;  %v266_v0 = vld [vmem:[%s1622_s4 + $0x78] sm:$0xff] }
  0x40   : >> { %342 = vmatpush.msra.mxu1 %v284_v49  ;;  %322 = vmatpush.msra.mxu0 %v283_v50  ;;  %v268_v1 = vld [vmem:[%s1622_s4 + $0x88] sm:$0xff]  ;;  %v267_v2 = vld [vmem:[%s1622_s4 + $0x80] sm:$0xff]  ;;  %v261_v3 = vld [vmem:[%s1622_s4 + $0x50] sm:$0xff] }
  0x41   : >> { %363 = vmatpush.msra.mxu2 %v281_v47  ;;  %383 = vmatpush.msra.mxu3 %v282_v48  ;;  %v262_v4 = vld [vmem:[%s1622_s4 + $0x58] sm:$0xff]  ;;  %v264_v5 = vld [vmem:[%s1622_s4 + $0x68] sm:$0xff]  ;;  %v263_v6 = vld [vmem:[%s1622_s4 + $0x60] sm:$0xff] }
  0x42   : >> { %343 = vmatpush.msra.mxu1 %v280_v53  ;;  %323 = vmatpush.msra.mxu0 %v279_v54  ;;  %v257_v7 = vld [vmem:[%s1622_s4 + $0x30] sm:$0xff]  ;;  %v258_v8 = vld [vmem:[%s1622_s4 + $0x38] sm:$0xff]  ;;  %v260_v9 = vld [vmem:[%s1622_s4 + $0x48] sm:$0xff] }
  0x43   : >> { %364 = vmatpush.msra.mxu2 %v277_v51  ;;  %384 = vmatpush.msra.mxu3 %v278_v52  ;;  %v259_v10 = vld [vmem:[%s1622_s4 + $0x40] sm:$0xff]  ;;  %v253_v11 = vld [vmem:[%s1622_s4 + $0x10] sm:$0xff]  ;;  %v254_v12 = vld [vmem:[%s1622_s4 + $0x18] sm:$0xff] }
  0x44   : >> { %344 = vmatpush.msra.mxu1 %v276_v57  ;;  %324 = vmatpush.msra.mxu0 %v275_v58  ;;  %v250_v13 = vld [vmem:[#allocation2] sm:$0xff]  ;;  %v255_v15 = vld [vmem:[%s1622_s4 + $0x20] sm:$0xff]  ;;  %v1300_v40 = vld [vmem:[%s1707_s19 + $0x10] ss:$4 sm:$0xf] }
  0x45   : >> { %365 = vmatpush.msra.mxu2 %v273_v55  ;;  %385 = vmatpush.msra.mxu3 %v274_v56  ;;  %v256_v14 = vld [vmem:[%s1622_s4 + $0x28] sm:$0xff]  ;;  %v251_v17 = vld [vmem:[%s1622_s4] sm:$0xff]  ;;  %v1304_v52 = vld [vmem:[%s1707_s19 + $0x30] ss:$4 sm:$0xf] }
  0x46   : >> { %345 = vmatpush.msra.mxu1 %v272_v61  ;;  %325 = vmatpush.msra.mxu0 %v271_v62  ;;  %v252_v16 = vld [vmem:[%s1622_s4 + $0x8] sm:$0xff] }
  0x47   : >> { %366 = vmatpush.msra.mxu2 %v269_v59  ;;  %386 = vmatpush.msra.mxu3 %v270_v60  ;;  %v228_v32 = vld [vmem:[%s1707_s19] ss:$4 sm:$0xf]  ;;  %v1308_v60 = vld [vmem:[%s1707_s19 + $0x50] ss:$4 sm:$0xf] }
  0x48   : >> { %346 = vmatpush.msra.mxu1 %v268_v1  ;;  %326 = vmatpush.msra.mxu0 %v267_v2  ;;  %v1302_v46 = vld [vmem:[%s1707_s19 + $0x20] ss:$4 sm:$0xf] }
  0x49   : >> { %367 = vmatpush.msra.mxu2 %v265_v63  ;;  %387 = vmatpush.msra.mxu3 %v266_v0  ;;  %v1306_v57 = vld [vmem:[%s1707_s19 + $0x40] ss:$4 sm:$0xf] }
  0x4a   : >> { %347 = vmatpush.msra.mxu1 %v264_v5  ;;  %327 = vmatpush.msra.mxu0 %v263_v6  ;;  %v1310_v5 = vld [vmem:[%s1707_s19 + $0x60] ss:$4 sm:$0xf] }
  0x4b   : >> { %368 = vmatpush.msra.mxu2 %v261_v3  ;;  %388 = vmatpush.msra.mxu3 %v262_v4 }
  0x4c   : >> { %348 = vmatpush.msra.mxu1 %v260_v9  ;;  %328 = vmatpush.msra.mxu0 %v259_v10 }
  0x4d   : >> { %369 = vmatpush.msra.mxu2 %v257_v7  ;;  %389 = vmatpush.msra.mxu3 %v258_v8 }
  0x4e   : >> { %349 = vmatpush.msra.mxu1 %v256_v14  ;;  %329 = vmatpush.msra.mxu0 %v255_v15 }
  0x4f   : >> { %370 = vmatpush.msra.mxu2 %v253_v11  ;;  %390 = vmatpush.msra.mxu3 %v254_v12 }
  0x50   : >> { %371 = vmatmul.f32.vlgmr.msra.gmra.mxu2 %v250_v13  ;;  %391 = vmatmul.f32.vlgmr.msra.gmra.mxu3 %v250_v13 }
  0x51   : >> { %350 = vmatpush.msra.mxu1 %v252_v16  ;;  %330 = vmatpush.msra.mxu0 %v251_v17 }
  0x52   : >> { %351 = vmatmul.f32.vlgmr.msra.gmra.mxu1 %v250_v13  ;;  %331 = vmatmul.f32.vlgmr.msra.gmra.mxu0 %v250_v13  ;;  %v1312_v13 = vld [vmem:[%s1707_s19 + $0x70] ss:$4 sm:$0xf] }
  0xcf   : >> { %v352_v18 = vpop.f32.mrf.mxu1  ;;  %v332_v24 = vpop.f32.mrf.mxu0 }
  0xd0   : >> { %v399_v21 = vrot.slane %v352_v18, 7 }
  0xd2   : >> { %v409_v25 = vsel %vm408_vm0, %v332_v24, %v399_v21  ;;  %v403_v27 = vsel %vm402_vm2, %v332_v24, %v399_v21  ;;  %v415_v29 = vsel %vm404_vm3, %v332_v24, %v399_v21  ;;  %v421_v35 = vsel %vm410_vm1, %v332_v24, %v399_v21 }
  0xd3   : >> { %v372_v19 = vpop.f32.mrf.mxu2  ;;  %v392_v20 = vpop.f32.mrf.mxu3  ;;  %v427_v38 = vsel %vm416_vm4, %v332_v24, %v399_v21  ;;  %v433_v44 = vsel %vm422_vm8, %v332_v24, %v399_v21  ;;  %v439_v54 = vsel %vm428_vm9, %v332_v24, %v399_v21  ;;  %v444_v63 = vsel %vm434_vm11, %v399_v21, %v332_v24 }
  0xd4   : >> { %v400_v22 = vrot.slane %v372_v19, 6  ;;  %v401_v23 = vrot.slane %v392_v20, 5 }
  0xd6   : >> { %v411_v26 = vsel %vm410_vm1, %v400_v22, %v401_v23  ;;  %v405_v28 = vsel %vm404_vm3, %v400_v22, %v401_v23  ;;  %v417_v30 = vsel %vm416_vm4, %v400_v22, %v401_v23  ;;  %v423_v36 = vsel %vm422_vm8, %v400_v22, %v401_v23 }
  0xd7   : >> { %v413_v31 = vsel %vm412_vm5, %v409_v25, %v411_v26  ;;  %v407_v33 = vsel %vm406_vm6, %v403_v27, %v405_v28  ;;  %v419_v34 = vsel %vm418_vm7, %v415_v29, %v417_v30  ;;  %v429_v39 = vsel %vm428_vm9, %v400_v22, %v401_v23 }
  0xd8   : >> { %v414_v37 = vrot.slane %v413_v31, 1  ;;  %v1717_v41 = vadd.f32 %v407_v33, %v228_v32  ;;  %v420_v42 = vrot.slane %v419_v34, 2  ;;  %v425_v43 = vsel %vm424_vm10, %v421_v35, %v423_v36 }
  0xd9   : >> { %v435_v45 = vsel %vm434_vm11, %v401_v23, %v400_v22  ;;  %v431_v47 = vsel %vm430_vm12, %v427_v38, %v429_v39  ;;  %v426_v49 = vrot.slane %v425_v43, 3  ;;  %v440_v55 = vsel %vm402_vm2, %v400_v22, %v401_v23 }
  0xda   : >> { %v1722_v48 = vadd.f32 %v1300_v40, %v414_v37  ;;  %v437_v50 = vsel %vm436_vm13, %v433_v44, %v435_v45  ;;  %v1313_v51 = vmul.f32 -1.442695, %v1717_v41  ;;  %v432_v53 = vrot.slane %v431_v47, 4 }
  0xdb   : >> { %v1728_v56 = vadd.f32 %v1302_v46, %v420_v42  ;;  %v438_v58 = vrot.slane %v437_v50, 5  ;;  %v442_v61 = vsel %vm441_vm14, %v440_v55, %v439_v54  ;;  %v1733_v62 = vadd.f32 %v1304_v52, %v426_v49 }
  0xdc   : >> { %v1314_v59 = vmul.f32 -1.442695, %v1722_v48  ;;  %1377 = vpow2.f32 %v1313_v51  ;;  %v445_v0 = vsel %vm408_vm0, %v400_v22, %v401_v23  ;;  %v1737_v1 = vadd.f32 %v1306_v57, %v432_v53 }
  0xdd   : >> { %v1315_v2 = vmul.f32 -1.442695, %v1728_v56  ;;  %v443_v3 = vrot.slane %v442_v61, 6  ;;  %v1740_v4 = vadd.f32 %v1308_v60, %v438_v58  ;;  %v447_v6 = vsel %vm446_vm15, %v445_v0, %v444_v63 }
  0xde   : >> { %1379 = vpow2.f32 %v1314_v59  ;;  %v1316_v7 = vmul.f32 -1.442695, %v1733_v62  ;;  %v1317_v8 = vmul.f32 -1.442695, %v1737_v1  ;;  %v448_v10 = vrot.slane %v447_v6, 7 }
  0xdf   : >> { %1381 = vpow2.f32 %v1315_v2  ;;  %v1745_v11 = vadd.f32 %v1310_v5, %v443_v3  ;;  %v1318_v12 = vmul.f32 -1.442695, %v1740_v4  ;;  %v625_v30 = vrot.slane %v1717_v41, 1 }
  0xe0   : >> { %1383 = vpow2.f32 %v1316_v7  ;;  %v1751_v17 = vadd.f32 %v1312_v13, %v448_v10  ;;  %v626_v33 = vrot.slane %v1722_v48, 1  ;;  %v627_v34 = vrot.slane %v1728_v56, 1 }
  0xe1   : >> { %1385 = vpow2.f32 %v1317_v8  ;;  %v1319_v18 = vmul.f32 -1.442695, %v1745_v11  ;;  %v628_v35 = vrot.slane %v1733_v62, 1  ;;  %v629_v36 = vrot.slane %v1737_v1, 1 }
  0xe2   : >> { %v1378_v9 = vpop.eup %1377  ;;  %1387 = vpow2.f32 %v1318_v12  ;;  %v1320_v23 = vmul.f32 -1.442695, %v1751_v17  ;;  %v630_v39 = vrot.slane %v1740_v4, 1  ;;  %v631_v43 = vrot.slane %v1745_v11, 1 }
  0xe3   : >> { %v1749_v15 = vadd.f32 1.0, %v1378_v9  ;;  %v1321_v44 = vmul.f32 -1.442695, %v625_v30  ;;  %v632_v46 = vrot.slane %v1751_v17, 1  ;;  %v1322_v47 = vmul.f32 -1.442695, %v626_v33 }
  0xe4   : >> { %v1380_v14 = vpop.eup %1379  ;;  %v1323_v51 = vmul.f32 -1.442695, %v627_v34  ;;  %v1795_v52 = vmul.f32 -1.442695, %v628_v35  ;;  %v1797_v53 = vmul.f32 -1.442695, %v629_v36 }
  0xe5   : >> { %v1382_v16 = vpop.eup %1381  ;;  %v1754_v19 = vadd.f32 1.0, %v1380_v14  ;;  %1389 = vrcp.f32 %v1749_v15  ;;  %v508_v57 = vand.u32 2147483648, %v1749_v15  ;;  %v1805_v58 = vmul.f32 -1.442695, %v630_v39 }
  0xe6   : >> { %v1384_v20 = vpop.eup %1383  ;;  %v1757_v21 = vadd.f32 1.0, %v1382_v16  ;;  %1391 = vpow2.f32 %v1319_v18  ;;  %v506_v59 = vand.u32 2147483647, %v1749_v15  ;;  %v1808_v61 = vmul.f32 -1.442695, %v631_v43 }
  0xe7   : >> { %v1386_v22 = vpop.eup %1385  ;;  %1393 = vrcp.f32 %v1754_v19  ;;  %v1761_v25 = vadd.f32 1.0, %v1384_v20  ;;  %vm502_vm0 = vweird.f32 %v1749_v15  ;;  %v523_v2 = vand.u32 2147483648, %v1754_v19 }
  0xe8   : >> { %v1388_v24 = vpop.eup %1387  ;;  %v1763_v26 = vadd.f32 1.0, %v1386_v22  ;;  %1395 = vrcp.f32 %v1757_v21  ;;  %v1815_v3 = vmul.f32 -1.442695, %v632_v46  ;;  %vm517_vm1 = vweird.f32 %v1754_v19 }
  0xe9   : >> { %1397 = vpow2.f32 %v1320_v23  ;;  %v1768_v28 = vadd.f32 1.0, %v1388_v24  ;;  %v521_v5 = vand.u32 2147483647, %v1754_v19  ;;  %v509_v9 = vor.u32 1.1754944e-38, %v508_v57 }
  0xea   : >> { %1399 = vrcp.f32 %v1761_v25  ;;  %v538_v10 = vand.u32 2147483648, %v1757_v21  ;;  %v553_v12 = vand.u32 2147483648, %v1761_v25  ;;  %vm1826_vm2 = vcmp.eq.f32.partialorder %v506_v59, 8.507059e+37 }
  0xeb   : >> { %v1766_v27 = vpop.eup %1389  ;;  %1401 = vrcp.f32 %v1763_v26  ;;  %vm532_vm3 = vweird.f32 %v1757_v21  ;;  %v536_v16 = vand.u32 2147483647, %v1757_v21  ;;  %v524_v23 = vor.u32 1.1754944e-38, %v523_v2 }
  0xec   : >> { %v1392_v29 = vpop.eup %1391  ;;  %v498_v32 = vmul.f32 %v1766_v27, %v1749_v15  ;;  %1403 = vrcp.f32 %v1768_v28  ;;  %vm503_vm4 = vweird.f32 %v1766_v27  ;;  %vm1839_vm5 = vcmp.eq.f32.partialorder %v521_v5, 8.507059e+37 }
  0xed   : >> { %v1772_v31 = vpop.eup %1393  ;;  %v1783_v38 = vadd.f32 1.0, %v1392_v29  ;;  %v551_v33 = vand.u32 2147483647, %v1761_v25  ;;  %v539_v35 = vor.u32 1.1754944e-38, %v538_v10  ;;  %vm547_vm7 = vweird.f32 %v1761_v25  ;;  %vm1852_vm8 = vmor %vm502_vm0, %vm503_vm4 }
  0xee   : >> { %v1781_v37 = vpop.eup %1395  ;;  %v513_v42 = vmul.f32 %v1772_v31, %v1754_v19  ;;  %v499_v45 = vsub.f32 1.0, %v498_v32  ;;  %vm518_vm6 = vweird.f32 %v1772_v31  ;;  %v1847_v36 = vor.u32 1.1754944e-38, %v553_v12 }
  0xef   : >> { %v1398_v40 = vpop.eup %1397  ;;  %v528_v50 = vmul.f32 %v1781_v37, %v1757_v21  ;;  %1405 = vrcp.f32 %v1783_v38  ;;  %v568_v39 = vand.u32 2147483648, %v1763_v26  ;;  %vm1857_vm9 = vcmp.eq.f32.partialorder %v536_v16, 8.507059e+37  ;;  %vm1882_vm12 = vmor %vm517_vm1, %vm518_vm6 }
  0xf0   : >> { %v1791_v49 = vpop.eup %1399  ;;  %v1801_v55 = vadd.f32 1.0, %v1398_v40  ;;  %v514_v60 = vsub.f32 1.0, %v513_v42  ;;  %1407 = vpow2.f32 %v1321_v44  ;;  %v500_v0 = vmul.f32 %v1766_v27, %v499_v45 }
  0xf1   : >> { %v1799_v54 = vpop.eup %1401  ;;  %v529_v6 = vsub.f32 1.0, %v528_v50  ;;  %v543_v7 = vmul.f32 %v1791_v49, %v1761_v25  ;;  %vm562_vm10 = vweird.f32 %v1763_v26  ;;  %v566_v44 = vand.u32 2147483647, %v1763_v26 }
  0xf2   : >> { %v1810_v63 = vpop.eup %1403  ;;  %v558_v8 = vmul.f32 %v1799_v54, %v1763_v26  ;;  %1409 = vrcp.f32 %v1801_v55  ;;  %v515_v14 = vmul.f32 %v1772_v31, %v514_v60  ;;  %v501_v22 = vadd.f32 %v1766_v27, %v500_v0 }
  0xf3   : >> { %v573_v18 = vmul.f32 %v1810_v63, %v1768_v28  ;;  %1411 = vpow2.f32 %v1322_v47  ;;  %v530_v30 = vmul.f32 %v1781_v37, %v529_v6  ;;  %v544_v32 = vsub.f32 1.0, %v543_v7 }
  0xf4   : >> { %1413 = vpow2.f32 %v1323_v51  ;;  %v559_v34 = vsub.f32 1.0, %v558_v8  ;;  %v516_v42 = vadd.f32 %v1772_v31, %v515_v14  ;;  %v505_v15 = vsel %vm1852_vm8, %v1766_v27, %v501_v22 }
  0xf5   : >> { %v1835_v20 = vpop.eup %1405  ;;  %v574_v45 = vsub.f32 1.0, %v573_v18  ;;  %vm533_vm11 = vweird.f32 %v1781_v37  ;;  %v581_v50 = vand.u32 2147483647, %v1768_v28  ;;  %v531_v59 = vadd.f32 %v1781_v37, %v530_v30 }
  0xf6   : >> { %v1408_v24 = vpop.eup %1407  ;;  %v588_v46 = vmul.f32 %v1835_v20, %v1783_v38  ;;  %v545_v60 = vmul.f32 %v1791_v49, %v544_v32  ;;  %v560_v0 = vmul.f32 %v1799_v54, %v559_v34  ;;  %1415 = vpow2.f32 %v1795_v52  ;;  %vm1907_vm0 = vmor %vm532_vm3, %vm533_vm11 }
  0xf7   : >> { %v1872_v51 = vadd.f32 1.0, %v1408_v24  ;;  %vm548_vm13 = vweird.f32 %v1791_v49  ;;  %v569_v5 = vor.u32 1.1754944e-38, %v568_v39  ;;  %vm577_vm14 = vweird.f32 %v1768_v28 }
  0xf8   : >> { %v1865_v47 = vpop.eup %1409  ;;  %v583_v6 = vand.u32 2147483648, %v1768_v28  ;;  %v520_v52 = vsel %vm1882_vm12, %v1772_v31, %v516_v42  ;;  %vm1892_vm15 = vcmp.eq.f32.partialorder %v551_v33, 8.507059e+37  ;;  %v575_v19 = vmul.f32 %v1810_v63, %v574_v45  ;;  %vm1941_vm8 = vmor %vm547_vm7, %vm548_vm13 }
  0xf9   : >> { %v1412_v57 = vpop.eup %1411  ;;  %v589_v8 = vsub.f32 1.0, %v588_v46  ;;  %v603_v10 = vmul.f32 %v1865_v47, %v1801_v55  ;;  %v1901_v12 = vsel %vm1826_vm2, %v509_v9, %v505_v15  ;;  %vm563_vm1 = vweird.f32 %v1799_v54 }
  0xfa   : >> { %v1414_v2 = vpop.eup %1413  ;;  %vm1912_vm4 = vcmp.eq.f32.partialorder %v566_v44, 8.507059e+37  ;;  %v1916_v16 = vadd.f32 1.0, %v1412_v57  ;;  %1417 = vrcp.f32 %v1872_v51  ;;  %v535_v9 = vsel %vm1907_vm0, %v1781_v37, %v531_v59 }
  0xfb   : >> { %v546_v21 = vadd.f32 %v1791_v49, %v545_v60  ;;  %v561_v13 = vadd.f32 %v1799_v54, %v560_v0  ;;  %vm1924_vm2 = vcmp.eq.f32.partialorder %v581_v50, 8.507059e+37  ;;  %vm592_vm3 = vweird.f32 %v1783_v38 }
  0xfc   : >> { %v1929_v22 = vadd.f32 1.0, %v1414_v2  ;;  %v1933_v24 = vsel %vm1839_vm5, %v524_v23, %v520_v52  ;;  %vm578_vm6 = vweird.f32 %v1810_v63  ;;  %v584_v30 = vor.u32 1.1754944e-38, %v583_v6  ;;  %v1416_v37 = vpop.eup %1415  ;;  %vm1956_vm5 = vmor %vm562_vm10, %vm563_vm1 }
  0xfd   : >> { %1419 = vpow2.f32 %v1797_v53  ;;  %v576_v33 = vadd.f32 %v1810_v63, %v575_v19  ;;  %v590_v29 = vmul.f32 %v1835_v20, %v589_v8  ;;  %v604_v23 = vsub.f32 1.0, %v603_v10  ;;  %vm1977_vm7 = vmor %vm577_vm14, %vm578_vm6 }
  0xfe   : >> { %1421 = vpow2.f32 %v1805_v58  ;;  %v1950_v34 = vsel %vm1857_vm9, %v539_v35, %v535_v9  ;;  %v596_v53 = vand.u32 2147483647, %v1783_v38  ;;  %v598_v39 = vand.u32 2147483648, %v1783_v38 }
  0xff   : >> { %1423 = vrcp.f32 %v1916_v16  ;;  %v550_v58 = vsel %vm1941_vm8, %v1791_v49, %v546_v21  ;;  %v565_v35 = vsel %vm1956_vm5, %v1799_v54, %v561_v13  ;;  %v611_v26 = vand.u32 2147483647, %v1801_v55 }
 0x100   : >> { %1425 = vrcp.f32 %v1929_v22  ;;  %v1971_v40 = vpop.eup %1417  ;;  %vm593_vm9 = vweird.f32 %v1835_v20  ;;  %v613_v49 = vand.u32 2147483648, %v1801_v55  ;;  %v1984_v54 = vadd.f32 1.0, %v1416_v37 }
 0x101   : >> { %1427 = vpow2.f32 %v1808_v61  ;;  %v580_v43 = vsel %vm1977_vm7, %v1810_v63, %v576_v33  ;;  %v591_v44 = vadd.f32 %v1835_v20, %v590_v29  ;;  %v605_v28 = vmul.f32 %v1865_v47, %v604_v23  ;;  %vm2023_vm13 = vmor %vm592_vm3, %vm593_vm9 }
 0x102   : >> { %1429 = vpow2.f32 %v1815_v3  ;;  %v1995_v46 = vsel %vm1892_vm15, %v1847_v36, %v550_v58  ;;  %vm1997_vm10 = vcmp.eq.f32.partialorder %v596_v53, 8.507059e+37  ;;  %vm607_vm11 = vweird.f32 %v1801_v55 }
 0x103   : >> { %v1420_v45 = vpop.eup %1419  ;;  %v684_v63 = vand.u32 2147483648, %v1872_v51  ;;  %v2005_v50 = vsel %vm1912_vm4, %v569_v5, %v565_v35  ;;  %v599_v3 = vor.u32 1.1754944e-38, %v598_v39  ;;  %vm2007_vm12 = vcmp.eq.f32.partialorder %v611_v26, 8.507059e+37 }
 0x104   : >> { %v1422_v15 = vpop.eup %1421  ;;  %v674_v36 = vmul.f32 %v1971_v40, %v1872_v51  ;;  %v2017_v60 = vsel %vm1924_vm2, %v584_v30, %v580_v43  ;;  %v614_v2 = vor.u32 1.1754944e-38, %v613_v49  ;;  %1431 = vrcp.f32 %v1984_v54 }
 0x105   : >> { %v2013_v59 = vpop.eup %1423  ;;  %v793_v27 = vrot.slane %v1717_v41, 2  ;;  %v595_v6 = vsel %vm2023_vm13, %v1835_v20, %v591_v44  ;;  %v606_v52 = vadd.f32 %v1865_v47, %v605_v28  ;;  %vm608_vm14 = vweird.f32 %v1865_v47 }
 0x106   : >> { %v2029_v5 = vpop.eup %1425  ;;  %v682_v38 = vand.u32 2147483647, %v1872_v51  ;;  %v2037_v19 = vadd.f32 1.0, %v1420_v45  ;;  %v2039_v8 = vor.u32 1.1754944e-38, %v684_v63  ;;  %v794_v10 = vrot.slane %v1722_v48, 2  ;;  %vm2054_vm15 = vmor %vm607_vm11, %vm608_vm14 }
 0x107   : >> { %v1428_v7 = vpop.eup %1427  ;;  %v795_v31 = vrot.slane %v1728_v56, 2  ;;  %v2043_v9 = vadd.f32 1.0, %v1422_v15  ;;  %v675_v21 = vsub.f32 1.0, %v674_v36  ;;  %v689_v20 = vmul.f32 %v2013_v59, %v1916_v16 }
 0x108   : >> { %v1430_v14 = vpop.eup %1429  ;;  %v796_v13 = vrot.slane %v1733_v62, 2  ;;  %v2050_v18 = vsel %vm1997_vm10, %v599_v3, %v595_v6  ;;  %v699_v37 = vand.u32 2147483648, %v1916_v16  ;;  %v704_v32 = vmul.f32 %v2029_v5, %v1929_v22 }
 0x109   : >> { %v797_v33 = vrot.slane %v1737_v1, 2  ;;  %v610_v29 = vsel %vm2054_vm15, %v1865_v47, %v606_v52  ;;  %v2065_v23 = vadd.f32 1.0, %v1428_v7  ;;  %vm678_vm0 = vweird.f32 %v1872_v51 }
 0x10a   : >> { %v697_v55 = vand.u32 2147483647, %v1916_v16  ;;  %v817_v25 = vrot.slane %v1717_v41, 3  ;;  %v2070_v53 = vpop.eup %1431  ;;  %v2072_v39 = vadd.f32 1.0, %v1430_v14  ;;  %1433 = vrcp.f32 %v2037_v19 }
 0x10b   : >> { %v818_v58 = vrot.slane %v1722_v48, 3  ;;  %v819_v35 = vrot.slane %v1728_v56, 3  ;;  %v676_v47 = vmul.f32 %v1971_v40, %v675_v21  ;;  %v690_v26 = vsub.f32 1.0, %v689_v20 }
 0x10c   : >> { %v712_v42 = vand.u32 2147483647, %v1929_v22  ;;  %1435 = vrcp.f32 %v2043_v9  ;;  %v2082_v49 = vsel %vm2007_vm12, %v614_v2, %v610_v29  ;;  %v2084_v43 = vor.u32 1.1754944e-38, %v699_v37 }
 0x10d   : >> { %v705_v44 = vsub.f32 1.0, %v704_v32  ;;  %v714_v28 = vand.u32 2147483648, %v1929_v22  ;;  %vm2087_vm1 = vcmp.eq.f32.partialorder %v682_v38, 8.507059e+37  ;;  %vm693_vm4 = vweird.f32 %v1916_v16 }
 0x10e   : >> { %v719_v61 = vmul.f32 %v2070_v53, %v1984_v54  ;;  %1437 = vrcp.f32 %v2065_v23  ;;  %v820_v63 = vrot.slane %v1733_v62, 3  ;;  %v1329_v15 = vmul.f32 -1.442695, %v817_v25 }
 0x10f   : >> { %1439 = vrcp.f32 %v2072_v39  ;;  %v821_v3 = vrot.slane %v1737_v1, 3  ;;  %v1330_v57 = vmul.f32 -1.442695, %v818_v58  ;;  %v1331_v36 = vmul.f32 -1.442695, %v819_v35 }
 0x110   : >> { %v677_v0 = vadd.f32 %v1971_v40, %v676_v47  ;;  %vm679_vm2 = vweird.f32 %v1971_v40  ;;  %v691_v2 = vmul.f32 %v2013_v59, %v690_v26  ;;  %1441 = vpow2.f32 %v1329_v15  ;;  %v2101_v6 = vpop.eup %1433 }
 0x111   : >> { %v2103_v52 = vor.u32 1.1754944e-38, %v714_v28  ;;  %v727_v38 = vand.u32 2147483647, %v1984_v54  ;;  %v729_v7 = vand.u32 2147483648, %v1984_v54  ;;  %1443 = vpow2.f32 %v1330_v57  ;;  %vm2114_vm8 = vmor %vm678_vm0, %vm679_vm2 }
 0x112   : >> { %v2107_v14 = vpop.eup %1435  ;;  %vm694_vm3 = vweird.f32 %v2013_v59  ;;  %vm708_vm6 = vweird.f32 %v1929_v22  ;;  %v744_v21 = vand.u32 2147483648, %v2037_v19  ;;  %1445 = vpow2.f32 %v1331_v36 }
 0x113   : >> { %v1332_v20 = vmul.f32 -1.442695, %v820_v63  ;;  %vm2118_vm5 = vcmp.eq.f32.partialorder %v697_v55, 8.507059e+37  ;;  %v706_v32 = vmul.f32 %v2029_v5, %v705_v44  ;;  %v720_v29 = vsub.f32 1.0, %v719_v61  ;;  %vm2155_vm11 = vmor %vm693_vm4, %vm694_vm3 }
 0x114   : >> { %v742_v25 = vand.u32 2147483647, %v2037_v19  ;;  %v1333_v58 = vmul.f32 -1.442695, %v821_v3  ;;  %v2124_v35 = vpop.eup %1437  ;;  %v681_v51 = vsel %vm2114_vm8, %v1971_v40, %v677_v0  ;;  %v692_v47 = vadd.f32 %v2013_v59, %v691_v2 }
 0x115   : >> { %v734_v55 = vmul.f32 %v2101_v6, %v2037_v19  ;;  %v822_v26 = vrot.slane %v1740_v4, 3  ;;  %v2133_v28 = vpop.eup %1439  ;;  %vm709_vm7 = vweird.f32 %v2029_v5  ;;  %vm723_vm9 = vweird.f32 %v1984_v54 }
 0x116   : >> { %v2137_v44 = vor.u32 1.1754944e-38, %v729_v7  ;;  %v749_v61 = vmul.f32 %v2107_v14, %v2043_v9  ;;  %v757_v40 = vand.u32 2147483647, %v2043_v9  ;;  %v1442_v63 = vpop.eup %1441  ;;  %vm724_vm10 = vweird.f32 %v2070_v53  ;;  %vm2190_vm0 = vmor %vm708_vm6, %vm709_vm7 }
 0x117   : >> { %v2143_v15 = vor.u32 1.1754944e-38, %v744_v21  ;;  %v759_v3 = vand.u32 2147483648, %v2043_v9  ;;  %1447 = vpow2.f32 %v1332_v20  ;;  %v1444_v57 = vpop.eup %1443  ;;  %v2149_v36 = vsel %vm2087_vm1, %v2039_v8, %v681_v51  ;;  %vm2217_vm4 = vmor %vm723_vm9, %vm724_vm10 }
 0x118   : >> { %v707_v2 = vadd.f32 %v2029_v5, %v706_v32  ;;  %vm2160_vm12 = vcmp.eq.f32.partialorder %v712_v42, 8.507059e+37  ;;  %v721_v21 = vmul.f32 %v2070_v53, %v720_v29  ;;  %1449 = vpow2.f32 %v1333_v58  ;;  %v1446_v45 = vpop.eup %1445 }
 0x119   : >> { %v696_v8 = vsel %vm2155_vm11, %v2013_v59, %v692_v47  ;;  %v735_v20 = vsub.f32 1.0, %v734_v55  ;;  %vm739_vm13 = vweird.f32 %v2101_v6  ;;  %v1334_v16 = vmul.f32 -1.442695, %v822_v26 }
 0x11a   : >> { %vm2169_vm14 = vcmp.eq.f32.partialorder %v727_v38, 8.507059e+37  ;;  %v750_v42 = vsub.f32 1.0, %v749_v61  ;;  %v764_v32 = vmul.f32 %v2124_v35, %v2065_v23  ;;  %v823_v29 = vrot.slane %v1745_v11, 3 }
 0x11b   : >> { %v2176_v58 = vadd.f32 1.0, %v1442_v63  ;;  %vm738_vm15 = vweird.f32 %v2037_v19  ;;  %v779_v59 = vmul.f32 %v2133_v28, %v2072_v39  ;;  %1451 = vtanh.f32 %v793_v27 }
 0x11c   : >> { %v824_v38 = vrot.slane %v1751_v17, 3  ;;  %v2184_v51 = vadd.f32 1.0, %v1444_v57  ;;  %v722_v55 = vadd.f32 %v2070_v53, %v721_v21  ;;  %v2195_v26 = vor.u32 1.1754944e-38, %v759_v3  ;;  %vm2271_vm7 = vmor %vm738_vm15, %vm739_vm13 }
 0x11d   : >> { %1453 = vtanh.f32 %v794_v10  ;;  %v2199_v41 = vadd.f32 1.0, %v1446_v45  ;;  %v1448_v27 = vpop.eup %1447  ;;  %v2204_v61 = vsel %vm2118_vm5, %v2084_v43, %v696_v8  ;;  %v711_v22 = vsel %vm2190_vm0, %v2029_v5, %v707_v2 }
 0x11e   : >> { %v736_v63 = vmul.f32 %v2101_v6, %v735_v20  ;;  %vm753_vm1 = vweird.f32 %v2043_v9  ;;  %1455 = vpow2.f32 %v1334_v16  ;;  %v1450_v3 = vpop.eup %1449  ;;  %v765_v48 = vsub.f32 1.0, %v764_v32 }
 0x11f   : >> { %v772_v10 = vand.u32 2147483647, %v2065_v23  ;;  %v1335_v57 = vmul.f32 -1.442695, %v823_v29  ;;  %1457 = vrcp.f32 %v2176_v58  ;;  %v751_v5 = vmul.f32 %v2107_v14, %v750_v42 }
 0x120   : >> { %v780_v37 = vsub.f32 1.0, %v779_v59  ;;  %v1336_v0 = vmul.f32 -1.442695, %v824_v38  ;;  %1459 = vrcp.f32 %v2184_v51  ;;  %v726_v2 = vsel %vm2217_vm4, %v2070_v53, %v722_v55 }
 0x121   : >> { %vm2228_vm2 = vcmp.eq.f32.partialorder %v742_v25, 8.507059e+37  ;;  %vm768_vm3 = vweird.f32 %v2065_v23  ;;  %v774_v54 = vand.u32 2147483648, %v2065_v23  ;;  %v2234_v45 = vadd.f32 1.0, %v1448_v27  ;;  %v2237_v8 = vpop.eup %1451 }
 0x122   : >> { %1461 = vrcp.f32 %v2199_v41  ;;  %v2242_v53 = vsel %vm2160_vm12, %v2103_v52, %v711_v22  ;;  %v737_v25 = vadd.f32 %v2101_v6, %v736_v63  ;;  %vm2245_vm6 = vcmp.eq.f32.partialorder %v757_v40, 8.507059e+37 }
 0x123   : >> { %1463 = vtanh.f32 %v795_v31  ;;  %v2251_v16 = vadd.f32 1.0, %v1450_v3  ;;  %v2253_v42 = vpop.eup %1453  ;;  %vm754_vm8 = vweird.f32 %v2107_v14  ;;  %v766_v32 = vmul.f32 %v2124_v35, %v765_v48 }
 0x124   : >> { %vm783_vm5 = vweird.f32 %v2072_v39  ;;  %1465 = vpow2.f32 %v1335_v57  ;;  %v1456_v52 = vpop.eup %1455  ;;  %v2261_v40 = vsel %vm2169_vm14, %v2137_v44, %v726_v2  ;;  %v752_v56 = vadd.f32 %v2107_v14, %v751_v5  ;;  %vm2296_vm10 = vmor %vm753_vm1, %vm754_vm8 }
 0x125   : >> { %v781_v31 = vmul.f32 %v2133_v28, %v780_v37  ;;  %1467 = vpow2.f32 %v1336_v0  ;;  %v2265_v7 = vpop.eup %1457  ;;  %vm2275_vm9 = vcmp.eq.f32.partialorder %v772_v10, 8.507059e+37  ;;  %v775_v44 = vor.u32 1.1754944e-38, %v774_v54 }
 0x126   : >> { %v787_v30 = vand.u32 2147483647, %v2072_v39  ;;  %v798_v38 = vrot.slane %v1740_v4, 2  ;;  %1469 = vrcp.f32 %v2234_v45  ;;  %v2282_v47 = vpop.eup %1459  ;;  %v741_v19 = vsel %vm2271_vm7, %v2101_v6, %v737_v25 }
 0x127   : >> { %v789_v55 = vand.u32 2147483648, %v2072_v39  ;;  %v799_v27 = vrot.slane %v1745_v11, 2  ;;  %1471 = vrcp.f32 %v2251_v16  ;;  %v767_v63 = vadd.f32 %v2124_v35, %v766_v32 }
 0x128   : >> { %v2290_v22 = vpop.eup %1461  ;;  %vm769_vm11 = vweird.f32 %v2124_v35  ;;  %1473 = vtanh.f32 %v796_v13  ;;  %v2304_v11 = vadd.f32 1.0, %v1456_v52  ;;  %v756_v3 = vsel %vm2296_vm10, %v2107_v14, %v752_v56 }
 0x129   : >> { %v2306_v6 = vpop.eup %1463  ;;  %v782_v9 = vadd.f32 %v2133_v28, %v781_v31  ;;  %vm784_vm12 = vweird.f32 %v2133_v28  ;;  %1475 = vtanh.f32 %v797_v33  ;;  %v800_v10 = vrot.slane %v1751_v17, 2  ;;  %vm2329_vm13 = vmor %vm768_vm3, %vm769_vm11 }
 0x12a   : >> { %v1466_v48 = vpop.eup %1465  ;;  %1477 = vtanh.f32 %v798_v38  ;;  %v866_v62 = vmul.f32 %v2265_v7, %v2176_v58  ;;  %v881_v13 = vmul.f32 %v2282_v47, %v2184_v51  ;;  %v2323_v14 = vsel %vm2228_vm2, %v2143_v15, %v741_v19  ;;  %vm2353_vm15 = vmor %vm783_vm5, %vm784_vm12 }
 0x12b   : >> { %v1468_v57 = vpop.eup %1467  ;;  %vm2333_vm14 = vcmp.eq.f32.partialorder %v787_v30, 8.507059e+37  ;;  %1479 = vtanh.f32 %v799_v27  ;;  %v896_v33 = vmul.f32 %v2290_v22, %v2199_v41  ;;  %v2344_v15 = vsel %vm2245_vm6, %v2195_v26, %v756_v3 }
 0x12c   : >> { %v2339_v43 = vpop.eup %1469  ;;  %v771_v23 = vsel %vm2329_vm13, %v2124_v35, %v767_v63  ;;  %v790_v37 = vor.u32 1.1754944e-38, %v789_v55  ;;  %1481 = vrcp.f32 %v2304_v11  ;;  %v786_v26 = vsel %vm2353_vm15, %v2133_v28, %v782_v9  ;;  %v2398_v63 = vld [vmem:[#allocation3] sm:$0xff] }
 0x12d   : >> { %v2358_v0 = vpop.eup %1471  ;;  %v2363_v2 = vadd.f32 1.0, %v1466_v48  ;;  %v876_v35 = vand.u32 2147483648, %v2176_v58  ;;  %v891_v21 = vand.u32 2147483648, %v2184_v51  ;;  %1483 = vtanh.f32 %v800_v10 }
 0x12e   : >> { %v2367_v39 = vpop.eup %1473  ;;  %v2369_v54 = vadd.f32 1.0, %v1468_v57  ;;  %v867_v25 = vsub.f32 1.0, %v866_v62  ;;  %v882_v20 = vsub.f32 1.0, %v881_v13  ;;  %v2375_v52 = vsel %vm2275_vm9, %v775_v44, %v771_v23 }
 0x12f   : >> { %v2371_v32 = vpop.eup %1475  ;;  %v897_v28 = vsub.f32 1.0, %v896_v33  ;;  %v906_v56 = vand.u32 2147483648, %v2199_v41  ;;  %v911_v31 = vmul.f32 %v2339_v43, %v2234_v45  ;;  %v2384_v30 = vsel %vm2333_vm14, %v790_v37, %v786_v26 }
 0x130   : >> { %v2380_v29 = vpop.eup %1477  ;;  %v874_v38 = vand.u32 2147483647, %v2176_v58  ;;  %v921_v19 = vand.u32 2147483648, %v2234_v45  ;;  %v926_v59 = vmul.f32 %v2358_v0, %v2251_v16  ;;  %v2392_v55 = vor.u32 1.1754944e-38, %v876_v35 }
 0x131   : >> { %v2390_v44 = vpop.eup %1479  ;;  %v889_v27 = vand.u32 2147483647, %v2184_v51  ;;  %v2395_v4 = vor.u32 1.1754944e-38, %v891_v21  ;;  %1485 = vrcp.f32 %v2363_v2  ;;  %v868_v9 = vmul.f32 %v2265_v7, %v867_v25 }
 0x132   : >> { %2734 = vst [vmem:[#allocation6_spill] sm:$0xff] %v2392_v55  ;;  %v2400_v3 = vpop.eup %1481  ;;  %v883_v48 = vmul.f32 %v2282_v47, %v882_v20  ;;  %v904_v10 = vand.u32 2147483647, %v2199_v41  ;;  %1487 = vrcp.f32 %v2369_v54  ;;  %v898_v62 = vmul.f32 %v2290_v22, %v897_v28 }
 0x133   : >> { %2735 = vst [vmem:[#allocation7_spill] sm:$0xff] %v2395_v4  ;;  %v2407_v13 = vor.u32 1.1754944e-38, %v906_v56  ;;  %v912_v57 = vsub.f32 1.0, %v911_v31  ;;  %v919_v1 = vand.u32 2147483647, %v2234_v45  ;;  %v2410_v17 = vpop.eup %1483  ;;  %vm871_vm0 = vweird.f32 %v2265_v7 }
 0x134   : >> { %v2413_v33 = vor.u32 1.1754944e-38, %v921_v19  ;;  %v927_v23 = vsub.f32 1.0, %v926_v59  ;;  %v934_v5 = vand.u32 2147483647, %v2251_v16  ;;  %v987_v37 = vrot.slane %v2398_v63, 1 }
 0x135   : >> { %2736 = vst [vmem:[#allocation8_spill] sm:$0xff] %v2407_v13  ;;  %vm886_vm1 = vweird.f32 %v2282_v47  ;;  %v941_v35 = vmul.f32 %v2400_v3, %v2304_v11  ;;  %v988_v21 = vrot.slane %v2398_v63, 2  ;;  %v989_v25 = vrot.slane %v2398_v63, 3 }
 0x136   : >> { %2737 = vst [vmem:[#allocation9_spill] sm:$0xff] %v2413_v33  ;;  %v2424_v20 = vadd.f32 %v2265_v7, %v868_v9  ;;  %vm870_vm4 = vweird.f32 %v2176_v58  ;;  %v2428_v28 = vadd.f32 %v2282_v47, %v883_v48  ;;  %vm901_vm2 = vweird.f32 %v2290_v22 }
 0x137   : >> { %v990_v31 = vrot.slane %v2398_v63, 4  ;;  %v2433_v19 = vpop.eup %1485  ;;  %vm885_vm3 = vweird.f32 %v2184_v51  ;;  %v2437_v59 = vadd.f32 %v2290_v22, %v898_v62  ;;  %v913_v9 = vmul.f32 %v2339_v43, %v912_v57  ;;  %vm2507_vm12 = vmor %vm870_vm4, %vm871_vm0 }
 0x138   : >> { %2738 = vst [vmem:[#allocation10_spill] sm:$0xff] %v2428_v28  ;;  %vm916_vm6 = vweird.f32 %v2339_v43  ;;  %v991_v26 = vrot.slane %v2398_v63, 5  ;;  %v2443_v33 = vpop.eup %1487  ;;  %vm900_vm8 = vweird.f32 %v2199_v41  ;;  %v928_v56 = vmul.f32 %v2358_v0, %v927_v23  ;;  %vm2518_vm9 = vmor %vm885_vm3, %vm886_vm1 }
 0x139   : >> { %2739 = vst [vmem:[#allocation11_spill] sm:$0xff] %v2437_v59  ;;  %vm931_vm5 = vweird.f32 %v2358_v0  ;;  %v992_v13 = vrot.slane %v2398_v63, 6  ;;  %v1001_v62 = vmul.f32 %v2398_v63, %v2149_v36  ;;  %v1002_v57 = vmul.f32 %v987_v37, %v2204_v61  ;;  %vm2531_vm0 = vmor %vm900_vm8, %vm901_vm2 }
 0x13a   : >> { %vm915_vm7 = vweird.f32 %v2234_v45  ;;  %v942_v48 = vsub.f32 1.0, %v941_v35  ;;  %v993_v4 = vrot.slane %v2398_v63, 7  ;;  %v1003_v55 = vmul.f32 %v988_v21, %v2242_v53 }
 0x13b   : >> { %v1004_v59 = vmul.f32 %v989_v25, %v2261_v40  ;;  %v956_v23 = vmul.f32 %v2433_v19, %v2363_v2  ;;  %v1005_v28 = vmul.f32 %v990_v31, %v2323_v14  ;;  %v1009_v36 = vmul.f32 %v2237_v8, %v1901_v12  ;;  %vm2544_vm1 = vmor %vm915_vm7, %vm916_vm6 }
 0x13c   : >> { %v1010_v61 = vmul.f32 %v2253_v42, %v1933_v24  ;;  %vm2464_vm10 = vcmp.eq.f32.partialorder %v874_v38, 8.507059e+37  ;;  %v2470_v53 = vmul.f32 %v2443_v33, %v2369_v54  ;;  %v1006_v40 = vmul.f32 %v991_v26, %v2344_v15  ;;  %v2773_v37 = vld [vmem:[#allocation8_spill] sm:$0xff] }
 0x13d   : >> { %v1011_v63 = vmul.f32 %v2306_v6, %v1950_v34  ;;  %v1012_v14 = vmul.f32 %v2367_v39, %v1995_v46  ;;  %vm2477_vm11 = vcmp.eq.f32.partialorder %v889_v27, 8.507059e+37  ;;  %v1007_v24 = vmul.f32 %v992_v13, %v2375_v52 }
 0x13e   : >> { %v1013_v8 = vmul.f32 %v2371_v32, %v2005_v50  ;;  %v1017_v42 = vadd.f32 %v1009_v36, %v1001_v62  ;;  %v1018_v38 = vadd.f32 %v1010_v61, %v1002_v57  ;;  %vm2485_vm13 = vcmp.eq.f32.partialorder %v904_v10, 8.507059e+37 }
 0x13f   : >> { %v1008_v34 = vmul.f32 %v993_v4, %v2384_v30  ;;  %v1014_v46 = vmul.f32 %v2380_v29, %v2017_v60  ;;  %v1019_v6 = vadd.f32 %v1011_v63, %v1003_v55  ;;  %v1020_v39 = vadd.f32 %v1012_v14, %v1004_v59 }
 0x140   : >> { %vm2492_vm14 = vcmp.eq.f32.partialorder %v919_v1, 8.507059e+37  ;;  %vm2496_vm15 = vcmp.eq.f32.partialorder %v934_v5, 8.507059e+37  ;;  %v943_v50 = vmul.f32 %v2400_v3, %v942_v48  ;;  %v1015_v32 = vmul.f32 %v2390_v44, %v2050_v18  ;;  %1049 = vst [vmem:[#allocation1] ss:$9 sm:$0xff] %v1017_v42  ;;  %v2759_v26 = vld [vmem:[#allocation11_spill] sm:$0xff] }
 0x141   : >> { %v1021_v10 = vadd.f32 %v1013_v8, %v1005_v28  ;;  %1489 = vtanh.f32 %v1017_v42  ;;  %v914_v29 = vadd.f32 %v2339_v43, %v913_v9  ;;  %v1016_v30 = vmul.f32 %v2410_v17, %v2082_v49  ;;  %1051 = vst [vmem:[#allocation1 + $0x1] ss:$9 sm:$0xff] %v1018_v38  ;;  %v2756_v17 = vld [vmem:[#allocation10_spill] sm:$0xff]  ;;  %v2768_v48 = vld [vmem:[#allocation7_spill] sm:$0xff] }
 0x142   : >> { %v1022_v55 = vadd.f32 %v1014_v46, %v1006_v40  ;;  %1491 = vtanh.f32 %v1018_v38  ;;  %v929_v58 = vadd.f32 %v2358_v0, %v928_v56  ;;  %v957_v44 = vsub.f32 1.0, %v956_v23  ;;  %1053 = vst [vmem:[#allocation1 + $0x2] ss:$9 sm:$0xff] %v1019_v6  ;;  %v2767_v28 = vld [vmem:[#allocation6_spill] sm:$0xff] }
 0x143   : >> { %v1023_v4 = vadd.f32 %v1015_v32, %v1007_v24  ;;  %1493 = vtanh.f32 %v1019_v6  ;;  %v873_v49 = vsel %vm2507_vm12, %v2265_v7, %v2424_v20  ;;  %v972_v13 = vsub.f32 1.0, %v2470_v53  ;;  %1055 = vst [vmem:[#allocation1 + $0x3] ss:$9 sm:$0xff] %v1020_v39 }
 0x144   : >> { %v1024_v1 = vadd.f32 %v1016_v30, %v1008_v34  ;;  %1495 = vtanh.f32 %v1020_v39  ;;  %v888_v5 = vsel %vm2518_vm9, %v2282_v47, %v2756_v17  ;;  %v944_v7 = vadd.f32 %v2400_v3, %v943_v50  ;;  %1057 = vst [vmem:[#allocation1 + $0x4] ss:$9 sm:$0xff] %v1021_v10 }
 0x145   : >> { %vm946_vm4 = vweird.f32 %v2400_v3  ;;  %1497 = vtanh.f32 %v1021_v10  ;;  %v903_v47 = vsel %vm2531_vm0, %v2290_v22, %v2759_v26  ;;  %vm2760_vm2 = vweird.f32 %v2251_v16  ;;  %1059 = vst [vmem:[#allocation1 + $0x5] ss:$9 sm:$0xff] %v1022_v55 }
 0x146   : >> { %vm2558_vm3 = vmor %vm2760_vm2, %vm931_vm5  ;;  %v2763_v35 = vand.u32 2147483648, %v2251_v16  ;;  %v2764_v25 = vand.u32 2147483647, %v2304_v11  ;;  %1499 = vtanh.f32 %v1022_v55  ;;  %v878_v56 = vsel %vm2464_vm10, %v2767_v28, %v873_v49  ;;  %1061 = vst [vmem:[#allocation1 + $0x6] ss:$9 sm:$0xff] %v1023_v4 }
 0x147   : >> { %v1490_v22 = vpop.eup %1489  ;;  %v918_v31 = vsel %vm2544_vm1, %v2339_v43, %v914_v29  ;;  %v933_v16 = vsel %vm2558_vm3, %v2358_v0, %v929_v58  ;;  %v958_v59 = vmul.f32 %v2433_v19, %v957_v44  ;;  %v893_v62 = vsel %vm2477_vm11, %v2768_v48, %v888_v5  ;;  %1063 = vst [vmem:[#allocation1 + $0x7] ss:$9 sm:$0xff] %v1024_v1 }
 0x148   : >> { %v937_v21 = vor.u32 1.1754944e-38, %v2763_v35  ;;  %vm2566_vm6 = vcmp.eq.f32.partialorder %v2764_v25, 8.507059e+37  ;;  %v1492_v9 = vpop.eup %1491  ;;  %vm2769_vm8 = vweird.f32 %v2304_v11  ;;  %v2772_v0 = vand.u32 2147483648, %v2304_v11  ;;  %v2774_v11 = vld [vmem:[#allocation9_spill] sm:$0xff] }
 0x149   : >> { %vm2591_vm5 = vmor %vm2769_vm8, %vm946_vm4  ;;  %v973_v23 = vmul.f32 %v2443_v33, %v972_v13  ;;  %v1033_v36 = vmul.f32 %v1490_v22, %v878_v56  ;;  %v1494_v61 = vpop.eup %1493  ;;  %v908_v53 = vsel %vm2485_vm13, %v2773_v37, %v903_v47  ;;  %v966_v63 = vand.u32 2147483648, %v2363_v2 }
 0x14a   : >> { %v952_v57 = vor.u32 1.1754944e-38, %v2772_v0  ;;  %v948_v40 = vsel %vm2591_vm5, %v2400_v3, %v944_v7  ;;  %v1034_v14 = vmul.f32 %v1492_v9, %v893_v62  ;;  %v1496_v12 = vpop.eup %1495  ;;  %v923_v24 = vsel %vm2492_vm14, %v2774_v11, %v918_v31 }
 0x14b   : >> { %v938_v8 = vsel %vm2496_vm15, %v937_v21, %v933_v16  ;;  %1501 = vtanh.f32 %v1023_v4  ;;  %v1035_v42 = vmul.f32 %v1494_v61, %v908_v53  ;;  %1094 = vst [vmem:[%s2582_s20] sm:$0x1] %v1033_v36  ;;  %v1498_v38 = vpop.eup %1497  ;;  %v959_v15 = vadd.f32 %v2433_v19, %v958_v59 }
 0x14c   : >> { %vm961_vm7 = vweird.f32 %v2433_v19  ;;  %1503 = vtanh.f32 %v1024_v1  ;;  %v1036_v3 = vmul.f32 %v1496_v12, %v923_v24  ;;  %1095 = vst [vmem:[%s2582_s20 + $0x4] sm:$0x1] %v1034_v14  ;;  %v1500_v34 = vpop.eup %1499  ;;  %v953_v46 = vsel %vm2566_vm6, %v952_v57, %v948_v40 }
 0x14d   : >> { %v974_v6 = vadd.f32 %v2443_v33, %v973_v23  ;;  %vm976_vm9 = vweird.f32 %v2443_v33  ;;  %v1037_v39 = vmul.f32 %v1498_v38, %v938_v8  ;;  %1096 = vst [vmem:[%s2582_s20 + $0x8] sm:$0x1] %v1035_v42  ;;  %vm960_vm10 = vweird.f32 %v2363_v2 }
 0x14e   : >> { %v964_v27 = vand.u32 2147483647, %v2363_v2  ;;  %v981_v52 = vand.u32 2147483648, %v2369_v54  ;;  %v1038_v50 = vmul.f32 %v1500_v34, %v953_v46  ;;  %1097 = vst [vmem:[%s2582_s20 + $0xc] sm:$0x1] %v1036_v3  ;;  %vm2625_vm11 = vmor %vm960_vm10, %vm961_vm7  ;;  %vm975_vm12 = vweird.f32 %v2369_v54  ;;  %v1064_v2 = vld [vmem:[#allocation1] sm:$0xff] }
 0x14f   : >> { %v979_v10 = vand.u32 2147483647, %v2369_v54  ;;  %1098 = vst [vmem:[%s2582_s20 + $0x10] sm:$0x1] %v1037_v39  ;;  %v963_v60 = vsel %vm2625_vm11, %v2433_v19, %v959_v15  ;;  %vm977_vm13 = vmor %vm975_vm12, %vm976_vm9  ;;  %v967_v30 = vor.u32 1.1754944e-38, %v966_v63 }
 0x150   : >> { %1099 = vst [vmem:[%s2582_s20 + $0x14] sm:$0x1] %v1038_v50  ;;  %v978_v55 = vsel %vm977_vm13, %v2443_v33, %v974_v6  ;;  %vm965_vm14 = vcmp.eq.f32.partialorder %v964_v27, 8.507059e+37  ;;  %v982_v58 = vor.u32 1.1754944e-38, %v981_v52 }
 0x151   : >> { %v1502_v29 = vpop.eup %1501  ;;  %1066 = vst [vmem:[#allocation3] sm:$0xff] %v1064_v2  ;;  %v968_v54 = vsel %vm965_vm14, %v967_v30, %v963_v60  ;;  %vm980_vm15 = vcmp.eq.f32.partialorder %v979_v10, 8.507059e+37 }
 0x152   : >> { %v1504_v18 = vpop.eup %1503  ;;  %1075 = vst [vmem:[#allocation1] ss:$9 sm:$0xff] %v1033_v36  ;;  %v983_v44 = vsel %vm980_vm15, %v982_v58, %v978_v55  ;;  %v1039_v4 = vmul.f32 %v1502_v29, %v968_v54 }
 0x153   : >> { %1077 = vst [vmem:[#allocation1 + $0x1] ss:$9 sm:$0xff] %v1034_v14  ;;  %v1040_v19 = vmul.f32 %v1504_v18, %v983_v44 }
 0x154   : >> { %1079 = vst [vmem:[#allocation1 + $0x2] ss:$9 sm:$0xff] %v1035_v42 }
 0x155   : >> { %1081 = vst [vmem:[#allocation1 + $0x3] ss:$9 sm:$0xff] %v1036_v3 }
 0x156   : >> { %1083 = vst [vmem:[#allocation1 + $0x4] ss:$9 sm:$0xff] %v1037_v39 }
 0x157   : >> { %1085 = vst [vmem:[#allocation1 + $0x5] ss:$9 sm:$0xff] %v1038_v50 }
 0x158   : >> { %1087 = vst [vmem:[#allocation1 + $0x6] ss:$9 sm:$0xff] %v1039_v4 }
 0x159   : >> { %1089 = vst [vmem:[#allocation1 + $0x7] ss:$9 sm:$0xff] %v1040_v19 }
 0x15a   : >> { %1100 = vst [vmem:[%s2582_s20 + $0x18] sm:$0x1] %v1039_v4 }
 0x15b   : >> { %1101 = vst [vmem:[%s2582_s20 + $0x1c] sm:$0x1] %v1040_v19 }
 0x15d   : > { %215 = sbr.rel (!%p213_p12) target bundleno = 48 (0x30), region = 160 }
 0x160   : >> { %v1090_v33 = vld [vmem:[#allocation1] sm:$0xff] }
 0x161   : >> { %1092 = vst [vmem:[#allocation2] sm:$0xff] %v1090_v33 }
 0x162   : > { %1108 = sbr.rel (!%p1584_p5) target bundleno = 364 (0x16c), region = 62  ;;  %s1338_s21 = sshll.u32 (%p1584_p5), %s1569_s12, 2  ;;  %v1127_v49 = vld [vmem:[%s1625_s6] sm:$0xf] (%p1584_p5)  ;;  %v1129_v51 = vld [vmem:[%s1625_s6 + $0x4] sm:$0xf] (%p1584_p5) }
 0x163   : > { %s1110_s24 = scalar_lea.vmem (%p1584_p5), %s2668_s2, %s1338_s21  ;;  %v1131_v13 = vld [vmem:[%s1625_s6 + $0x8] sm:$0xf] (%p1584_p5)  ;;  %v1133_v1 = vld [vmem:[%s1625_s6 + $0xc] sm:$0xf] (%p1584_p5)  ;;  %v1135_v17 = vld [vmem:[%s1625_s6 + $0x10] sm:$0xf] (%p1584_p5) }
 0x164   : > { %1128 = vst [vmem:[%s1110_s24] sm:$0xf] (%p1584_p5), %v1127_v49  ;;  %v1137_v5 = vld [vmem:[%s1625_s6 + $0x14] sm:$0xf] (%p1584_p5)  ;;  %v1139_v41 = vld [vmem:[%s1625_s6 + $0x18] sm:$0xf] (%p1584_p5) }
 0x165   : > { %1130 = vst [vmem:[%s1110_s24 + $0x8] sm:$0xf] (%p1584_p5), %v1129_v51  ;;  %v1141_v7 = vld [vmem:[%s1625_s6 + $0x1c] sm:$0xf] (%p1584_p5) }
 0x166   : > { %1132 = vst [vmem:[%s1110_s24 + $0x10] sm:$0xf] (%p1584_p5), %v1131_v13 }
 0x167   : > { %1134 = vst [vmem:[%s1110_s24 + $0x18] sm:$0xf] %v1133_v1 }
 0x168   : > { %1136 = vst [vmem:[%s1110_s24 + $0x20] sm:$0xf] %v1135_v17 }
 0x169   : > { %1138 = vst [vmem:[%s1110_s24 + $0x28] sm:$0xf] %v1137_v5 }
 0x16a   : > { %1140 = vst [vmem:[%s1110_s24 + $0x30] sm:$0xf] %v1139_v41 }
 0x16b   : > { %1142 = vst [vmem:[%s1110_s24 + $0x38] sm:$0xf] %v1141_v7 }
 0x16c PF: > { %p9_p13 = scmp.ge.s32.totalorder %s1572_s13, 4   ;;  %s2777_s9 = smov %s1527_s10 }
 0x16d   : > { %s2778_s10 = smov %s1582_s16  ;;  %s2779_s11 = smov %s1572_s13 }
 0x16e   :  { %11 = sbr.rel (!%p9_p13) target bundleno = 2 (0x2), region = 171 }

// kernel: encoder_forward.13
= control target key start
LH: loop header
LB: loop body
LE: loop exit
PB: predicated region body
PF: predicated region fallthrough
CT: control target
= control target key end

     0   :  { %8 = vsyncpa [#allocation3], 0  ;;  %s2079_s0 = inlined_call_operand.vmem [shape: f32[2,6,512], index: 0, kind: input, shape index: {}]   ;;  %s2080_s1 = inlined_call_operand.hbm [shape: bf16[3,512,128], index: 1, kind: input, shape index: {}]   ;;  %s2081_s2 = inlined_call_operand.hbm [shape: f32[1,128], index: 2, kind: input, shape index: {}]   ;;  %s2082_s3 = inlined_call_operand.vmem [shape: bf16[2,4,128], index: 3, kind: output, shape index: {}]  }
   0x1   :  { %9 = vsyncpa [#allocation5], 0  ;;  %s1985_s12 = smov 0   ;;  %s1987_s13 = smov 0  }
   0x2   :  { %s1989_s14 = smov 0  }
   0x3 LB: > { %s1326_s15 = sadd.s32 4294967295, %s1959_s14   ;;  %s27_s16 = sadd.s32 1, %s1955_s13  ;;  %s1959_s14 = sphi %s1989_s14, %s15_s14   ;;  %s1955_s13 = sphi %s1987_s13, %s2086_s13   ;;  %s1951_s12 = sphi %s1985_s12, %s2085_s12  }
   0x4   : > { %p29_p0 = scmp.ge.s32.totalorder %s27_s16, 2  ;;  %p1328_p1 = scmp.ge.s32.totalorder %s1959_s14, 1 }
   0x5   : > { %p138_p2 = scmp.lt.s32.totalorder %s1959_s14, 3  ;;  %p2010_p4 = scmp.eq.s32.totalorder %s1326_s15, 0 }
   0x6   : > { %s2088_s16 = smov (%p29_p0, %s27_s16), 0  ;;  %s151_s21 = sshll.u32 %s2080_s1, 4  ;;  %s152_s21 = int_to_ptr.hbm [resolvable:$true] %s151_s21 }
   0x7   : > { %p2006_p3 = pnand %p1328_p1, %p138_p2  ;;  %s1961_s22 = smov [#allocation2]  }
   0x8   : > { %s153_s23 = sshll.u32 %s1961_s22, 4  ;;  %s167_s26 = sshll.u32 %s2081_s2, 4  ;;  %s154_s23 = int_to_ptr.vmem [resolvable:$true] %s153_s23  ;;  %s168_s26 = int_to_ptr.hbm [resolvable:$true] %s167_s26 }
   0x9   : > { %p1829_p5 = pneg %p2006_p3  ;;  %s1962_s27 = smov 64  }
   0xa   : > { %s1963_s28 = smov 4   ;;  %s1964_s29 = smov [#allocation4]  }
   0xb   : > { %p1830_p6 = pnand %p2010_p4, %p1829_p5  ;;  %s169_s30 = sshll.u32 %s1964_s29, 4  ;;  %s170_s30 = int_to_ptr.vmem [resolvable:$true] %s169_s30 }
   0xc   : > { %190 = sbr.rel (%p2006_p3) target bundleno = 263 (0x107), region = 32 }
   0xd   : > { %1832 = dma.hbm_to_vmem [thread:$0]  (!%p1830_p6), %s152_s21, 12288, %s154_s23, [#allocation3], %s1962_s27, %s1962_s27, %s1963_s28  }
   0xe   : > { %1835 = dma.hbm_to_vmem [thread:$0]  (!%p1830_p6), %s168_s26, 16, %s170_s30, [#allocation5]  }
  0x11   : > { %1942 = dma.done.wait (%p2010_p4), [#allocation3], 12288  }
  0x12   : > { %1944 = vsyncadd (%p2010_p4), [#allocation3], 4294955008 }
  0x13   : > { %1946 = dma.done.wait (%p2010_p4), [#allocation5], 16  }
  0x14   : > { %1948 = vsyncadd (%p2010_p4), [#allocation5], 4294967280  ;;  %v1764_v0 = vld [vmem:[#allocation2 + $0x138] sm:$0xff]  ;;  %v1763_v4 = vld [vmem:[#allocation2 + $0x130] sm:$0xff]  ;;  %p222_p7 = scmp.lt.s32.totalorder %s1951_s12, 1 }
  0x15   : > { %v1772_v1 = vld [vmem:[#allocation2 + $0x178] sm:$0xff]  ;;  %603 = vmatpush.bf16.msra.mxu0 %v1764_v0  ;;  %v1771_v5 = vld [vmem:[#allocation2 + $0x170] sm:$0xff]  ;;  %v1762_v8 = vld [vmem:[#allocation2 + $0x128] sm:$0xff] }
  0x16   : > { %v1780_v2 = vld [vmem:[#allocation2 + $0x1b8] sm:$0xff]  ;;  %616 = vmatpush.bf16.msra.mxu1 %v1772_v1  ;;  %v1779_v6 = vld [vmem:[#allocation2 + $0x1b0] sm:$0xff]  ;;  %v1770_v9 = vld [vmem:[#allocation2 + $0x168] sm:$0xff]  ;;  %s2090_s12 = smov (!%p222_p7, %s1951_s12), 1 }
  0x17   : > { %v1788_v3 = vld [vmem:[#allocation2 + $0x1f8] sm:$0xff]  ;;  %629 = vmatpush.bf16.msra.mxu2 %v1780_v2  ;;  %v1787_v7 = vld [vmem:[#allocation2 + $0x1f0] sm:$0xff]  ;;  %v1778_v10 = vld [vmem:[#allocation2 + $0x1a8] sm:$0xff]  ;;  %s1724_s4 = sshll.u32 %s2090_s12, 5  ;;  %s1337_s8 = sshll.u32 %s2090_s12, 1 }
  0x18   : > { %642 = vmatpush.bf16.msra.mxu3 %v1788_v3  ;;  %v1786_v11 = vld [vmem:[#allocation2 + $0x1e8] sm:$0xff]  ;;  %v1761_v12 = vld [vmem:[#allocation2 + $0x120] sm:$0xff]  ;;  %v1760_v16 = vld [vmem:[#allocation2 + $0x118] sm:$0xff]  ;;  %s226_s7 = scalar_lea.vmem %s2079_s0, %s1724_s4  ;;  %s233_s11 = scalar_lea.vmem %s2082_s3, %s1337_s8 }
  0x19   : > { %604 = vmatpush.bf16.msra.mxu0 %v1763_v4  ;;  %v1769_v13 = vld [vmem:[#allocation2 + $0x160] sm:$0xff]  ;;  %v1768_v17 = vld [vmem:[#allocation2 + $0x158] sm:$0xff]  ;;  %v1759_v20 = vld [vmem:[#allocation2 + $0x110] sm:$0xff] }
  0x1a   : > { %617 = vmatpush.bf16.msra.mxu1 %v1771_v5  ;;  %v1777_v14 = vld [vmem:[#allocation2 + $0x1a0] sm:$0xff]  ;;  %v1776_v18 = vld [vmem:[#allocation2 + $0x198] sm:$0xff]  ;;  %v236_v21 = vld [vmem:[%s226_s7 + $0x10] sm:$0x3f] }
  0x1b   : > { %630 = vmatpush.bf16.msra.mxu2 %v1779_v6  ;;  %v1785_v15 = vld [vmem:[#allocation2 + $0x1e0] sm:$0xff]  ;;  %v1784_v19 = vld [vmem:[#allocation2 + $0x1d8] sm:$0xff]  ;;  %v1767_v23 = vld [vmem:[#allocation2 + $0x150] sm:$0xff] }
  0x1c   : > { %643 = vmatpush.bf16.msra.mxu3 %v1787_v7  ;;  %v237_v22 = vld [vmem:[%s226_s7 + $0x18] sm:$0x3f]  ;;  %v234_v25 = vld [vmem:[%s226_s7] sm:$0x3f]  ;;  %v235_v26 = vld [vmem:[%s226_s7 + $0x8] sm:$0x3f] }
  0x1d   : > { %605 = vmatpush.bf16.msra.mxu0 %v1762_v8  ;;  %v239_v24 = vpack.c.bf16 %v237_v22, %v236_v21  ;;  %v1775_v27 = vld [vmem:[#allocation2 + $0x190] sm:$0xff]  ;;  %v238_v29 = vpack.c.bf16 %v235_v26, %v234_v25  ;;  %v1758_v34 = vld [vmem:[#allocation2 + $0x108] sm:$0xff]  ;;  %v1757_v46 = vld [vmem:[#allocation2 + $0x100] sm:$0xff] }
  0x1e   : > { %618 = vmatpush.bf16.msra.mxu1 %v1770_v9  ;;  %v1783_v28 = vld [vmem:[#allocation2 + $0x1d0] sm:$0xff]  ;;  %v1766_v35 = vld [vmem:[#allocation2 + $0x148] sm:$0xff]  ;;  %v1765_v47 = vld [vmem:[#allocation2 + $0x140] sm:$0xff] }
  0x1f   : > { %631 = vmatpush.bf16.msra.mxu2 %v1778_v10  ;;  %v373_v30 = vunpack.c.l.b16 %v239_v24  ;;  %v374_v31 = vunpack.c.h.b16 %v239_v24  ;;  %v371_v32 = vunpack.c.l.b16 %v238_v29  ;;  %v372_v33 = vunpack.c.h.b16 %v238_v29  ;;  %v1774_v38 = vld [vmem:[#allocation2 + $0x188] sm:$0xff]  ;;  %v1773_v52 = vld [vmem:[#allocation2 + $0x180] sm:$0xff]  ;;  %v1732_v58 = vld [vmem:[#allocation2 + $0x38] sm:$0xff] }
  0x20   : > { %644 = vmatpush.bf16.msra.mxu3 %v1786_v11  ;;  %v1782_v39 = vld [vmem:[#allocation2 + $0x1c8] sm:$0xff]  ;;  %v1781_v53 = vld [vmem:[#allocation2 + $0x1c0] sm:$0xff]  ;;  %v1740_v59 = vld [vmem:[#allocation2 + $0x78] sm:$0xff] }
  0x21   : > { %606 = vmatpush.bf16.msra.mxu0 %v1761_v12  ;;  %v2042_v36 = vpack.c.b16 %v373_v30, %v373_v30  ;;  %v2044_v37 = vpack.c.b16 %v374_v31, %v374_v31  ;;  %v2046_v40 = vpack.c.b16 %v371_v32, %v371_v32  ;;  %v2048_v41 = vpack.c.b16 %v372_v33, %v372_v33  ;;  %v1748_v60 = vld [vmem:[#allocation2 + $0xb8] sm:$0xff]  ;;  %v1731_v2 = vld [vmem:[#allocation2 + $0x30] sm:$0xff]  ;;  %v1730_v6 = vld [vmem:[#allocation2 + $0x28] sm:$0xff] }
  0x22   : > { %619 = vmatpush.bf16.msra.mxu1 %v1769_v13  ;;  %v1756_v61 = vld [vmem:[#allocation2 + $0xf8] sm:$0xff]  ;;  %v1739_v3 = vld [vmem:[#allocation2 + $0x70] sm:$0xff]  ;;  %v1738_v7 = vld [vmem:[#allocation2 + $0x68] sm:$0xff] }
  0x23   : > { %632 = vmatpush.bf16.msra.mxu2 %v1777_v14  ;;  %v396_v42 = vshll.u32 %v2042_v36, 16  ;;  %v403_v43 = vshll.u32 %v2044_v37, 16  ;;  %v382_v44 = vshll.u32 %v2046_v40, 16  ;;  %v389_v45 = vshll.u32 %v2048_v41, 16  ;;  %v1747_v4 = vld [vmem:[#allocation2 + $0xb0] sm:$0xff]  ;;  %v1746_v8 = vld [vmem:[#allocation2 + $0xa8] sm:$0xff] }
  0x24   : > { %645 = vmatpush.bf16.msra.mxu3 %v1785_v15  ;;  %v394_v48 = vshrl.u32 %v2042_v36, 16  ;;  %v380_v50 = vshrl.u32 %v2046_v40, 16  ;;  %v401_v51 = vshrl.u32 %v2044_v37, 16  ;;  %v387_v56 = vshrl.u32 %v2048_v41, 16  ;;  %v1755_v5 = vld [vmem:[#allocation2 + $0xf0] sm:$0xff]  ;;  %v1754_v9 = vld [vmem:[#allocation2 + $0xe8] sm:$0xff] }
  0x25   : > { %607 = vmatpush.bf16.msra.mxu0 %v1760_v16  ;;  %v398_v49 = vrot.slane %v396_v42, 1  ;;  %v384_v54 = vrot.slane %v382_v44, 1  ;;  %v405_v55 = vrot.slane %v403_v43, 1  ;;  %v391_v57 = vrot.slane %v389_v45, 1  ;;  %v1729_v10 = vld [vmem:[#allocation2 + $0x20] sm:$0xff]  ;;  %v1728_v14 = vld [vmem:[#allocation2 + $0x18] sm:$0xff] }
  0x26   : > { %620 = vmatpush.bf16.msra.mxu1 %v1768_v17  ;;  %v1737_v11 = vld [vmem:[#allocation2 + $0x60] sm:$0xff]  ;;  %v1736_v15 = vld [vmem:[#allocation2 + $0x58] sm:$0xff]  ;;  %v1751_v21 = vld [vmem:[#allocation2 + $0xd0] sm:$0xff] }
  0x27   : > { %633 = vmatpush.bf16.msra.mxu2 %v1776_v18  ;;  %v399_v62 = vor.u32 %v398_v49, %v394_v48  ;;  %v385_v63 = vor.u32 %v384_v54, %v380_v50  ;;  %v406_v0 = vor.u32 %v405_v55, %v401_v51  ;;  %v392_v1 = vor.u32 %v391_v57, %v387_v56  ;;  %v1745_v12 = vld [vmem:[#allocation2 + $0xa0] sm:$0xff]  ;;  %v1744_v16 = vld [vmem:[#allocation2 + $0x98] sm:$0xff]  ;;  %v1727_v18 = vld [vmem:[#allocation2 + $0x10] sm:$0xff] }
  0x28   : > { %646 = vmatpush.bf16.msra.mxu3 %v1784_v19  ;;  %v1753_v13 = vld [vmem:[#allocation2 + $0xe0] sm:$0xff]  ;;  %v1752_v17 = vld [vmem:[#allocation2 + $0xd8] sm:$0xff]  ;;  %v1735_v19 = vld [vmem:[#allocation2 + $0x50] sm:$0xff] }
  0x29   : > { %608 = vmatpush.bf16.msra.mxu0 %v1759_v20  ;;  %v1743_v20 = vld [vmem:[#allocation2 + $0x90] sm:$0xff]  ;;  %v1726_v22 = vld [vmem:[#allocation2 + $0x8] sm:$0xff]  ;;  %v1725_v26 = vld [vmem:[#allocation2] sm:$0xff] }
  0x2a   : > { %621 = vmatpush.bf16.msra.mxu1 %v1767_v23  ;;  %v1734_v23 = vld [vmem:[#allocation2 + $0x48] sm:$0xff]  ;;  %v1749_v29 = vld [vmem:[#allocation2 + $0xc0] sm:$0xff]  ;;  %v1796_v30 = vld [vmem:[#allocation2 + $0x238] sm:$0xff] }
  0x2b   : > { %634 = vmatpush.bf16.msra.mxu2 %v1775_v27  ;;  %v1742_v24 = vld [vmem:[#allocation2 + $0x88] sm:$0xff]  ;;  %v1733_v27 = vld [vmem:[#allocation2 + $0x40] sm:$0xff]  ;;  %v1804_v31 = vld [vmem:[#allocation2 + $0x278] sm:$0xff] }
  0x2c   : > { %647 = vmatpush.bf16.msra.mxu3 %v1783_v28  ;;  %v1750_v25 = vld [vmem:[#allocation2 + $0xc8] sm:$0xff]  ;;  %v1741_v28 = vld [vmem:[#allocation2 + $0x80] sm:$0xff]  ;;  %v1812_v32 = vld [vmem:[#allocation2 + $0x2b8] sm:$0xff] }
  0x2d   : > { %609 = vmatpush.bf16.msra.mxu0 %v1758_v34  ;;  %v1820_v33 = vld [vmem:[#allocation2 + $0x2f8] sm:$0xff]  ;;  %v1795_v34 = vld [vmem:[#allocation2 + $0x230] sm:$0xff]  ;;  %v1794_v42 = vld [vmem:[#allocation2 + $0x228] sm:$0xff] }
  0x2e   : > { %622 = vmatpush.bf16.msra.mxu1 %v1766_v35  ;;  %v1803_v35 = vld [vmem:[#allocation2 + $0x270] sm:$0xff]  ;;  %v1802_v43 = vld [vmem:[#allocation2 + $0x268] sm:$0xff]  ;;  %v1809_v48 = vld [vmem:[#allocation2 + $0x2a0] sm:$0xff] }
  0x2f   : > { %635 = vmatpush.bf16.msra.mxu2 %v1774_v38  ;;  %v1811_v38 = vld [vmem:[#allocation2 + $0x2b0] sm:$0xff]  ;;  %v1810_v44 = vld [vmem:[#allocation2 + $0x2a8] sm:$0xff]  ;;  %v1817_v49 = vld [vmem:[#allocation2 + $0x2e0] sm:$0xff] }
  0x30   : > { %648 = vmatpush.bf16.msra.mxu3 %v1782_v39  ;;  %v1819_v39 = vld [vmem:[#allocation2 + $0x2f0] sm:$0xff]  ;;  %v1818_v45 = vld [vmem:[#allocation2 + $0x2e8] sm:$0xff]  ;;  %v1792_v50 = vld [vmem:[#allocation2 + $0x218] sm:$0xff] }
  0x31   : > { %610 = vmatpush.bf16.msra.mxu0 %v1757_v46  ;;  %v1793_v46 = vld [vmem:[#allocation2 + $0x220] sm:$0xff]  ;;  %v1800_v51 = vld [vmem:[#allocation2 + $0x258] sm:$0xff]  ;;  %v1791_v54 = vld [vmem:[#allocation2 + $0x210] sm:$0xff] }
  0x32   : > { %623 = vmatpush.bf16.msra.mxu1 %v1765_v47  ;;  %v1801_v47 = vld [vmem:[#allocation2 + $0x260] sm:$0xff]  ;;  %v1799_v55 = vld [vmem:[#allocation2 + $0x250] sm:$0xff] }
  0x33   : > { %636 = vmatpush.bf16.msra.mxu2 %v1773_v52  ;;  %v1808_v52 = vld [vmem:[#allocation2 + $0x298] sm:$0xff]  ;;  %v1807_v56 = vld [vmem:[#allocation2 + $0x290] sm:$0xff] }
  0x34   : > { %649 = vmatpush.bf16.msra.mxu3 %v1781_v53  ;;  %611 = vmatmul.bf16.vlgmr.msra.gmra.mxu0 %v385_v63  ;;  %v1816_v53 = vld [vmem:[#allocation2 + $0x2d8] sm:$0xff]  ;;  %v1815_v57 = vld [vmem:[#allocation2 + $0x2d0] sm:$0xff]  ;;  %v1797_v63 = vld [vmem:[#allocation2 + $0x240] sm:$0xff] }
  0x35   : > { %851 = vmatpush.bf16.msrb.mxu0 %v1732_v58  ;;  %624 = vmatmul.bf16.vlgmr.msra.gmra.mxu1 %v392_v1  ;;  %v1790_v58 = vld [vmem:[#allocation2 + $0x208] sm:$0xff]  ;;  %v1813_v1 = vld [vmem:[#allocation2 + $0x2c0] sm:$0xff] }
  0x36   : > { %864 = vmatpush.bf16.msrb.mxu1 %v1740_v59  ;;  %637 = vmatmul.bf16.vlgmr.msra.gmra.mxu2 %v399_v62  ;;  %v1798_v59 = vld [vmem:[#allocation2 + $0x248] sm:$0xff]  ;;  %v1789_v62 = vld [vmem:[#allocation2 + $0x200] sm:$0xff] }
  0x37   : > { %877 = vmatpush.bf16.msrb.mxu2 %v1748_v60  ;;  %650 = vmatmul.bf16.vlgmr.msra.gmra.mxu3 %v406_v0  ;;  %v1806_v60 = vld [vmem:[#allocation2 + $0x288] sm:$0xff]  ;;  %v1805_v0 = vld [vmem:[#allocation2 + $0x280] sm:$0xff] }
  0x38   : > { %890 = vmatpush.bf16.msrb.mxu3 %v1756_v61  ;;  %v1814_v61 = vld [vmem:[#allocation2 + $0x2c8] sm:$0xff] }
  0x39   : > { %852 = vmatpush.bf16.msrb.mxu0 %v1731_v2  ;;  %v968_v2 = vrot.slane %v2046_v40, 1 }
  0x3a   : > { %865 = vmatpush.bf16.msrb.mxu1 %v1739_v3  ;;  %v969_v3 = vrot.slane %v2048_v41, 1 }
  0x3b   : > { %878 = vmatpush.bf16.msrb.mxu2 %v1747_v4  ;;  %v970_v4 = vrot.slane %v2042_v36, 1 }
  0x3c   : > { %891 = vmatpush.bf16.msrb.mxu3 %v1755_v5  ;;  %v971_v5 = vrot.slane %v2044_v37, 1 }
  0x3d   : > { %853 = vmatpush.bf16.msrb.mxu0 %v1730_v6 }
  0x3e   : > { %866 = vmatpush.bf16.msrb.mxu1 %v1738_v7 }
  0x3f   : > { %879 = vmatpush.bf16.msrb.mxu2 %v1746_v8 }
  0x40   : > { %892 = vmatpush.bf16.msrb.mxu3 %v1754_v9 }
  0x41   : > { %854 = vmatpush.bf16.msrb.mxu0 %v1729_v10 }
  0x42   : > { %867 = vmatpush.bf16.msrb.mxu1 %v1737_v11 }
  0x43   : > { %880 = vmatpush.bf16.msrb.mxu2 %v1745_v12 }
  0x44   : > { %893 = vmatpush.bf16.msrb.mxu3 %v1753_v13 }
  0x45   : > { %855 = vmatpush.bf16.msrb.mxu0 %v1728_v14 }
  0x46   : > { %868 = vmatpush.bf16.msrb.mxu1 %v1736_v15 }
  0x47   : > { %881 = vmatpush.bf16.msrb.mxu2 %v1744_v16 }
  0x48   : > { %894 = vmatpush.bf16.msrb.mxu3 %v1752_v17 }
  0x49   : > { %856 = vmatpush.bf16.msrb.mxu0 %v1727_v18 }
  0x4a   : > { %869 = vmatpush.bf16.msrb.mxu1 %v1735_v19 }
  0x4b   : > { %882 = vmatpush.bf16.msrb.mxu2 %v1743_v20 }
  0x4c   : > { %895 = vmatpush.bf16.msrb.mxu3 %v1751_v21 }
  0x4d   : > { %857 = vmatpush.bf16.msrb.mxu0 %v1726_v22 }
  0x4e   : > { %870 = vmatpush.bf16.msrb.mxu1 %v1734_v23 }
  0x4f   : > { %883 = vmatpush.bf16.msrb.mxu2 %v1742_v24 }
  0x50   : > { %896 = vmatpush.bf16.msrb.mxu3 %v1750_v25 }
  0x51   : > { %858 = vmatpush.bf16.msrb.mxu0 %v1725_v26 }
  0x52   : > { %871 = vmatpush.bf16.msrb.mxu1 %v1733_v27 }
  0x53   : > { %884 = vmatpush.bf16.msrb.mxu2 %v1741_v28 }
  0x54   : > { %897 = vmatpush.bf16.msrb.mxu3 %v1749_v29  ;;  %859 = vmatmul.bf16.vlgmr.msrb.gmra.mxu0 %v2046_v40 }
  0x55   : > { %1168 = vmatpush.bf16.msra.mxu0 %v1796_v30  ;;  %872 = vmatmul.bf16.vlgmr.msrb.gmra.mxu1 %v2048_v41 }
  0x56   : > { %1181 = vmatpush.bf16.msra.mxu1 %v1804_v31  ;;  %885 = vmatmul.bf16.vlgmr.msrb.gmra.mxu2 %v2042_v36 }
  0x57   : > { %1194 = vmatpush.bf16.msra.mxu2 %v1812_v32  ;;  %898 = vmatmul.bf16.vlgmr.msrb.gmra.mxu3 %v2044_v37 }
  0x58   : > { %1207 = vmatpush.bf16.msra.mxu3 %v1820_v33 }
  0x59   : > { %1169 = vmatpush.bf16.msra.mxu0 %v1795_v34  ;;  %v1868_v34 = vld [vmem:[#allocation4] ss:$0 sm:$0xff] }
  0x5a   : > { %1182 = vmatpush.bf16.msra.mxu1 %v1803_v35 }
  0x5b   : > { %1195 = vmatpush.bf16.msra.mxu2 %v1811_v38 }
  0x5c   : > { %1208 = vmatpush.bf16.msra.mxu3 %v1819_v39 }
  0x5d   : > { %1170 = vmatpush.bf16.msra.mxu0 %v1794_v42 }
  0x5e   : > { %1183 = vmatpush.bf16.msra.mxu1 %v1802_v43 }
  0x5f   : > { %1196 = vmatpush.bf16.msra.mxu2 %v1810_v44 }
  0x60   : > { %1209 = vmatpush.bf16.msra.mxu3 %v1818_v45 }
  0x61   : > { %1171 = vmatpush.bf16.msra.mxu0 %v1793_v46 }
  0x62   : > { %1184 = vmatpush.bf16.msra.mxu1 %v1801_v47 }
  0x63   : > { %1197 = vmatpush.bf16.msra.mxu2 %v1809_v48 }
  0x64   : > { %1210 = vmatpush.bf16.msra.mxu3 %v1817_v49 }
  0x65   : > { %1172 = vmatpush.bf16.msra.mxu0 %v1792_v50 }
  0x66   : > { %1185 = vmatpush.bf16.msra.mxu1 %v1800_v51 }
  0x67   : > { %1198 = vmatpush.bf16.msra.mxu2 %v1808_v52 }
  0x68   : > { %1211 = vmatpush.bf16.msra.mxu3 %v1816_v53 }
  0x69   : > { %1173 = vmatpush.bf16.msra.mxu0 %v1791_v54 }
  0x6a   : > { %1186 = vmatpush.bf16.msra.mxu1 %v1799_v55 }
  0x6b   : > { %1199 = vmatpush.bf16.msra.mxu2 %v1807_v56 }
  0x6c   : > { %1212 = vmatpush.bf16.msra.mxu3 %v1815_v57 }
  0x6d   : > { %1174 = vmatpush.bf16.msra.mxu0 %v1790_v58 }
  0x6e   : > { %1187 = vmatpush.bf16.msra.mxu1 %v1798_v59 }
  0x6f   : > { %1200 = vmatpush.bf16.msra.mxu2 %v1806_v60 }
  0x70   : > { %1213 = vmatpush.bf16.msra.mxu3 %v1814_v61 }
  0x71   : > { %1175 = vmatpush.bf16.msra.mxu0 %v1789_v62 }
  0x72   : > { %1188 = vmatpush.bf16.msra.mxu1 %v1797_v63 }
  0x73   : > { %1201 = vmatpush.bf16.msra.mxu2 %v1805_v0 }
  0x74   : > { %1214 = vmatpush.bf16.msra.mxu3 %v1813_v1  ;;  %1176 = vmatmul.bf16.vlgmr.msra.gmra.mxu0 %v968_v2 }
  0x75   : > { %1189 = vmatmul.bf16.vlgmr.msra.gmra.mxu1 %v969_v3 }
  0x76   : > { %1202 = vmatmul.bf16.vlgmr.msra.gmra.mxu2 %v970_v4 }
  0x77   : > { %1215 = vmatmul.bf16.vlgmr.msra.gmra.mxu3 %v971_v5 }
  0xb1   : > { %v612_v6 = vpop.f32.mrf.mxu0 }
  0xb2   : > { %v625_v7 = vpop.f32.mrf.mxu1 }
  0xb3   : > { %v626_v17 = vadd.f32 %v625_v7, %v612_v6 }
  0xb9   : > { %v638_v8 = vpop.f32.mrf.mxu2  ;;  %v614_v10 = vpop.f32.mrf.mxu0 }
  0xba   : > { %v651_v9 = vpop.f32.mrf.mxu3  ;;  %v627_v40 = vpop.f32.mrf.mxu1  ;;  %v639_v19 = vadd.f32 %v638_v8, %v626_v17 }
  0xbc   : > { %v652_v20 = vadd.f32 %v651_v9, %v639_v19 }
  0xc1   : > { %v640_v11 = vpop.f32.mrf.mxu2 }
  0xc2   : > { %v653_v41 = vpop.f32.mrf.mxu3 }
  0xd1   : > { %v860_v12 = vpop.f32.mrf.mxu0 }
  0xd2   : > { %v873_v13 = vpop.f32.mrf.mxu1  ;;  %v861_v21 = vadd.f32 %v860_v12, %v652_v20 }
  0xd4   : > { %v874_v24 = vadd.f32 %v873_v13, %v861_v21 }
  0xd9   : > { %v886_v14 = vpop.f32.mrf.mxu2  ;;  %v862_v15 = vpop.f32.mrf.mxu0 }
  0xda   : > { %v899_v36 = vpop.f32.mrf.mxu3  ;;  %v875_v37 = vpop.f32.mrf.mxu1  ;;  %v887_v26 = vadd.f32 %v886_v14, %v874_v24 }
  0xdc   : > { %v900_v32 = vadd.f32 %v899_v36, %v887_v26 }
  0xe1   : > { %v888_v16 = vpop.f32.mrf.mxu2 }
  0xe2   : > { %v901_v18 = vpop.f32.mrf.mxu3 }
  0xf1   : > { %v1177_v22 = vpop.f32.mrf.mxu0 }
  0xf2   : > { %v1190_v23 = vpop.f32.mrf.mxu1 }
  0xf3   : > { %v1191_v25 = vadd.f32 %v1190_v23, %v1177_v22 }
  0xf9   : > { %v1203_v27 = vpop.f32.mrf.mxu2  ;;  %v1179_v30 = vpop.f32.mrf.mxu0 }
  0xfa   : > { %v1216_v28 = vpop.f32.mrf.mxu3  ;;  %v1204_v29 = vadd.f32 %v1203_v27, %v1191_v25  ;;  %v1192_v31 = vpop.f32.mrf.mxu1 }
  0xfc   : > { %v1217_v33 = vadd.f32 %v1216_v28, %v1204_v29 }
  0xfe   : > { %v1220_v35 = vadd.f32 %v1217_v33, %v900_v32 }
 0x100   : > { %v1225_v38 = vadd.f32 %v1868_v34, %v1220_v35 }
 0x101   : > { %v1205_v39 = vpop.f32.mrf.mxu2 }
 0x102   : > { %v1218_v42 = vpop.f32.mrf.mxu3  ;;  %v1226_v43 = vmax.f32 %v1225_v38, 0.0 }
 0x104   : > { %v1227_v44 = vpack.c.bf16 %v1226_v43, %v1226_v43 }
 0x106   : > { %1228 = vst [vmem:[%s233_s11] sm:$0x3] %v1227_v44 }
 0x107 PF: > { %s15_s14 = sadd.s32 1, %s1959_s14   ;;  %s2085_s12 = smov %s1955_s13 }
 0x108   : > { %p12_p8 = scmp.ge.s32.totalorder %s15_s14, 4   ;;  %s2086_s13 = smov %s2088_s16 }
 0x10a   :  { %14 = sbr.rel (!%p12_p8) target bundleno = 3 (0x3), region = 75 }
 0x10f   :  { %1254 = vsyncpa [#allocation3], 1 }
 0x110   :  { %1256 = vsyncpa [#allocation3 + $0x1], 1 }
 0x111   :  { %1257 = vsyncpa [#allocation5], 1 }

</bundles_post_ra>
